<compile_context>
chip_gen: v5e
topology: v5e:2x2
jax: 0.10.0
libtpu: 0.0.40
codegen_flags: <defaults>
</compile_context>

<pallas_src>
import numpy as np
import jax
import jax.numpy as jnp
from jax.experimental import pallas as pl
from jax.experimental.pallas import tpu as pltpu

COORD_DIMS = 2
INPUT_TIMESTEPS = 8
OUTPUT_TIMESTEPS = 4
HIDDEN_SIZE = 32
POSITIONAL_EMBEDDINGS = 2
RAW_FEAT = COORD_DIMS                                  # p_in=0, v_in=0
INPUT_SIZE = RAW_FEAT * 2 * POSITIONAL_EMBEDDINGS      # 8
GATES = 3 * HIDDEN_SIZE                                # 96
OUT_FLAT = OUTPUT_TIMESTEPS * COORD_DIMS               # 8

PARAM_ORDER = [
    "w_ir", "w_iz", "w_in", "b_ir", "b_iz", "b_in",
    "w_hr", "w_hz", "w_hn", "b_hr", "b_hz", "b_hn",
    "w1", "b1", "w2", "b2", "w3", "b3",
]

# Row offsets inside the packed MLP slab (lane width = 2*HIDDEN_SIZE = 64).
_MLP_W1_R = 0                      # w1: (32, 64)
_MLP_B1_R = 32                     # b1: (1, 64)       (padded to 8 rows)
_MLP_W2_R = 40                     # w2: (64, 64)      (cols 32:64 zero)
_MLP_B2_R = 104                    # b2: (1, 64)       (padded)
_MLP_W3_R = 112                    # w3: (64, 64)      (real values in [0:32, 0:2])
_MLP_B3_R = 176                    # b3: (1, 64)       (padded)
_MLP_ROWS = 184


def _round_up(x, m):
    return ((x + m - 1) // m) * m


def _pos_emb(x):
    # Matches get_positional_embeddings: cat_i [sin(2^i*pi*x), cos(2^i*pi*x)].
    parts = []
    for i in range(POSITIONAL_EMBEDDINGS):
        f = (2.0 ** i) * np.pi
        parts.append(jnp.sin(f * x))
        parts.append(jnp.cos(f * x))
    return jnp.concatenate(parts, axis=-1)


def _leaky_relu(x, slope=0.01):
    return jnp.where(x >= 0, x, slope * x)


def _pack_params(params):
    """Pack the 18 parameter arrays into 2 lane-dense f32 slabs."""
    H = HIDDEN_SIZE

    # --- GRU slab: (INPUT_SIZE + H + 2, 3H) = (42, 96) ---------------------
    w_i = jnp.concatenate([params["w_ir"], params["w_iz"], params["w_in"]], axis=1)  # (8, 96)
    w_h = jnp.concatenate([params["w_hr"], params["w_hz"], params["w_hn"]], axis=1)  # (32, 96)
    # Fold additive bias pairs for r/z; keep b_hn on the hidden side (inside r*(...)).
    bias_x = jnp.concatenate([params["b_ir"] + params["b_hr"],
                              params["b_iz"] + params["b_hz"],
                              params["b_in"]], axis=1)                                # (1, 96)
    bias_h = jnp.concatenate([jnp.zeros((1, 2 * H), jnp.float32),
                              params["b_hn"]], axis=1)                                # (1, 96)
    gru_slab = jnp.concatenate([w_i, w_h, bias_x, bias_h], axis=0)                    # (42, 96)

    # --- MLP slab: (184, 64), zero-padded so no lane slicing is needed -----
    def pad_cols(a, width):
        return jnp.pad(a, ((0, 0), (0, width - a.shape[1])))

    def pad_rows(a, rows):
        return jnp.pad(a, ((0, rows - a.shape[0]), (0, 0)))

    w1 = params["w1"]                                           # (32, 64)
    b1 = pad_rows(pad_cols(params["b1"], 2 * H), 8)             # (8, 64)
    w2 = pad_cols(params["w2"], 2 * H)                          # (64, 64)
    b2 = pad_rows(pad_cols(params["b2"], 2 * H), 8)             # (8, 64)
    w3 = pad_rows(pad_cols(params["w3"], 2 * H), 2 * H)         # (64, 64)
    b3 = pad_rows(pad_cols(params["b3"], 2 * H), 8)             # (8, 64)
    mlp_slab = jnp.concatenate([w1, b1, w2, b2, w3, b3], axis=0)  # (184, 64)
    assert mlp_slab.shape[0] == _MLP_ROWS

    return gru_slab, mlp_slab


def _rnn_kernel(gx_ref, gru_ref, mlp_ref, out_ref):
    """GRU encoder (pre-projected inputs) + autoregressive decode, one batch tile per grid step."""
    H = HIDDEN_SIZE
    F = INPUT_SIZE
    Bt = out_ref.shape[0]

    # Static, sublane-aligned slices of the packed slabs (loaded once).
    w_i    = gru_ref[0:F, :]                 # (8, 96)   used only by decoder steps
    w_h    = gru_ref[F:F + H, :]             # (32, 96)
    bias_x = gru_ref[F + H:F + H + 1, :]     # (1, 96)   [b_ir+b_hr | b_iz+b_hz | b_in]
    bias_h = gru_ref[F + H + 1:F + H + 2, :] # (1, 96)   [0 | 0 | b_hn]

    w1 = mlp_ref[_MLP_W1_R:_MLP_W1_R + H, :]          # (32, 64)
    b1 = mlp_ref[_MLP_B1_R:_MLP_B1_R + 1, :]          # (1, 64)
    w2 = mlp_ref[_MLP_W2_R:_MLP_W2_R + 2 * H, :]      # (64, 64)
    b2 = mlp_ref[_MLP_B2_R:_MLP_B2_R + 1, :]          # (1, 64)
    w3 = mlp_ref[_MLP_W3_R:_MLP_W3_R + 2 * H, :]      # (64, 64)
    b3 = mlp_ref[_MLP_B3_R:_MLP_B3_R + 1, :]          # (1, 64)

    # Hoist bias broadcasts out of the unrolled loops (JAX does not CSE them).
    bias_x_b = jnp.broadcast_to(bias_x, (Bt, GATES))
    bias_h_b = jnp.broadcast_to(bias_h, (Bt, GATES))
    b1_b = jnp.broadcast_to(b1, (Bt, 2 * H))
    b2_b = jnp.broadcast_to(b2, (Bt, 2 * H))
    b3_b = jnp.broadcast_to(b3, (Bt, 2 * H))

    def gru_update(gx, h):
        # PyTorch nn.GRU cell semantics, with packed (r|z|n) gate lanes.
        gh = jnp.dot(h, w_h, preferred_element_type=jnp.float32) + bias_h_b   # (Bt, 96)
        r = jax.nn.sigmoid(gx[:, 0:H] + gh[:, 0:H])
        z = jax.nn.sigmoid(gx[:, H:2 * H] + gh[:, H:2 * H])
        n = jnp.tanh(gx[:, 2 * H:3 * H] + r * gh[:, 2 * H:3 * H])
        return (1.0 - z) * n + z * h

    h = jnp.zeros((Bt, H), jnp.float32)      # hidden = None -> zeros
    outs = []
    x_dec = None
    for t_out in range(OUTPUT_TIMESTEPS):
        if t_out == 0:
            # Encoder: input projections precomputed in the wrapper (gx_ref),
            # only the h-dependent matmul stays on the serial chain.
            for t in range(INPUT_TIMESTEPS):
                h = gru_update(gx_ref[t], h)
        else:
            # Autoregressive decode step: project the 1-step pos-embedded input.
            gx = jnp.dot(x_dec, w_i, preferred_element_type=jnp.float32) + bias_x_b
            h = gru_update(gx, h)

        # MLP head (zero-padded to lane width 64; padding contributes exact zeros).
        a = _leaky_relu(jnp.dot(h, w1, preferred_element_type=jnp.float32) + b1_b)
        a = _leaky_relu(jnp.dot(a, w2, preferred_element_type=jnp.float32) + b2_b)
        o = jnp.dot(a, w3, preferred_element_type=jnp.float32) + b3_b   # (Bt, 64)
        out = o[:, 0:COORD_DIMS]                                        # (Bt, 2)
        outs.append(out)
        x_dec = _pos_emb(out)                                           # (Bt, 8)

    # Single lane-contiguous writeback of all decode steps.
    out_ref[...] = jnp.concatenate(outs, axis=-1)                       # (Bt, 8)


def _pick_b_tile(B, max_b_tile):
    """Batch tile: sublane-aligned, and >=2 tiles when B > 8 so both TensorCores
    get work on dual-TC chips (v7x). Cap defaults to 128 (native MXU M on v5e);
    raise to 256 on v6e/v7x only for large batches (spill-check first)."""
    if B <= 8:
        return 8
    half = _round_up((B + 1) // 2, 8)
    return min(max_b_tile, half)


def simple_rnn_forward(params, x, *, max_b_tile=128):
    """x: (B, input_timesteps, coord_dims) f32 -> (outputs (B, OT, coord_dims), ortho_loss)."""
    B = x.shape[0]

    gru_slab, mlp_slab = _pack_params(params)

    # Encoder input projections hoisted off the serial path (one batched matmul),
    # lane-dense (T, B, 96) layout fed to the kernel.
    x_pe = jnp.transpose(_pos_emb(x.astype(jnp.float32)), (1, 0, 2))    # (T, B, 8)
    w_i = gru_slab[0:INPUT_SIZE, :]                                     # (8, 96)
    bias_x = gru_slab[INPUT_SIZE + HIDDEN_SIZE:INPUT_SIZE + HIDDEN_SIZE + 1, :]
    gx_enc = x_pe @ w_i + bias_x                                        # (T, B, 96)

    # Pad batch to a sublane-aligned tile; tile the grid over batch (parallel).
    b_tile = _pick_b_tile(B, max_b_tile)
    b_pad = _round_up(B, b_tile)
    if b_pad != B:
        gx_enc = jnp.pad(gx_enc, ((0, 0), (0, b_pad - B), (0, 0)))
    nb = b_pad // b_tile

    out_flat = pl.pallas_call(
        _rnn_kernel,
        out_shape=jax.ShapeDtypeStruct((b_pad, OUT_FLAT), jnp.float32),
        grid=(nb,),
        in_specs=[
            pl.BlockSpec((INPUT_TIMESTEPS, b_tile, GATES), lambda i: (0, i, 0)),
            pl.BlockSpec(gru_slab.shape, lambda i: (0, 0)),
            pl.BlockSpec(mlp_slab.shape, lambda i: (0, 0)),
        ],
        out_specs=pl.BlockSpec((b_tile, OUT_FLAT), lambda i: (i, 0)),
        compiler_params=pltpu.CompilerParams(dimension_semantics=("parallel",)),
    )(gx_enc, gru_slab, mlp_slab)

    outputs = out_flat[:B].reshape(B, OUTPUT_TIMESTEPS, COORD_DIMS)
    ortho_loss = jnp.float32(0.0)  # TODO(synk): comes from undefined LaneEncoder
    return outputs, ortho_loss


def init_params(key):
    H = HIDDEN_SIZE
    bound = 1.0 / np.sqrt(H)
    keys = jax.random.split(key, len(PARAM_ORDER))

    def u(k, shape):
        return jax.random.uniform(k, shape, jnp.float32, -bound, bound)

    shapes = {
        "w_ir": (INPUT_SIZE, H), "w_iz": (INPUT_SIZE, H), "w_in": (INPUT_SIZE, H),
        "b_ir": (1, H), "b_iz": (1, H), "b_in": (1, H),
        "w_hr": (H, H), "w_hz": (H, H), "w_hn": (H, H),
        "b_hr": (1, H), "b_hz": (1, H), "b_hn": (1, H),
        "w1": (H, 2 * H), "b1": (1, 2 * H),
        "w2": (2 * H, H), "b2": (1, H),
        "w3": (H, COORD_DIMS), "b3": (1, COORD_DIMS),
    }
    return {name: u(k, shapes[name]) for name, k in zip(PARAM_ORDER, keys)}


def _reference_forward(params, x):
    """Pure-JAX reference (unpacked weights) for correctness checking."""
    def gru_step(h, x_t):
        r = jax.nn.sigmoid(x_t @ params["w_ir"] + params["b_ir"]
                           + h @ params["w_hr"] + params["b_hr"])
        z = jax.nn.sigmoid(x_t @ params["w_iz"] + params["b_iz"]
                           + h @ params["w_hz"] + params["b_hz"])
        n = jnp.tanh(x_t @ params["w_in"] + params["b_in"]
                     + r * (h @ params["w_hn"] + params["b_hn"]))
        return (1.0 - z) * n + z * h

    B = x.shape[0]
    h = jnp.zeros((B, HIDDEN_SIZE), jnp.float32)
    outs = []
    x_dec = None
    for t_out in range(OUTPUT_TIMESTEPS):
        if t_out == 0:
            for t in range(INPUT_TIMESTEPS):
                h = gru_step(h, _pos_emb(x[:, t, :]))
        else:
            h = gru_step(h, x_dec)
        a = _leaky_relu(h @ params["w1"] + params["b1"])
        a = _leaky_relu(a @ params["w2"] + params["b2"])
        out = a @ params["w3"] + params["b3"]
        outs.append(out)
        x_dec = _pos_emb(out)
    return jnp.stack(outs, axis=1)


if __name__ == "__main__":
    key = jax.random.PRNGKey(0)
    pkey, xkey = jax.random.split(key)
    params = init_params(pkey)
    x = jax.random.normal(xkey, (2, INPUT_TIMESTEPS, RAW_FEAT), jnp.float32)

    outputs, ortho_loss = simple_rnn_forward(params, x)
    outputs = jax.block_until_ready(outputs)

    ref = _reference_forward(params, x)
    np.testing.assert_allclose(np.asarray(outputs), np.asarray(ref), rtol=1e-4, atol=5e-4)

    print("KERNEL_OK")
</pallas_src>

<mosaic_0001>
module attributes {stable_mosaic.version = 11 : i64} {
  func.func @_rnn_kernel(%arg0: i32, %arg1: memref<8x8x96xf32, #tpu.memory_space<vmem>>, %arg2: memref<42x96xf32, #tpu.memory_space<vmem>>, %arg3: memref<184x64xf32, #tpu.memory_space<vmem>>, %arg4: memref<8x8xf32, #tpu.memory_space<vmem>>) attributes {dimension_semantics = [#tpu.dimension_semantics<parallel>], iteration_bounds = array<i64: 1>, scalar_prefetch = 0 : i64, scratch_operands = 0 : i64, tpu.core_type = #tpu.core_type<tc>, window_params = [{transform_indices = @transform_0, window_bounds = array<i64: 8, 8, 96>}, {pipeline_mode = #tpu.pipeline_mode<synchronous>, transform_indices = @transform_1, window_bounds = array<i64: 42, 96>}, {pipeline_mode = #tpu.pipeline_mode<synchronous>, transform_indices = @transform_2, window_bounds = array<i64: 184, 64>}, {transform_indices = @transform_3, window_bounds = array<i64: 8, 8>}]} {
    %c0 = arith.constant 0 : index
    %c0_0 = arith.constant 0 : index
    %0 = vector.load %arg2[%c0, %c0_0] : memref<42x96xf32, #tpu.memory_space<vmem>>, vector<8x96xf32>
    %c8 = arith.constant 8 : index
    %c0_1 = arith.constant 0 : index
    %1 = vector.load %arg2[%c8, %c0_1] : memref<42x96xf32, #tpu.memory_space<vmem>>, vector<32x96xf32>
    %c40 = arith.constant 40 : index
    %c0_2 = arith.constant 0 : index
    %2 = vector.load %arg2[%c40, %c0_2] : memref<42x96xf32, #tpu.memory_space<vmem>>, vector<1x96xf32>
    %c41 = arith.constant 41 : index
    %c0_3 = arith.constant 0 : index
    %3 = vector.load %arg2[%c41, %c0_3] : memref<42x96xf32, #tpu.memory_space<vmem>>, vector<1x96xf32>
    %c0_4 = arith.constant 0 : index
    %c0_5 = arith.constant 0 : index
    %4 = vector.load %arg3[%c0_4, %c0_5] : memref<184x64xf32, #tpu.memory_space<vmem>>, vector<32x64xf32>
    %c32 = arith.constant 32 : index
    %c0_6 = arith.constant 0 : index
    %5 = vector.load %arg3[%c32, %c0_6] : memref<184x64xf32, #tpu.memory_space<vmem>>, vector<1x64xf32>
    %c40_7 = arith.constant 40 : index
    %c0_8 = arith.constant 0 : index
    %6 = vector.load %arg3[%c40_7, %c0_8] : memref<184x64xf32, #tpu.memory_space<vmem>>, vector<64x64xf32>
    %c104 = arith.constant 104 : index
    %c0_9 = arith.constant 0 : index
    %7 = vector.load %arg3[%c104, %c0_9] : memref<184x64xf32, #tpu.memory_space<vmem>>, vector<1x64xf32>
    %c112 = arith.constant 112 : index
    %c0_10 = arith.constant 0 : index
    %8 = vector.load %arg3[%c112, %c0_10] : memref<184x64xf32, #tpu.memory_space<vmem>>, vector<64x64xf32>
    %c176 = arith.constant 176 : index
    %c0_11 = arith.constant 0 : index
    %9 = vector.load %arg3[%c176, %c0_11] : memref<184x64xf32, #tpu.memory_space<vmem>>, vector<1x64xf32>
    %10 = vector.shape_cast %2 : vector<1x96xf32> to vector<1x96xf32>
    %11 = vector.broadcast %10 : vector<1x96xf32> to vector<8x96xf32>
    %12 = vector.shape_cast %3 : vector<1x96xf32> to vector<1x96xf32>
    %13 = vector.broadcast %12 : vector<1x96xf32> to vector<8x96xf32>
    %14 = vector.shape_cast %5 : vector<1x64xf32> to vector<1x64xf32>
    %15 = vector.broadcast %14 : vector<1x64xf32> to vector<8x64xf32>
    %16 = vector.shape_cast %7 : vector<1x64xf32> to vector<1x64xf32>
    %17 = vector.broadcast %16 : vector<1x64xf32> to vector<8x64xf32>
    %18 = vector.shape_cast %9 : vector<1x64xf32> to vector<1x64xf32>
    %19 = vector.broadcast %18 : vector<1x64xf32> to vector<8x64xf32>
    %cst = arith.constant 0.000000e+00 : f32
    %20 = vector.broadcast %cst : f32 to vector<8x32xf32>
    %c0_12 = arith.constant 0 : index
    %c0_13 = arith.constant 0 : index
    %c0_14 = arith.constant 0 : index
    %21 = vector.load %arg1[%c0_12, %c0_13, %c0_14] : memref<8x8x96xf32, #tpu.memory_space<vmem>>, vector<1x8x96xf32>
    %22 = vector.shape_cast %21 : vector<1x8x96xf32> to vector<8x96xf32>
    %cst_15 = arith.constant dense<0.000000e+00> : vector<8x96xf32>
    %23 = tpu.matmul %20, %1, %cst_15 {dimension_numbers = #tpu.dot_dimension_numbers<[1], [0], [0], [1], [0, 0, 1, 1], [], []>} : vector<8x32xf32>, vector<32x96xf32>, vector<8x96xf32> -> vector<8x96xf32>
    %24 = arith.addf %23, %13 : vector<8x96xf32>
    %25 = vector.extract_strided_slice %22 {offsets = [0, 0], sizes = [8, 32], strides = [1, 1]} : vector<8x96xf32> to vector<8x32xf32>
    %26 = vector.extract_strided_slice %24 {offsets = [0, 0], sizes = [8, 32], strides = [1, 1]} : vector<8x96xf32> to vector<8x32xf32>
    %27 = arith.addf %25, %26 : vector<8x32xf32>
    %28 = arith.negf %27 : vector<8x32xf32>
    %29 = math.exp %28 : vector<8x32xf32>
    %cst_16 = arith.constant 1.000000e+00 : f32
    %30 = vector.broadcast %cst_16 : f32 to vector<8x32xf32>
    %31 = arith.addf %30, %29 : vector<8x32xf32>
    %32 = arith.divf %30, %31 : vector<8x32xf32>
    %33 = vector.extract_strided_slice %22 {offsets = [0, 32], sizes = [8, 32], strides = [1, 1]} : vector<8x96xf32> to vector<8x32xf32>
    %34 = vector.extract_strided_slice %24 {offsets = [0, 32], sizes = [8, 32], strides = [1, 1]} : vector<8x96xf32> to vector<8x32xf32>
    %35 = arith.addf %33, %34 : vector<8x32xf32>
    %36 = arith.negf %35 : vector<8x32xf32>
    %37 = math.exp %36 : vector<8x32xf32>
    %cst_17 = arith.constant 1.000000e+00 : f32
    %38 = vector.broadcast %cst_17 : f32 to vector<8x32xf32>
    %39 = arith.addf %38, %37 : vector<8x32xf32>
    %40 = arith.divf %38, %39 : vector<8x32xf32>
    %41 = vector.extract_strided_slice %22 {offsets = [0, 64], sizes = [8, 32], strides = [1, 1]} : vector<8x96xf32> to vector<8x32xf32>
    %42 = vector.extract_strided_slice %24 {offsets = [0, 64], sizes = [8, 32], strides = [1, 1]} : vector<8x96xf32> to vector<8x32xf32>
    %43 = arith.mulf %32, %42 : vector<8x32xf32>
    %44 = arith.addf %41, %43 : vector<8x32xf32>
    %45 = math.tanh %44 : vector<8x32xf32>
    %cst_18 = arith.constant 1.000000e+00 : f32
    %46 = vector.broadcast %cst_18 : f32 to vector<8x32xf32>
    %47 = arith.subf %46, %40 : vector<8x32xf32>
    %48 = arith.mulf %47, %45 : vector<8x32xf32>
    %49 = arith.mulf %40, %20 : vector<8x32xf32>
    %50 = arith.addf %48, %49 : vector<8x32xf32>
    %c1 = arith.constant 1 : index
    %c0_19 = arith.constant 0 : index
    %c0_20 = arith.constant 0 : index
    %51 = vector.load %arg1[%c1, %c0_19, %c0_20] : memref<8x8x96xf32, #tpu.memory_space<vmem>>, vector<1x8x96xf32>
    %52 = vector.shape_cast %51 : vector<1x8x96xf32> to vector<8x96xf32>
    %cst_21 = arith.constant dense<0.000000e+00> : vector<8x96xf32>
    %53 = tpu.matmul %50, %1, %cst_21 {dimension_numbers = #tpu.dot_dimension_numbers<[1], [0], [0], [1], [0, 0, 1, 1], [], []>} : vector<8x32xf32>, vector<32x96xf32>, vector<8x96xf32> -> vector<8x96xf32>
    %54 = arith.addf %53, %13 : vector<8x96xf32>
    %55 = vector.extract_strided_slice %52 {offsets = [0, 0], sizes = [8, 32], strides = [1, 1]} : vector<8x96xf32> to vector<8x32xf32>
    %56 = vector.extract_strided_slice %54 {offsets = [0, 0], sizes = [8, 32], strides = [1, 1]} : vector<8x96xf32> to vector<8x32xf32>
    %57 = arith.addf %55, %56 : vector<8x32xf32>
    %58 = arith.negf %57 : vector<8x32xf32>
    %59 = math.exp %58 : vector<8x32xf32>
    %cst_22 = arith.constant 1.000000e+00 : f32
    %60 = vector.broadcast %cst_22 : f32 to vector<8x32xf32>
    %61 = arith.addf %60, %59 : vector<8x32xf32>
    %62 = arith.divf %60, %61 : vector<8x32xf32>
    %63 = vector.extract_strided_slice %52 {offsets = [0, 32], sizes = [8, 32], strides = [1, 1]} : vector<8x96xf32> to vector<8x32xf32>
    %64 = vector.extract_strided_slice %54 {offsets = [0, 32], sizes = [8, 32], strides = [1, 1]} : vector<8x96xf32> to vector<8x32xf32>
    %65 = arith.addf %63, %64 : vector<8x32xf32>
    %66 = arith.negf %65 : vector<8x32xf32>
    %67 = math.exp %66 : vector<8x32xf32>
    %cst_23 = arith.constant 1.000000e+00 : f32
    %68 = vector.broadcast %cst_23 : f32 to vector<8x32xf32>
    %69 = arith.addf %68, %67 : vector<8x32xf32>
    %70 = arith.divf %68, %69 : vector<8x32xf32>
    %71 = vector.extract_strided_slice %52 {offsets = [0, 64], sizes = [8, 32], strides = [1, 1]} : vector<8x96xf32> to vector<8x32xf32>
    %72 = vector.extract_strided_slice %54 {offsets = [0, 64], sizes = [8, 32], strides = [1, 1]} : vector<8x96xf32> to vector<8x32xf32>
    %73 = arith.mulf %62, %72 : vector<8x32xf32>
    %74 = arith.addf %71, %73 : vector<8x32xf32>
    %75 = math.tanh %74 : vector<8x32xf32>
    %cst_24 = arith.constant 1.000000e+00 : f32
    %76 = vector.broadcast %cst_24 : f32 to vector<8x32xf32>
    %77 = arith.subf %76, %70 : vector<8x32xf32>
    %78 = arith.mulf %77, %75 : vector<8x32xf32>
    %79 = arith.mulf %70, %50 : vector<8x32xf32>
    %80 = arith.addf %78, %79 : vector<8x32xf32>
    %c2 = arith.constant 2 : index
    %c0_25 = arith.constant 0 : index
    %c0_26 = arith.constant 0 : index
    %81 = vector.load %arg1[%c2, %c0_25, %c0_26] : memref<8x8x96xf32, #tpu.memory_space<vmem>>, vector<1x8x96xf32>
    %82 = vector.shape_cast %81 : vector<1x8x96xf32> to vector<8x96xf32>
    %cst_27 = arith.constant dense<0.000000e+00> : vector<8x96xf32>
    %83 = tpu.matmul %80, %1, %cst_27 {dimension_numbers = #tpu.dot_dimension_numbers<[1], [0], [0], [1], [0, 0, 1, 1], [], []>} : vector<8x32xf32>, vector<32x96xf32>, vector<8x96xf32> -> vector<8x96xf32>
    %84 = arith.addf %83, %13 : vector<8x96xf32>
    %85 = vector.extract_strided_slice %82 {offsets = [0, 0], sizes = [8, 32], strides = [1, 1]} : vector<8x96xf32> to vector<8x32xf32>
    %86 = vector.extract_strided_slice %84 {offsets = [0, 0], sizes = [8, 32], strides = [1, 1]} : vector<8x96xf32> to vector<8x32xf32>
    %87 = arith.addf %85, %86 : vector<8x32xf32>
    %88 = arith.negf %87 : vector<8x32xf32>
    %89 = math.exp %88 : vector<8x32xf32>
    %cst_28 = arith.constant 1.000000e+00 : f32
    %90 = vector.broadcast %cst_28 : f32 to vector<8x32xf32>
    %91 = arith.addf %90, %89 : vector<8x32xf32>
    %92 = arith.divf %90, %91 : vector<8x32xf32>
    %93 = vector.extract_strided_slice %82 {offsets = [0, 32], sizes = [8, 32], strides = [1, 1]} : vector<8x96xf32> to vector<8x32xf32>
    %94 = vector.extract_strided_slice %84 {offsets = [0, 32], sizes = [8, 32], strides = [1, 1]} : vector<8x96xf32> to vector<8x32xf32>
    %95 = arith.addf %93, %94 : vector<8x32xf32>
    %96 = arith.negf %95 : vector<8x32xf32>
    %97 = math.exp %96 : vector<8x32xf32>
    %cst_29 = arith.constant 1.000000e+00 : f32
    %98 = vector.broadcast %cst_29 : f32 to vector<8x32xf32>
    %99 = arith.addf %98, %97 : vector<8x32xf32>
    %100 = arith.divf %98, %99 : vector<8x32xf32>
    %101 = vector.extract_strided_slice %82 {offsets = [0, 64], sizes = [8, 32], strides = [1, 1]} : vector<8x96xf32> to vector<8x32xf32>
    %102 = vector.extract_strided_slice %84 {offsets = [0, 64], sizes = [8, 32], strides = [1, 1]} : vector<8x96xf32> to vector<8x32xf32>
    %103 = arith.mulf %92, %102 : vector<8x32xf32>
    %104 = arith.addf %101, %103 : vector<8x32xf32>
    %105 = math.tanh %104 : vector<8x32xf32>
    %cst_30 = arith.constant 1.000000e+00 : f32
    %106 = vector.broadcast %cst_30 : f32 to vector<8x32xf32>
    %107 = arith.subf %106, %100 : vector<8x32xf32>
    %108 = arith.mulf %107, %105 : vector<8x32xf32>
    %109 = arith.mulf %100, %80 : vector<8x32xf32>
    %110 = arith.addf %108, %109 : vector<8x32xf32>
    %c3 = arith.constant 3 : index
    %c0_31 = arith.constant 0 : index
    %c0_32 = arith.constant 0 : index
    %111 = vector.load %arg1[%c3, %c0_31, %c0_32] : memref<8x8x96xf32, #tpu.memory_space<vmem>>, vector<1x8x96xf32>
    %112 = vector.shape_cast %111 : vector<1x8x96xf32> to vector<8x96xf32>
    %cst_33 = arith.constant dense<0.000000e+00> : vector<8x96xf32>
    %113 = tpu.matmul %110, %1, %cst_33 {dimension_numbers = #tpu.dot_dimension_numbers<[1], [0], [0], [1], [0, 0, 1, 1], [], []>} : vector<8x32xf32>, vector<32x96xf32>, vector<8x96xf32> -> vector<8x96xf32>
    %114 = arith.addf %113, %13 : vector<8x96xf32>
    %115 = vector.extract_strided_slice %112 {offsets = [0, 0], sizes = [8, 32], strides = [1, 1]} : vector<8x96xf32> to vector<8x32xf32>
    %116 = vector.extract_strided_slice %114 {offsets = [0, 0], sizes = [8, 32], strides = [1, 1]} : vector<8x96xf32> to vector<8x32xf32>
    %117 = arith.addf %115, %116 : vector<8x32xf32>
    %118 = arith.negf %117 : vector<8x32xf32>
    %119 = math.exp %118 : vector<8x32xf32>
    %cst_34 = arith.constant 1.000000e+00 : f32
    %120 = vector.broadcast %cst_34 : f32 to vector<8x32xf32>
    %121 = arith.addf %120, %119 : vector<8x32xf32>
    %122 = arith.divf %120, %121 : vector<8x32xf32>
    %123 = vector.extract_strided_slice %112 {offsets = [0, 32], sizes = [8, 32], strides = [1, 1]} : vector<8x96xf32> to vector<8x32xf32>
    %124 = vector.extract_strided_slice %114 {offsets = [0, 32], sizes = [8, 32], strides = [1, 1]} : vector<8x96xf32> to vector<8x32xf32>
    %125 = arith.addf %123, %124 : vector<8x32xf32>
    %126 = arith.negf %125 : vector<8x32xf32>
    %127 = math.exp %126 : vector<8x32xf32>
    %cst_35 = arith.constant 1.000000e+00 : f32
    %128 = vector.broadcast %cst_35 : f32 to vector<8x32xf32>
    %129 = arith.addf %128, %127 : vector<8x32xf32>
    %130 = arith.divf %128, %129 : vector<8x32xf32>
    %131 = vector.extract_strided_slice %112 {offsets = [0, 64], sizes = [8, 32], strides = [1, 1]} : vector<8x96xf32> to vector<8x32xf32>
    %132 = vector.extract_strided_slice %114 {offsets = [0, 64], sizes = [8, 32], strides = [1, 1]} : vector<8x96xf32> to vector<8x32xf32>
    %133 = arith.mulf %122, %132 : vector<8x32xf32>
    %134 = arith.addf %131, %133 : vector<8x32xf32>
    %135 = math.tanh %134 : vector<8x32xf32>
    %cst_36 = arith.constant 1.000000e+00 : f32
    %136 = vector.broadcast %cst_36 : f32 to vector<8x32xf32>
    %137 = arith.subf %136, %130 : vector<8x32xf32>
    %138 = arith.mulf %137, %135 : vector<8x32xf32>
    %139 = arith.mulf %130, %110 : vector<8x32xf32>
    %140 = arith.addf %138, %139 : vector<8x32xf32>
    %c4 = arith.constant 4 : index
    %c0_37 = arith.constant 0 : index
    %c0_38 = arith.constant 0 : index
    %141 = vector.load %arg1[%c4, %c0_37, %c0_38] : memref<8x8x96xf32, #tpu.memory_space<vmem>>, vector<1x8x96xf32>
    %142 = vector.shape_cast %141 : vector<1x8x96xf32> to vector<8x96xf32>
    %cst_39 = arith.constant dense<0.000000e+00> : vector<8x96xf32>
    %143 = tpu.matmul %140, %1, %cst_39 {dimension_numbers = #tpu.dot_dimension_numbers<[1], [0], [0], [1], [0, 0, 1, 1], [], []>} : vector<8x32xf32>, vector<32x96xf32>, vector<8x96xf32> -> vector<8x96xf32>
    %144 = arith.addf %143, %13 : vector<8x96xf32>
    %145 = vector.extract_strided_slice %142 {offsets = [0, 0], sizes = [8, 32], strides = [1, 1]} : vector<8x96xf32> to vector<8x32xf32>
    %146 = vector.extract_strided_slice %144 {offsets = [0, 0], sizes = [8, 32], strides = [1, 1]} : vector<8x96xf32> to vector<8x32xf32>
    %147 = arith.addf %145, %146 : vector<8x32xf32>
    %148 = arith.negf %147 : vector<8x32xf32>
    %149 = math.exp %148 : vector<8x32xf32>
    %cst_40 = arith.constant 1.000000e+00 : f32
    %150 = vector.broadcast %cst_40 : f32 to vector<8x32xf32>
    %151 = arith.addf %150, %149 : vector<8x32xf32>
    %152 = arith.divf %150, %151 : vector<8x32xf32>
    %153 = vector.extract_strided_slice %142 {offsets = [0, 32], sizes = [8, 32], strides = [1, 1]} : vector<8x96xf32> to vector<8x32xf32>
    %154 = vector.extract_strided_slice %144 {offsets = [0, 32], sizes = [8, 32], strides = [1, 1]} : vector<8x96xf32> to vector<8x32xf32>
    %155 = arith.addf %153, %154 : vector<8x32xf32>
    %156 = arith.negf %155 : vector<8x32xf32>
    %157 = math.exp %156 : vector<8x32xf32>
    %cst_41 = arith.constant 1.000000e+00 : f32
    %158 = vector.broadcast %cst_41 : f32 to vector<8x32xf32>
    %159 = arith.addf %158, %157 : vector<8x32xf32>
    %160 = arith.divf %158, %159 : vector<8x32xf32>
    %161 = vector.extract_strided_slice %142 {offsets = [0, 64], sizes = [8, 32], strides = [1, 1]} : vector<8x96xf32> to vector<8x32xf32>
    %162 = vector.extract_strided_slice %144 {offsets = [0, 64], sizes = [8, 32], strides = [1, 1]} : vector<8x96xf32> to vector<8x32xf32>
    %163 = arith.mulf %152, %162 : vector<8x32xf32>
    %164 = arith.addf %161, %163 : vector<8x32xf32>
    %165 = math.tanh %164 : vector<8x32xf32>
    %cst_42 = arith.constant 1.000000e+00 : f32
    %166 = vector.broadcast %cst_42 : f32 to vector<8x32xf32>
    %167 = arith.subf %166, %160 : vector<8x32xf32>
    %168 = arith.mulf %167, %165 : vector<8x32xf32>
    %169 = arith.mulf %160, %140 : vector<8x32xf32>
    %170 = arith.addf %168, %169 : vector<8x32xf32>
    %c5 = arith.constant 5 : index
    %c0_43 = arith.constant 0 : index
    %c0_44 = arith.constant 0 : index
    %171 = vector.load %arg1[%c5, %c0_43, %c0_44] : memref<8x8x96xf32, #tpu.memory_space<vmem>>, vector<1x8x96xf32>
    %172 = vector.shape_cast %171 : vector<1x8x96xf32> to vector<8x96xf32>
    %cst_45 = arith.constant dense<0.000000e+00> : vector<8x96xf32>
    %173 = tpu.matmul %170, %1, %cst_45 {dimension_numbers = #tpu.dot_dimension_numbers<[1], [0], [0], [1], [0, 0, 1, 1], [], []>} : vector<8x32xf32>, vector<32x96xf32>, vector<8x96xf32> -> vector<8x96xf32>
    %174 = arith.addf %173, %13 : vector<8x96xf32>
    %175 = vector.extract_strided_slice %172 {offsets = [0, 0], sizes = [8, 32], strides = [1, 1]} : vector<8x96xf32> to vector<8x32xf32>
    %176 = vector.extract_strided_slice %174 {offsets = [0, 0], sizes = [8, 32], strides = [1, 1]} : vector<8x96xf32> to vector<8x32xf32>
    %177 = arith.addf %175, %176 : vector<8x32xf32>
    %178 = arith.negf %177 : vector<8x32xf32>
    %179 = math.exp %178 : vector<8x32xf32>
    %cst_46 = arith.constant 1.000000e+00 : f32
    %180 = vector.broadcast %cst_46 : f32 to vector<8x32xf32>
    %181 = arith.addf %180, %179 : vector<8x32xf32>
    %182 = arith.divf %180, %181 : vector<8x32xf32>
    %183 = vector.extract_strided_slice %172 {offsets = [0, 32], sizes = [8, 32], strides = [1, 1]} : vector<8x96xf32> to vector<8x32xf32>
    %184 = vector.extract_strided_slice %174 {offsets = [0, 32], sizes = [8, 32], strides = [1, 1]} : vector<8x96xf32> to vector<8x32xf32>
    %185 = arith.addf %183, %184 : vector<8x32xf32>
    %186 = arith.negf %185 : vector<8x32xf32>
    %187 = math.exp %186 : vector<8x32xf32>
    %cst_47 = arith.constant 1.000000e+00 : f32
    %188 = vector.broadcast %cst_47 : f32 to vector<8x32xf32>
    %189 = arith.addf %188, %187 : vector<8x32xf32>
    %190 = arith.divf %188, %189 : vector<8x32xf32>
    %191 = vector.extract_strided_slice %172 {offsets = [0, 64], sizes = [8, 32], strides = [1, 1]} : vector<8x96xf32> to vector<8x32xf32>
    %192 = vector.extract_strided_slice %174 {offsets = [0, 64], sizes = [8, 32], strides = [1, 1]} : vector<8x96xf32> to vector<8x32xf32>
    %193 = arith.mulf %182, %192 : vector<8x32xf32>
    %194 = arith.addf %191, %193 : vector<8x32xf32>
    %195 = math.tanh %194 : vector<8x32xf32>
    %cst_48 = arith.constant 1.000000e+00 : f32
    %196 = vector.broadcast %cst_48 : f32 to vector<8x32xf32>
    %197 = arith.subf %196, %190 : vector<8x32xf32>
    %198 = arith.mulf %197, %195 : vector<8x32xf32>
    %199 = arith.mulf %190, %170 : vector<8x32xf32>
    %200 = arith.addf %198, %199 : vector<8x32xf32>
    %c6 = arith.constant 6 : index
    %c0_49 = arith.constant 0 : index
    %c0_50 = arith.constant 0 : index
    %201 = vector.load %arg1[%c6, %c0_49, %c0_50] : memref<8x8x96xf32, #tpu.memory_space<vmem>>, vector<1x8x96xf32>
    %202 = vector.shape_cast %201 : vector<1x8x96xf32> to vector<8x96xf32>
    %cst_51 = arith.constant dense<0.000000e+00> : vector<8x96xf32>
    %203 = tpu.matmul %200, %1, %cst_51 {dimension_numbers = #tpu.dot_dimension_numbers<[1], [0], [0], [1], [0, 0, 1, 1], [], []>} : vector<8x32xf32>, vector<32x96xf32>, vector<8x96xf32> -> vector<8x96xf32>
    %204 = arith.addf %203, %13 : vector<8x96xf32>
    %205 = vector.extract_strided_slice %202 {offsets = [0, 0], sizes = [8, 32], strides = [1, 1]} : vector<8x96xf32> to vector<8x32xf32>
    %206 = vector.extract_strided_slice %204 {offsets = [0, 0], sizes = [8, 32], strides = [1, 1]} : vector<8x96xf32> to vector<8x32xf32>
    %207 = arith.addf %205, %206 : vector<8x32xf32>
    %208 = arith.negf %207 : vector<8x32xf32>
    %209 = math.exp %208 : vector<8x32xf32>
    %cst_52 = arith.constant 1.000000e+00 : f32
    %210 = vector.broadcast %cst_52 : f32 to vector<8x32xf32>
    %211 = arith.addf %210, %209 : vector<8x32xf32>
    %212 = arith.divf %210, %211 : vector<8x32xf32>
    %213 = vector.extract_strided_slice %202 {offsets = [0, 32], sizes = [8, 32], strides = [1, 1]} : vector<8x96xf32> to vector<8x32xf32>
    %214 = vector.extract_strided_slice %204 {offsets = [0, 32], sizes = [8, 32], strides = [1, 1]} : vector<8x96xf32> to vector<8x32xf32>
    %215 = arith.addf %213, %214 : vector<8x32xf32>
    %216 = arith.negf %215 : vector<8x32xf32>
    %217 = math.exp %216 : vector<8x32xf32>
    %cst_53 = arith.constant 1.000000e+00 : f32
    %218 = vector.broadcast %cst_53 : f32 to vector<8x32xf32>
    %219 = arith.addf %218, %217 : vector<8x32xf32>
    %220 = arith.divf %218, %219 : vector<8x32xf32>
    %221 = vector.extract_strided_slice %202 {offsets = [0, 64], sizes = [8, 32], strides = [1, 1]} : vector<8x96xf32> to vector<8x32xf32>
    %222 = vector.extract_strided_slice %204 {offsets = [0, 64], sizes = [8, 32], strides = [1, 1]} : vector<8x96xf32> to vector<8x32xf32>
    %223 = arith.mulf %212, %222 : vector<8x32xf32>
    %224 = arith.addf %221, %223 : vector<8x32xf32>
    %225 = math.tanh %224 : vector<8x32xf32>
    %cst_54 = arith.constant 1.000000e+00 : f32
    %226 = vector.broadcast %cst_54 : f32 to vector<8x32xf32>
    %227 = arith.subf %226, %220 : vector<8x32xf32>
    %228 = arith.mulf %227, %225 : vector<8x32xf32>
    %229 = arith.mulf %220, %200 : vector<8x32xf32>
    %230 = arith.addf %228, %229 : vector<8x32xf32>
    %c7 = arith.constant 7 : index
    %c0_55 = arith.constant 0 : index
    %c0_56 = arith.constant 0 : index
    %231 = vector.load %arg1[%c7, %c0_55, %c0_56] : memref<8x8x96xf32, #tpu.memory_space<vmem>>, vector<1x8x96xf32>
    %232 = vector.shape_cast %231 : vector<1x8x96xf32> to vector<8x96xf32>
    %cst_57 = arith.constant dense<0.000000e+00> : vector<8x96xf32>
    %233 = tpu.matmul %230, %1, %cst_57 {dimension_numbers = #tpu.dot_dimension_numbers<[1], [0], [0], [1], [0, 0, 1, 1], [], []>} : vector<8x32xf32>, vector<32x96xf32>, vector<8x96xf32> -> vector<8x96xf32>
    %234 = arith.addf %233, %13 : vector<8x96xf32>
    %235 = vector.extract_strided_slice %232 {offsets = [0, 0], sizes = [8, 32], strides = [1, 1]} : vector<8x96xf32> to vector<8x32xf32>
    %236 = vector.extract_strided_slice %234 {offsets = [0, 0], sizes = [8, 32], strides = [1, 1]} : vector<8x96xf32> to vector<8x32xf32>
    %237 = arith.addf %235, %236 : vector<8x32xf32>
    %238 = arith.negf %237 : vector<8x32xf32>
    %239 = math.exp %238 : vector<8x32xf32>
    %cst_58 = arith.constant 1.000000e+00 : f32
    %240 = vector.broadcast %cst_58 : f32 to vector<8x32xf32>
    %241 = arith.addf %240, %239 : vector<8x32xf32>
    %242 = arith.divf %240, %241 : vector<8x32xf32>
    %243 = vector.extract_strided_slice %232 {offsets = [0, 32], sizes = [8, 32], strides = [1, 1]} : vector<8x96xf32> to vector<8x32xf32>
    %244 = vector.extract_strided_slice %234 {offsets = [0, 32], sizes = [8, 32], strides = [1, 1]} : vector<8x96xf32> to vector<8x32xf32>
    %245 = arith.addf %243, %244 : vector<8x32xf32>
    %246 = arith.negf %245 : vector<8x32xf32>
    %247 = math.exp %246 : vector<8x32xf32>
    %cst_59 = arith.constant 1.000000e+00 : f32
    %248 = vector.broadcast %cst_59 : f32 to vector<8x32xf32>
    %249 = arith.addf %248, %247 : vector<8x32xf32>
    %250 = arith.divf %248, %249 : vector<8x32xf32>
    %251 = vector.extract_strided_slice %232 {offsets = [0, 64], sizes = [8, 32], strides = [1, 1]} : vector<8x96xf32> to vector<8x32xf32>
    %252 = vector.extract_strided_slice %234 {offsets = [0, 64], sizes = [8, 32], strides = [1, 1]} : vector<8x96xf32> to vector<8x32xf32>
    %253 = arith.mulf %242, %252 : vector<8x32xf32>
    %254 = arith.addf %251, %253 : vector<8x32xf32>
    %255 = math.tanh %254 : vector<8x32xf32>
    %cst_60 = arith.constant 1.000000e+00 : f32
    %256 = vector.broadcast %cst_60 : f32 to vector<8x32xf32>
    %257 = arith.subf %256, %250 : vector<8x32xf32>
    %258 = arith.mulf %257, %255 : vector<8x32xf32>
    %259 = arith.mulf %250, %230 : vector<8x32xf32>
    %260 = arith.addf %258, %259 : vector<8x32xf32>
    %cst_61 = arith.constant dense<0.000000e+00> : vector<8x64xf32>
    %261 = tpu.matmul %260, %4, %cst_61 {dimension_numbers = #tpu.dot_dimension_numbers<[1], [0], [0], [1], [0, 0, 1, 1], [], []>} : vector<8x32xf32>, vector<32x64xf32>, vector<8x64xf32> -> vector<8x64xf32>
    %262 = arith.addf %261, %15 : vector<8x64xf32>
    %cst_62 = arith.constant 0.000000e+00 : f32
    %263 = vector.broadcast %cst_62 : f32 to vector<8x64xf32>
    %264 = arith.cmpf oge, %262, %263 : vector<8x64xf32>
    %cst_63 = arith.constant 0.00999999977 : f32
    %265 = vector.broadcast %cst_63 : f32 to vector<8x64xf32>
    %266 = arith.mulf %265, %262 : vector<8x64xf32>
    %267 = arith.select %264, %262, %266 : vector<8x64xi1>, vector<8x64xf32>
    %cst_64 = arith.constant dense<0.000000e+00> : vector<8x64xf32>
    %268 = tpu.matmul %267, %6, %cst_64 {dimension_numbers = #tpu.dot_dimension_numbers<[1], [0], [0], [1], [0, 0, 1, 1], [], []>} : vector<8x64xf32>, vector<64x64xf32>, vector<8x64xf32> -> vector<8x64xf32>
    %269 = arith.addf %268, %17 : vector<8x64xf32>
    %cst_65 = arith.constant 0.000000e+00 : f32
    %270 = vector.broadcast %cst_65 : f32 to vector<8x64xf32>
    %271 = arith.cmpf oge, %269, %270 : vector<8x64xf32>
    %cst_66 = arith.constant 0.00999999977 : f32
    %272 = vector.broadcast %cst_66 : f32 to vector<8x64xf32>
    %273 = arith.mulf %272, %269 : vector<8x64xf32>
    %274 = arith.select %271, %269, %273 : vector<8x64xi1>, vector<8x64xf32>
    %cst_67 = arith.constant dense<0.000000e+00> : vector<8x64xf32>
    %275 = tpu.matmul %274, %8, %cst_67 {dimension_numbers = #tpu.dot_dimension_numbers<[1], [0], [0], [1], [0, 0, 1, 1], [], []>} : vector<8x64xf32>, vector<64x64xf32>, vector<8x64xf32> -> vector<8x64xf32>
    %276 = arith.addf %275, %19 : vector<8x64xf32>
    %277 = vector.extract_strided_slice %276 {offsets = [0, 0], sizes = [8, 2], strides = [1, 1]} : vector<8x64xf32> to vector<8x2xf32>
    %cst_68 = arith.constant 3.14159274 : f32
    %278 = vector.broadcast %cst_68 : f32 to vector<8x2xf32>
    %279 = arith.mulf %278, %277 : vector<8x2xf32>
    %280 = math.sin %279 : vector<8x2xf32>
    %cst_69 = arith.constant 3.14159274 : f32
    %281 = vector.broadcast %cst_69 : f32 to vector<8x2xf32>
    %282 = arith.mulf %281, %277 : vector<8x2xf32>
    %283 = math.cos %282 : vector<8x2xf32>
    %cst_70 = arith.constant 6.28318548 : f32
    %284 = vector.broadcast %cst_70 : f32 to vector<8x2xf32>
    %285 = arith.mulf %284, %277 : vector<8x2xf32>
    %286 = math.sin %285 : vector<8x2xf32>
    %cst_71 = arith.constant 6.28318548 : f32
    %287 = vector.broadcast %cst_71 : f32 to vector<8x2xf32>
    %288 = arith.mulf %287, %277 : vector<8x2xf32>
    %289 = math.cos %288 : vector<8x2xf32>
    %290 = tpu.concatenate %280, %283, %286, %289 in 1 : vector<8x2xf32>, vector<8x2xf32>, vector<8x2xf32>, vector<8x2xf32> -> vector<8x8xf32>
    %cst_72 = arith.constant dense<0.000000e+00> : vector<8x96xf32>
    %291 = tpu.matmul %290, %0, %cst_72 {dimension_numbers = #tpu.dot_dimension_numbers<[1], [0], [0], [1], [0, 0, 1, 1], [], []>} : vector<8x8xf32>, vector<8x96xf32>, vector<8x96xf32> -> vector<8x96xf32>
    %292 = arith.addf %291, %11 : vector<8x96xf32>
    %cst_73 = arith.constant dense<0.000000e+00> : vector<8x96xf32>
    %293 = tpu.matmul %260, %1, %cst_73 {dimension_numbers = #tpu.dot_dimension_numbers<[1], [0], [0], [1], [0, 0, 1, 1], [], []>} : vector<8x32xf32>, vector<32x96xf32>, vector<8x96xf32> -> vector<8x96xf32>
    %294 = arith.addf %293, %13 : vector<8x96xf32>
    %295 = vector.extract_strided_slice %292 {offsets = [0, 0], sizes = [8, 32], strides = [1, 1]} : vector<8x96xf32> to vector<8x32xf32>
    %296 = vector.extract_strided_slice %294 {offsets = [0, 0], sizes = [8, 32], strides = [1, 1]} : vector<8x96xf32> to vector<8x32xf32>
    %297 = arith.addf %295, %296 : vector<8x32xf32>
    %298 = arith.negf %297 : vector<8x32xf32>
    %299 = math.exp %298 : vector<8x32xf32>
    %cst_74 = arith.constant 1.000000e+00 : f32
    %300 = vector.broadcast %cst_74 : f32 to vector<8x32xf32>
    %301 = arith.addf %300, %299 : vector<8x32xf32>
    %302 = arith.divf %300, %301 : vector<8x32xf32>
    %303 = vector.extract_strided_slice %292 {offsets = [0, 32], sizes = [8, 32], strides = [1, 1]} : vector<8x96xf32> to vector<8x32xf32>
    %304 = vector.extract_strided_slice %294 {offsets = [0, 32], sizes = [8, 32], strides = [1, 1]} : vector<8x96xf32> to vector<8x32xf32>
    %305 = arith.addf %303, %304 : vector<8x32xf32>
    %306 = arith.negf %305 : vector<8x32xf32>
    %307 = math.exp %306 : vector<8x32xf32>
    %cst_75 = arith.constant 1.000000e+00 : f32
    %308 = vector.broadcast %cst_75 : f32 to vector<8x32xf32>
    %309 = arith.addf %308, %307 : vector<8x32xf32>
    %310 = arith.divf %308, %309 : vector<8x32xf32>
    %311 = vector.extract_strided_slice %292 {offsets = [0, 64], sizes = [8, 32], strides = [1, 1]} : vector<8x96xf32> to vector<8x32xf32>
    %312 = vector.extract_strided_slice %294 {offsets = [0, 64], sizes = [8, 32], strides = [1, 1]} : vector<8x96xf32> to vector<8x32xf32>
    %313 = arith.mulf %302, %312 : vector<8x32xf32>
    %314 = arith.addf %311, %313 : vector<8x32xf32>
    %315 = math.tanh %314 : vector<8x32xf32>
    %cst_76 = arith.constant 1.000000e+00 : f32
    %316 = vector.broadcast %cst_76 : f32 to vector<8x32xf32>
    %317 = arith.subf %316, %310 : vector<8x32xf32>
    %318 = arith.mulf %317, %315 : vector<8x32xf32>
    %319 = arith.mulf %310, %260 : vector<8x32xf32>
    %320 = arith.addf %318, %319 : vector<8x32xf32>
    %cst_77 = arith.constant dense<0.000000e+00> : vector<8x64xf32>
    %321 = tpu.matmul %320, %4, %cst_77 {dimension_numbers = #tpu.dot_dimension_numbers<[1], [0], [0], [1], [0, 0, 1, 1], [], []>} : vector<8x32xf32>, vector<32x64xf32>, vector<8x64xf32> -> vector<8x64xf32>
    %322 = arith.addf %321, %15 : vector<8x64xf32>
    %cst_78 = arith.constant 0.000000e+00 : f32
    %323 = vector.broadcast %cst_78 : f32 to vector<8x64xf32>
    %324 = arith.cmpf oge, %322, %323 : vector<8x64xf32>
    %cst_79 = arith.constant 0.00999999977 : f32
    %325 = vector.broadcast %cst_79 : f32 to vector<8x64xf32>
    %326 = arith.mulf %325, %322 : vector<8x64xf32>
    %327 = arith.select %324, %322, %326 : vector<8x64xi1>, vector<8x64xf32>
    %cst_80 = arith.constant dense<0.000000e+00> : vector<8x64xf32>
    %328 = tpu.matmul %327, %6, %cst_80 {dimension_numbers = #tpu.dot_dimension_numbers<[1], [0], [0], [1], [0, 0, 1, 1], [], []>} : vector<8x64xf32>, vector<64x64xf32>, vector<8x64xf32> -> vector<8x64xf32>
    %329 = arith.addf %328, %17 : vector<8x64xf32>
    %cst_81 = arith.constant 0.000000e+00 : f32
    %330 = vector.broadcast %cst_81 : f32 to vector<8x64xf32>
    %331 = arith.cmpf oge, %329, %330 : vector<8x64xf32>
    %cst_82 = arith.constant 0.00999999977 : f32
    %332 = vector.broadcast %cst_82 : f32 to vector<8x64xf32>
    %333 = arith.mulf %332, %329 : vector<8x64xf32>
    %334 = arith.select %331, %329, %333 : vector<8x64xi1>, vector<8x64xf32>
    %cst_83 = arith.constant dense<0.000000e+00> : vector<8x64xf32>
    %335 = tpu.matmul %334, %8, %cst_83 {dimension_numbers = #tpu.dot_dimension_numbers<[1], [0], [0], [1], [0, 0, 1, 1], [], []>} : vector<8x64xf32>, vector<64x64xf32>, vector<8x64xf32> -> vector<8x64xf32>
    %336 = arith.addf %335, %19 : vector<8x64xf32>
    %337 = vector.extract_strided_slice %336 {offsets = [0, 0], sizes = [8, 2], strides = [1, 1]} : vector<8x64xf32> to vector<8x2xf32>
    %cst_84 = arith.constant 3.14159274 : f32
    %338 = vector.broadcast %cst_84 : f32 to vector<8x2xf32>
    %339 = arith.mulf %338, %337 : vector<8x2xf32>
    %340 = math.sin %339 : vector<8x2xf32>
    %cst_85 = arith.constant 3.14159274 : f32
    %341 = vector.broadcast %cst_85 : f32 to vector<8x2xf32>
    %342 = arith.mulf %341, %337 : vector<8x2xf32>
    %343 = math.cos %342 : vector<8x2xf32>
    %cst_86 = arith.constant 6.28318548 : f32
    %344 = vector.broadcast %cst_86 : f32 to vector<8x2xf32>
    %345 = arith.mulf %344, %337 : vector<8x2xf32>
    %346 = math.sin %345 : vector<8x2xf32>
    %cst_87 = arith.constant 6.28318548 : f32
    %347 = vector.broadcast %cst_87 : f32 to vector<8x2xf32>
    %348 = arith.mulf %347, %337 : vector<8x2xf32>
    %349 = math.cos %348 : vector<8x2xf32>
    %350 = tpu.concatenate %340, %343, %346, %349 in 1 : vector<8x2xf32>, vector<8x2xf32>, vector<8x2xf32>, vector<8x2xf32> -> vector<8x8xf32>
    %cst_88 = arith.constant dense<0.000000e+00> : vector<8x96xf32>
    %351 = tpu.matmul %350, %0, %cst_88 {dimension_numbers = #tpu.dot_dimension_numbers<[1], [0], [0], [1], [0, 0, 1, 1], [], []>} : vector<8x8xf32>, vector<8x96xf32>, vector<8x96xf32> -> vector<8x96xf32>
    %352 = arith.addf %351, %11 : vector<8x96xf32>
    %cst_89 = arith.constant dense<0.000000e+00> : vector<8x96xf32>
    %353 = tpu.matmul %320, %1, %cst_89 {dimension_numbers = #tpu.dot_dimension_numbers<[1], [0], [0], [1], [0, 0, 1, 1], [], []>} : vector<8x32xf32>, vector<32x96xf32>, vector<8x96xf32> -> vector<8x96xf32>
    %354 = arith.addf %353, %13 : vector<8x96xf32>
    %355 = vector.extract_strided_slice %352 {offsets = [0, 0], sizes = [8, 32], strides = [1, 1]} : vector<8x96xf32> to vector<8x32xf32>
    %356 = vector.extract_strided_slice %354 {offsets = [0, 0], sizes = [8, 32], strides = [1, 1]} : vector<8x96xf32> to vector<8x32xf32>
    %357 = arith.addf %355, %356 : vector<8x32xf32>
    %358 = arith.negf %357 : vector<8x32xf32>
    %359 = math.exp %358 : vector<8x32xf32>
    %cst_90 = arith.constant 1.000000e+00 : f32
    %360 = vector.broadcast %cst_90 : f32 to vector<8x32xf32>
    %361 = arith.addf %360, %359 : vector<8x32xf32>
    %362 = arith.divf %360, %361 : vector<8x32xf32>
    %363 = vector.extract_strided_slice %352 {offsets = [0, 32], sizes = [8, 32], strides = [1, 1]} : vector<8x96xf32> to vector<8x32xf32>
    %364 = vector.extract_strided_slice %354 {offsets = [0, 32], sizes = [8, 32], strides = [1, 1]} : vector<8x96xf32> to vector<8x32xf32>
    %365 = arith.addf %363, %364 : vector<8x32xf32>
    %366 = arith.negf %365 : vector<8x32xf32>
    %367 = math.exp %366 : vector<8x32xf32>
    %cst_91 = arith.constant 1.000000e+00 : f32
    %368 = vector.broadcast %cst_91 : f32 to vector<8x32xf32>
    %369 = arith.addf %368, %367 : vector<8x32xf32>
    %370 = arith.divf %368, %369 : vector<8x32xf32>
    %371 = vector.extract_strided_slice %352 {offsets = [0, 64], sizes = [8, 32], strides = [1, 1]} : vector<8x96xf32> to vector<8x32xf32>
    %372 = vector.extract_strided_slice %354 {offsets = [0, 64], sizes = [8, 32], strides = [1, 1]} : vector<8x96xf32> to vector<8x32xf32>
    %373 = arith.mulf %362, %372 : vector<8x32xf32>
    %374 = arith.addf %371, %373 : vector<8x32xf32>
    %375 = math.tanh %374 : vector<8x32xf32>
    %cst_92 = arith.constant 1.000000e+00 : f32
    %376 = vector.broadcast %cst_92 : f32 to vector<8x32xf32>
    %377 = arith.subf %376, %370 : vector<8x32xf32>
    %378 = arith.mulf %377, %375 : vector<8x32xf32>
    %379 = arith.mulf %370, %320 : vector<8x32xf32>
    %380 = arith.addf %378, %379 : vector<8x32xf32>
    %cst_93 = arith.constant dense<0.000000e+00> : vector<8x64xf32>
    %381 = tpu.matmul %380, %4, %cst_93 {dimension_numbers = #tpu.dot_dimension_numbers<[1], [0], [0], [1], [0, 0, 1, 1], [], []>} : vector<8x32xf32>, vector<32x64xf32>, vector<8x64xf32> -> vector<8x64xf32>
    %382 = arith.addf %381, %15 : vector<8x64xf32>
    %cst_94 = arith.constant 0.000000e+00 : f32
    %383 = vector.broadcast %cst_94 : f32 to vector<8x64xf32>
    %384 = arith.cmpf oge, %382, %383 : vector<8x64xf32>
    %cst_95 = arith.constant 0.00999999977 : f32
    %385 = vector.broadcast %cst_95 : f32 to vector<8x64xf32>
    %386 = arith.mulf %385, %382 : vector<8x64xf32>
    %387 = arith.select %384, %382, %386 : vector<8x64xi1>, vector<8x64xf32>
    %cst_96 = arith.constant dense<0.000000e+00> : vector<8x64xf32>
    %388 = tpu.matmul %387, %6, %cst_96 {dimension_numbers = #tpu.dot_dimension_numbers<[1], [0], [0], [1], [0, 0, 1, 1], [], []>} : vector<8x64xf32>, vector<64x64xf32>, vector<8x64xf32> -> vector<8x64xf32>
    %389 = arith.addf %388, %17 : vector<8x64xf32>
    %cst_97 = arith.constant 0.000000e+00 : f32
    %390 = vector.broadcast %cst_97 : f32 to vector<8x64xf32>
    %391 = arith.cmpf oge, %389, %390 : vector<8x64xf32>
    %cst_98 = arith.constant 0.00999999977 : f32
    %392 = vector.broadcast %cst_98 : f32 to vector<8x64xf32>
    %393 = arith.mulf %392, %389 : vector<8x64xf32>
    %394 = arith.select %391, %389, %393 : vector<8x64xi1>, vector<8x64xf32>
    %cst_99 = arith.constant dense<0.000000e+00> : vector<8x64xf32>
    %395 = tpu.matmul %394, %8, %cst_99 {dimension_numbers = #tpu.dot_dimension_numbers<[1], [0], [0], [1], [0, 0, 1, 1], [], []>} : vector<8x64xf32>, vector<64x64xf32>, vector<8x64xf32> -> vector<8x64xf32>
    %396 = arith.addf %395, %19 : vector<8x64xf32>
    %397 = vector.extract_strided_slice %396 {offsets = [0, 0], sizes = [8, 2], strides = [1, 1]} : vector<8x64xf32> to vector<8x2xf32>
    %cst_100 = arith.constant 3.14159274 : f32
    %398 = vector.broadcast %cst_100 : f32 to vector<8x2xf32>
    %399 = arith.mulf %398, %397 : vector<8x2xf32>
    %400 = math.sin %399 : vector<8x2xf32>
    %cst_101 = arith.constant 3.14159274 : f32
    %401 = vector.broadcast %cst_101 : f32 to vector<8x2xf32>
    %402 = arith.mulf %401, %397 : vector<8x2xf32>
    %403 = math.cos %402 : vector<8x2xf32>
    %cst_102 = arith.constant 6.28318548 : f32
    %404 = vector.broadcast %cst_102 : f32 to vector<8x2xf32>
    %405 = arith.mulf %404, %397 : vector<8x2xf32>
    %406 = math.sin %405 : vector<8x2xf32>
    %cst_103 = arith.constant 6.28318548 : f32
    %407 = vector.broadcast %cst_103 : f32 to vector<8x2xf32>
    %408 = arith.mulf %407, %397 : vector<8x2xf32>
    %409 = math.cos %408 : vector<8x2xf32>
    %410 = tpu.concatenate %400, %403, %406, %409 in 1 : vector<8x2xf32>, vector<8x2xf32>, vector<8x2xf32>, vector<8x2xf32> -> vector<8x8xf32>
    %cst_104 = arith.constant dense<0.000000e+00> : vector<8x96xf32>
    %411 = tpu.matmul %410, %0, %cst_104 {dimension_numbers = #tpu.dot_dimension_numbers<[1], [0], [0], [1], [0, 0, 1, 1], [], []>} : vector<8x8xf32>, vector<8x96xf32>, vector<8x96xf32> -> vector<8x96xf32>
    %412 = arith.addf %411, %11 : vector<8x96xf32>
    %cst_105 = arith.constant dense<0.000000e+00> : vector<8x96xf32>
    %413 = tpu.matmul %380, %1, %cst_105 {dimension_numbers = #tpu.dot_dimension_numbers<[1], [0], [0], [1], [0, 0, 1, 1], [], []>} : vector<8x32xf32>, vector<32x96xf32>, vector<8x96xf32> -> vector<8x96xf32>
    %414 = arith.addf %413, %13 : vector<8x96xf32>
    %415 = vector.extract_strided_slice %412 {offsets = [0, 0], sizes = [8, 32], strides = [1, 1]} : vector<8x96xf32> to vector<8x32xf32>
    %416 = vector.extract_strided_slice %414 {offsets = [0, 0], sizes = [8, 32], strides = [1, 1]} : vector<8x96xf32> to vector<8x32xf32>
    %417 = arith.addf %415, %416 : vector<8x32xf32>
    %418 = arith.negf %417 : vector<8x32xf32>
    %419 = math.exp %418 : vector<8x32xf32>
    %cst_106 = arith.constant 1.000000e+00 : f32
    %420 = vector.broadcast %cst_106 : f32 to vector<8x32xf32>
    %421 = arith.addf %420, %419 : vector<8x32xf32>
    %422 = arith.divf %420, %421 : vector<8x32xf32>
    %423 = vector.extract_strided_slice %412 {offsets = [0, 32], sizes = [8, 32], strides = [1, 1]} : vector<8x96xf32> to vector<8x32xf32>
    %424 = vector.extract_strided_slice %414 {offsets = [0, 32], sizes = [8, 32], strides = [1, 1]} : vector<8x96xf32> to vector<8x32xf32>
    %425 = arith.addf %423, %424 : vector<8x32xf32>
    %426 = arith.negf %425 : vector<8x32xf32>
    %427 = math.exp %426 : vector<8x32xf32>
    %cst_107 = arith.constant 1.000000e+00 : f32
    %428 = vector.broadcast %cst_107 : f32 to vector<8x32xf32>
    %429 = arith.addf %428, %427 : vector<8x32xf32>
    %430 = arith.divf %428, %429 : vector<8x32xf32>
    %431 = vector.extract_strided_slice %412 {offsets = [0, 64], sizes = [8, 32], strides = [1, 1]} : vector<8x96xf32> to vector<8x32xf32>
    %432 = vector.extract_strided_slice %414 {offsets = [0, 64], sizes = [8, 32], strides = [1, 1]} : vector<8x96xf32> to vector<8x32xf32>
    %433 = arith.mulf %422, %432 : vector<8x32xf32>
    %434 = arith.addf %431, %433 : vector<8x32xf32>
    %435 = math.tanh %434 : vector<8x32xf32>
    %cst_108 = arith.constant 1.000000e+00 : f32
    %436 = vector.broadcast %cst_108 : f32 to vector<8x32xf32>
    %437 = arith.subf %436, %430 : vector<8x32xf32>
    %438 = arith.mulf %437, %435 : vector<8x32xf32>
    %439 = arith.mulf %430, %380 : vector<8x32xf32>
    %440 = arith.addf %438, %439 : vector<8x32xf32>
    %cst_109 = arith.constant dense<0.000000e+00> : vector<8x64xf32>
    %441 = tpu.matmul %440, %4, %cst_109 {dimension_numbers = #tpu.dot_dimension_numbers<[1], [0], [0], [1], [0, 0, 1, 1], [], []>} : vector<8x32xf32>, vector<32x64xf32>, vector<8x64xf32> -> vector<8x64xf32>
    %442 = arith.addf %441, %15 : vector<8x64xf32>
    %cst_110 = arith.constant 0.000000e+00 : f32
    %443 = vector.broadcast %cst_110 : f32 to vector<8x64xf32>
    %444 = arith.cmpf oge, %442, %443 : vector<8x64xf32>
    %cst_111 = arith.constant 0.00999999977 : f32
    %445 = vector.broadcast %cst_111 : f32 to vector<8x64xf32>
    %446 = arith.mulf %445, %442 : vector<8x64xf32>
    %447 = arith.select %444, %442, %446 : vector<8x64xi1>, vector<8x64xf32>
    %cst_112 = arith.constant dense<0.000000e+00> : vector<8x64xf32>
    %448 = tpu.matmul %447, %6, %cst_112 {dimension_numbers = #tpu.dot_dimension_numbers<[1], [0], [0], [1], [0, 0, 1, 1], [], []>} : vector<8x64xf32>, vector<64x64xf32>, vector<8x64xf32> -> vector<8x64xf32>
    %449 = arith.addf %448, %17 : vector<8x64xf32>
    %cst_113 = arith.constant 0.000000e+00 : f32
    %450 = vector.broadcast %cst_113 : f32 to vector<8x64xf32>
    %451 = arith.cmpf oge, %449, %450 : vector<8x64xf32>
    %cst_114 = arith.constant 0.00999999977 : f32
    %452 = vector.broadcast %cst_114 : f32 to vector<8x64xf32>
    %453 = arith.mulf %452, %449 : vector<8x64xf32>
    %454 = arith.select %451, %449, %453 : vector<8x64xi1>, vector<8x64xf32>
    %cst_115 = arith.constant dense<0.000000e+00> : vector<8x64xf32>
    %455 = tpu.matmul %454, %8, %cst_115 {dimension_numbers = #tpu.dot_dimension_numbers<[1], [0], [0], [1], [0, 0, 1, 1], [], []>} : vector<8x64xf32>, vector<64x64xf32>, vector<8x64xf32> -> vector<8x64xf32>
    %456 = arith.addf %455, %19 : vector<8x64xf32>
    %457 = vector.extract_strided_slice %456 {offsets = [0, 0], sizes = [8, 2], strides = [1, 1]} : vector<8x64xf32> to vector<8x2xf32>
    %458 = tpu.concatenate %277, %337, %397, %457 in 1 : vector<8x2xf32>, vector<8x2xf32>, vector<8x2xf32>, vector<8x2xf32> -> vector<8x8xf32>
    %c0_116 = arith.constant 0 : index
    %c0_117 = arith.constant 0 : index
    %459 = vector.load %arg4[%c0_116, %c0_117] : memref<8x8xf32, #tpu.memory_space<vmem>>, vector<8x8xf32>
    tpu.vector_store %arg4[%c0_116, %c0_117], %458 {strides = array<i32>} : memref<8x8xf32, #tpu.memory_space<vmem>>, vector<8x8xf32>,
    return
  }
  func.func @transform_0(%arg0: i32) -> (i32, i32, i32) {
    %c0_i32 = arith.constant 0 : i32
    %c0_i32_0 = arith.constant 0 : i32
    %c0_i32_1 = arith.constant 0 : i32
    return %c0_i32, %arg0, %c0_i32_0 : i32, i32, i32
  }
  func.func @transform_1(%arg0: i32) -> (i32, i32) {
    %c0_i32 = arith.constant 0 : i32
    %c0_i32_0 = arith.constant 0 : i32
    %c0_i32_1 = arith.constant 0 : i32
    return %c0_i32, %c0_i32_0 : i32, i32
  }
  func.func @transform_2(%arg0: i32) -> (i32, i32) {
    %c0_i32 = arith.constant 0 : i32
    %c0_i32_0 = arith.constant 0 : i32
    %c0_i32_1 = arith.constant 0 : i32
    return %c0_i32, %c0_i32_0 : i32, i32
  }
  func.func @transform_3(%arg0: i32) -> (i32, i32) {
    %c0_i32 = arith.constant 0 : i32
    %c0_i32_0 = arith.constant 0 : i32
    return %arg0, %c0_i32 : i32, i32
  }
}

</mosaic_0001>

<bundles_post_ra>
// kernel: tpu_custom_call.1
= control target key start
LH: loop header
LB: loop body
LE: loop exit
PB: predicated region body
PF: predicated region fallthrough
CT: control target
= control target key end

     0   :  { %s4378_s0 = inlined_call_operand.vmem [shape: f32[8,8,96], index: 0, kind: input, shape index: {}]   ;;  %s4379_s1 = inlined_call_operand.vmem [shape: f32[42,96], index: 1, kind: input, shape index: {}]   ;;  %s4380_s2 = inlined_call_operand.vmem [shape: f32[184,64], index: 2, kind: input, shape index: {}]   ;;  %s4381_s3 = inlined_call_operand.hbm [shape: f32[8,8], index: 3, kind: output, shape index: {}]  }
   0x1   :  { %v3321_v0 = vld [vmem:[%s4379_s1 + $0x20] sm:$0xff]  ;;  %v3326_v1 = vld [vmem:[%s4379_s1 + $0x18] sm:$0xff]  ;;  %v3333_v2 = vld [vmem:[%s4379_s1 + $0x10] sm:$0xff] }
   0x2   :  { %67 = vmatpush.msra.mxu0 %v3321_v0  ;;  %133 = vmatpush.msra.mxu1 %v3321_v0 }
   0x3   :  { %199 = vmatpush.msra.mxu2 %v3321_v0  ;;  %265 = vmatpush.msra.mxu3 %v3321_v0 }
   0x4   :  { %68 = vmatpush.msra.mxu0 %v3326_v1  ;;  %134 = vmatpush.msra.mxu1 %v3326_v1 }
   0x5   :  { %8 = vsyncpa [#allocation3], 0  ;;  %v3342_v3 = vld [vmem:[%s4379_s1 + $0x8] sm:$0xff]  ;;  %200 = vmatpush.msra.mxu2 %v3326_v1  ;;  %266 = vmatpush.msra.mxu3 %v3326_v1  ;;  %v3284_v4 = vmov 0.0   ;;  %s3285_s22 = smov 64   ;;  %v50_v8 = vld [vmem:[%s4378_s0] sm:$0xff] }
   0x6   :  { %69 = vmatpush.msra.mxu0 %v3333_v2  ;;  %135 = vmatpush.msra.mxu1 %v3333_v2  ;;  %v3373_v5 = vld [vmem:[%s4379_s1 + $0x29] ss:$0 sm:$0xff]  ;;  %s3286_s25 = smov 96   ;;  %vm51_vm4 = vcmask 261120   ;;  %s3294_s7 = smov 6  }
   0x7   :  { %201 = vmatpush.msra.mxu2 %v3333_v2  ;;  %267 = vmatpush.msra.mxu3 %v3333_v2  ;;  %v3073_v36 = vld [vmem:[%s4378_s0 + $0x8] sm:$0xff]  ;;  %s3295_s8 = smov 4   ;;  %s3296_s9 = smov 2  }
   0x8   :  { %70 = vmatpush.msra.mxu0 %v3342_v3  ;;  %136 = vmatpush.msra.mxu1 %v3342_v3 }
   0x9   :  { %71 = vmatmul.f32.vlgmr.msra.gmra.mxu0 %v3284_v4  ;;  %202 = vmatpush.msra.mxu2 %v3342_v3  ;;  %v3076_v4 = vld [vmem:[%s4378_s0 + $0x10] sm:$0xff] }
   0xa   :  { %268 = vmatpush.msra.mxu3 %v3342_v3  ;;  %331 = vmatpush.msrb.mxu0 %v3321_v0 }
   0xb   :  { %397 = vmatpush.msrb.mxu1 %v3321_v0  ;;  %463 = vmatpush.msrb.mxu2 %v3321_v0 }
   0xc   :  { %332 = vmatpush.msrb.mxu0 %v3326_v1  ;;  %529 = vmatpush.msrb.mxu3 %v3321_v0 }
   0xd   :  { %398 = vmatpush.msrb.mxu1 %v3326_v1  ;;  %464 = vmatpush.msrb.mxu2 %v3326_v1 }
   0xe   :  { %333 = vmatpush.msrb.mxu0 %v3333_v2  ;;  %530 = vmatpush.msrb.mxu3 %v3326_v1 }
   0xf   :  { %399 = vmatpush.msrb.mxu1 %v3333_v2  ;;  %465 = vmatpush.msrb.mxu2 %v3333_v2 }
  0x10   :  { %334 = vmatpush.msrb.mxu0 %v3342_v3  ;;  %531 = vmatpush.msrb.mxu3 %v3333_v2 }
  0x11   :  { %400 = vmatpush.msrb.mxu1 %v3342_v3  ;;  %466 = vmatpush.msrb.mxu2 %v3342_v3 }
  0x12   :  { %532 = vmatpush.msrb.mxu3 %v3342_v3 }
  0x86   :  { %v72_v6 = vpop.f32.mrf.mxu0 }
  0x87   :  { %v73_v7 = vadd.f32 %v3373_v5, %v72_v6 }
  0x89   :  { %96 = vrot.lane.b32.xlu0 %v73_v7, %s3285_s22  ;;  %v75_v9 = vadd.f32 %v73_v7, %v50_v8 }
  0x8b   :  { %v3072_v10 = vmul.f32 -1.442695, %v75_v9 }
  0x8d   :  { %3170 = vpow2.f32 %v3072_v10 }
  0x93   :  { %v3171_v11 = vpop.eup %3170 }
  0x94   :  { %v79_v12 = vadd.f32 1.0, %v3171_v11 }
  0x96   :  { %3172 = vrcp.f32 %v79_v12  ;;  %v91_v18 = vand.u32 2147483648, %v79_v12  ;;  %vm85_vm1 = vweird.f32 %v79_v12  ;;  %v89_v19 = vand.u32 2147483647, %v79_v12 }
  0x98   :  { %v92_v21 = vor.u32 1.1754944e-38, %v91_v18  ;;  %vm90_vm3 = vcmp.eq.f32.partialorder %v89_v19, 8.507059e+37 }
  0x9c   :  { %v3173_v13 = vpop.eup %3172 }
  0x9d   :  { %v81_v14 = vmul.f32 %v3173_v13, %v79_v12  ;;  %vm86_vm0 = vweird.f32 %v3173_v13 }
  0x9e   :  { %vm87_vm2 = vmor %vm85_vm1, %vm86_vm0 }
  0x9f   :  { %v82_v15 = vsub.f32 1.0, %v81_v14 }
  0xa1   :  { %v83_v16 = vmul.f32 %v3173_v13, %v82_v15 }
  0xa3   :  { %v84_v17 = vadd.f32 %v3173_v13, %v83_v16 }
  0xa5   :  { %v88_v20 = vsel %vm87_vm2, %v3173_v13, %v84_v17 }
  0xa6   :  { %v93_v23 = vsel %vm90_vm3, %v92_v21, %v88_v20 }
  0xa7   :  { %v106_v28 = vsub.f32 1.0, %v93_v23  ;;  %v112_v30 = vmul.f32 0.0, %v93_v23 }
  0xfb   :  { %v97_v22 = vpop.permute.xlu0 %96 }
  0xfc   :  { %v99_v24 = vmul.f32 %v97_v22, %v93_v23 }
  0xfe   :  { %101 = vrot.lane.b32.xlu0 %v99_v24, %s3285_s22 }
 0x170   :  { %v102_v25 = vpop.permute.xlu0 %101 }
 0x171   :  { %v104_v26 = vadd.f32 %v102_v25, %v50_v8 }
 0x173   :  { %3174 = vtanh.f32 %v104_v26 }
 0x179   :  { %v3175_v27 = vpop.eup %3174 }
 0x17a   :  { %108 = vrot.lane.b32.xlu1 %v3175_v27, %s3286_s25 }
 0x1ec   :  { %v109_v29 = vpop.permute.xlu1 %108 }
 0x1ed   :  { %v111_v31 = vmul.f32 %v109_v29, %v106_v28 }
 0x1ef   :  { %v113_v32 = vadd.f32 %v112_v30, %v111_v31 }
 0x1f1   :  { %117 = vrot.lane.b32.xlu1 %v113_v32, %s3286_s25 }
 0x263   :  { %v118_v33 = vpop.permute.xlu1 %117 }
 0x264   :  { %3074 = vmatmul.msk.f32.vlgmr.msra.gmra.mxu1 %vm51_vm4, %v118_v33  ;;  %v3079_v33 = vld [vmem:[%s4378_s0 + $0x18] sm:$0xff] }
 0x2e1   :  { %v138_v34 = vpop.f32.mrf.mxu1 }
 0x2e2   :  { %v139_v35 = vadd.f32 %v3373_v5, %v138_v34 }
 0x2e4   :  { %162 = vrot.lane.b32.xlu2 %v139_v35, %s3285_s22  ;;  %v141_v37 = vadd.f32 %v3073_v36, %v139_v35 }
 0x2e6   :  { %v3075_v38 = vmul.f32 -1.442695, %v141_v37 }
 0x2e8   :  { %3176 = vpow2.f32 %v3075_v38 }
 0x2ee   :  { %v3177_v39 = vpop.eup %3176 }
 0x2ef   :  { %v145_v40 = vadd.f32 1.0, %v3177_v39 }
 0x2f1   :  { %3178 = vrcp.f32 %v145_v40  ;;  %v157_v46 = vand.u32 2147483648, %v145_v40  ;;  %vm151_vm6 = vweird.f32 %v145_v40  ;;  %v155_v47 = vand.u32 2147483647, %v145_v40 }
 0x2f3   :  { %v158_v49 = vor.u32 1.1754944e-38, %v157_v46  ;;  %vm156_vm8 = vcmp.eq.f32.partialorder %v155_v47, 8.507059e+37 }
 0x2f7   :  { %v3179_v41 = vpop.eup %3178 }
 0x2f8   :  { %v147_v42 = vmul.f32 %v3179_v41, %v145_v40  ;;  %vm152_vm5 = vweird.f32 %v3179_v41 }
 0x2f9   :  { %vm153_vm7 = vmor %vm151_vm6, %vm152_vm5 }
 0x2fa   :  { %v148_v43 = vsub.f32 1.0, %v147_v42 }
 0x2fc   :  { %v149_v44 = vmul.f32 %v3179_v41, %v148_v43 }
 0x2fe   :  { %v150_v45 = vadd.f32 %v3179_v41, %v149_v44 }
 0x300   :  { %v154_v48 = vsel %vm153_vm7, %v3179_v41, %v150_v45 }
 0x301   :  { %v159_v51 = vsel %vm156_vm8, %v158_v49, %v154_v48 }
 0x302   :  { %v172_v56 = vsub.f32 1.0, %v159_v51  ;;  %v178_v58 = vmul.f32 %v159_v51, %v113_v32 }
 0x33e   :  { %v163_v50 = vpop.permute.xlu2 %162 }
 0x33f   :  { %v165_v52 = vmul.f32 %v163_v50, %v159_v51 }
 0x341   :  { %167 = vrot.lane.b32.xlu2 %v165_v52, %s3285_s22 }
 0x39b   :  { %v168_v53 = vpop.permute.xlu2 %167 }
 0x39c   :  { %v170_v54 = vadd.f32 %v3073_v36, %v168_v53 }
 0x39e   :  { %3180 = vtanh.f32 %v170_v54 }
 0x3a4   :  { %v3181_v55 = vpop.eup %3180 }
 0x3a5   :  { %174 = vrot.lane.b32.xlu0 %v3181_v55, %s3286_s25 }
 0x417   :  { %v175_v57 = vpop.permute.xlu0 %174 }
 0x418   :  { %v177_v59 = vmul.f32 %v175_v57, %v172_v56 }
 0x41a   :  { %v179_v60 = vadd.f32 %v178_v58, %v177_v59 }
 0x41c   :  { %183 = vrot.lane.b32.xlu1 %v179_v60, %s3286_s25 }
 0x48e   :  { %v184_v61 = vpop.permute.xlu1 %183 }
 0x48f   :  { %3077 = vmatmul.msk.f32.vlgmr.msra.gmra.mxu2 %vm51_vm4, %v184_v61  ;;  %v3082_v61 = vld [vmem:[%s4378_s0 + $0x20] sm:$0xff] }
 0x512   :  { %v204_v62 = vpop.f32.mrf.mxu2 }
 0x513   :  { %v205_v63 = vadd.f32 %v3373_v5, %v204_v62 }
 0x515   :  { %228 = vrot.lane.b32.xlu2 %v205_v63, %s3285_s22  ;;  %v207_v6 = vadd.f32 %v3076_v4, %v205_v63 }
 0x517   :  { %v3078_v7 = vmul.f32 -1.442695, %v207_v6 }
 0x519   :  { %3182 = vpow2.f32 %v3078_v7 }
 0x51f   :  { %v3183_v8 = vpop.eup %3182 }
 0x520   :  { %v211_v9 = vadd.f32 1.0, %v3183_v8 }
 0x522   :  { %3184 = vrcp.f32 %v211_v9  ;;  %v223_v15 = vand.u32 2147483648, %v211_v9  ;;  %vm217_vm10 = vweird.f32 %v211_v9  ;;  %v221_v16 = vand.u32 2147483647, %v211_v9 }
 0x524   :  { %v224_v18 = vor.u32 1.1754944e-38, %v223_v15  ;;  %vm222_vm12 = vcmp.eq.f32.partialorder %v221_v16, 8.507059e+37 }
 0x528   :  { %v3185_v10 = vpop.eup %3184 }
 0x529   :  { %v213_v11 = vmul.f32 %v3185_v10, %v211_v9  ;;  %vm218_vm9 = vweird.f32 %v3185_v10 }
 0x52a   :  { %vm219_vm11 = vmor %vm217_vm10, %vm218_vm9 }
 0x52b   :  { %v214_v12 = vsub.f32 1.0, %v213_v11 }
 0x52d   :  { %v215_v13 = vmul.f32 %v3185_v10, %v214_v12 }
 0x52f   :  { %v216_v14 = vadd.f32 %v3185_v10, %v215_v13 }
 0x531   :  { %v220_v17 = vsel %vm219_vm11, %v3185_v10, %v216_v14 }
 0x532   :  { %v225_v20 = vsel %vm222_vm12, %v224_v18, %v220_v17 }
 0x533   :  { %v238_v25 = vsub.f32 1.0, %v225_v20  ;;  %v244_v27 = vmul.f32 %v225_v20, %v179_v60 }
 0x56f   :  { %v229_v19 = vpop.permute.xlu2 %228 }
 0x570   :  { %v231_v21 = vmul.f32 %v229_v19, %v225_v20 }
 0x572   :  { %233 = vrot.lane.b32.xlu0 %v231_v21, %s3285_s22 }
 0x5e4   :  { %v234_v22 = vpop.permute.xlu0 %233 }
 0x5e5   :  { %v236_v23 = vadd.f32 %v3076_v4, %v234_v22 }
 0x5e7   :  { %3186 = vtanh.f32 %v236_v23 }
 0x5ed   :  { %v3187_v24 = vpop.eup %3186 }
 0x5ee   :  { %240 = vrot.lane.b32.xlu1 %v3187_v24, %s3286_s25 }
 0x660   :  { %v241_v26 = vpop.permute.xlu1 %240 }
 0x661   :  { %v243_v28 = vmul.f32 %v241_v26, %v238_v25 }
 0x663   :  { %v245_v29 = vadd.f32 %v244_v27, %v243_v28 }
 0x665   :  { %249 = vrot.lane.b32.xlu2 %v245_v29, %s3286_s25 }
 0x6bf   :  { %v250_v30 = vpop.permute.xlu2 %249 }
 0x6c0   :  { %3080 = vmatmul.msk.f32.vlgmr.msra.gmra.mxu3 %vm51_vm4, %v250_v30  ;;  %v3085_v30 = vld [vmem:[%s4378_s0 + $0x28] sm:$0xff] }
 0x743   :  { %v270_v31 = vpop.f32.mrf.mxu3 }
 0x744   :  { %v271_v32 = vadd.f32 %v3373_v5, %v270_v31 }
 0x746   :  { %294 = vrot.lane.b32.xlu0 %v271_v32, %s3285_s22  ;;  %v273_v34 = vadd.f32 %v3079_v33, %v271_v32 }
 0x748   :  { %v3081_v35 = vmul.f32 -1.442695, %v273_v34 }
 0x74a   :  { %3188 = vpow2.f32 %v3081_v35 }
 0x750   :  { %v3189_v36 = vpop.eup %3188 }
 0x751   :  { %v277_v37 = vadd.f32 1.0, %v3189_v36 }
 0x753   :  { %3190 = vrcp.f32 %v277_v37  ;;  %v289_v43 = vand.u32 2147483648, %v277_v37  ;;  %vm283_vm14 = vweird.f32 %v277_v37  ;;  %v287_v44 = vand.u32 2147483647, %v277_v37 }
 0x755   :  { %v290_v46 = vor.u32 1.1754944e-38, %v289_v43  ;;  %vm288_vm0 = vcmp.eq.f32.partialorder %v287_v44, 8.507059e+37 }
 0x759   :  { %v3191_v38 = vpop.eup %3190 }
 0x75a   :  { %v279_v39 = vmul.f32 %v3191_v38, %v277_v37  ;;  %vm284_vm13 = vweird.f32 %v3191_v38 }
 0x75b   :  { %vm285_vm15 = vmor %vm283_vm14, %vm284_vm13 }
 0x75c   :  { %v280_v40 = vsub.f32 1.0, %v279_v39 }
 0x75e   :  { %v281_v41 = vmul.f32 %v3191_v38, %v280_v40 }
 0x760   :  { %v282_v42 = vadd.f32 %v3191_v38, %v281_v41 }
 0x762   :  { %v286_v45 = vsel %vm285_vm15, %v3191_v38, %v282_v42 }
 0x763   :  { %v291_v48 = vsel %vm288_vm0, %v290_v46, %v286_v45 }
 0x764   :  { %v304_v53 = vsub.f32 1.0, %v291_v48  ;;  %v310_v55 = vmul.f32 %v291_v48, %v245_v29 }
 0x7b8   :  { %v295_v47 = vpop.permute.xlu0 %294 }
 0x7b9   :  { %v297_v49 = vmul.f32 %v295_v47, %v291_v48 }
 0x7bb   :  { %299 = vrot.lane.b32.xlu1 %v297_v49, %s3285_s22 }
 0x82d   :  { %v300_v50 = vpop.permute.xlu1 %299 }
 0x82e   :  { %v302_v51 = vadd.f32 %v3079_v33, %v300_v50 }
 0x830   :  { %3192 = vtanh.f32 %v302_v51 }
 0x836   :  { %v3193_v52 = vpop.eup %3192 }
 0x837   :  { %306 = vrot.lane.b32.xlu2 %v3193_v52, %s3286_s25 }
 0x891   :  { %v307_v54 = vpop.permute.xlu2 %306 }
 0x892   :  { %v309_v56 = vmul.f32 %v307_v54, %v304_v53 }
 0x894   :  { %v311_v57 = vadd.f32 %v310_v55, %v309_v56 }
 0x896   :  { %315 = vrot.lane.b32.xlu0 %v311_v57, %s3286_s25 }
 0x908   :  { %v316_v58 = vpop.permute.xlu0 %315 }
 0x909   :  { %3083 = vmatmul.msk.f32.vlgmr.msrb.gmra.mxu0 %vm51_vm4, %v316_v58  ;;  %v3088_v58 = vld [vmem:[%s4378_s0 + $0x30] sm:$0xff] }
 0x986   :  { %v336_v59 = vpop.f32.mrf.mxu0 }
 0x987   :  { %v337_v60 = vadd.f32 %v3373_v5, %v336_v59 }
 0x989   :  { %360 = vrot.lane.b32.xlu1 %v337_v60, %s3285_s22  ;;  %v339_v62 = vadd.f32 %v3082_v61, %v337_v60 }
 0x98b   :  { %v3084_v63 = vmul.f32 -1.442695, %v339_v62 }
 0x98d   :  { %3194 = vpow2.f32 %v3084_v63 }
 0x993   :  { %v3195_v4 = vpop.eup %3194 }
 0x994   :  { %v343_v6 = vadd.f32 1.0, %v3195_v4 }
 0x996   :  { %3196 = vrcp.f32 %v343_v6  ;;  %v355_v12 = vand.u32 2147483648, %v343_v6  ;;  %vm349_vm2 = vweird.f32 %v343_v6  ;;  %v353_v13 = vand.u32 2147483647, %v343_v6 }
 0x998   :  { %v356_v15 = vor.u32 1.1754944e-38, %v355_v12  ;;  %vm354_vm5 = vcmp.eq.f32.partialorder %v353_v13, 8.507059e+37 }
 0x99c   :  { %v3197_v7 = vpop.eup %3196 }
 0x99d   :  { %v345_v8 = vmul.f32 %v3197_v7, %v343_v6  ;;  %vm350_vm1 = vweird.f32 %v3197_v7 }
 0x99e   :  { %vm351_vm3 = vmor %vm349_vm2, %vm350_vm1 }
 0x99f   :  { %v346_v9 = vsub.f32 1.0, %v345_v8 }
 0x9a1   :  { %v347_v10 = vmul.f32 %v3197_v7, %v346_v9 }
 0x9a3   :  { %v348_v11 = vadd.f32 %v3197_v7, %v347_v10 }
 0x9a5   :  { %v352_v14 = vsel %vm351_vm3, %v3197_v7, %v348_v11  ;;  %vm604_vm3 = vcmask 523264  }
 0x9a6   :  { %v357_v17 = vsel %vm354_vm5, %v356_v15, %v352_v14 }
 0x9a7   :  { %v370_v22 = vsub.f32 1.0, %v357_v17  ;;  %v376_v24 = vmul.f32 %v357_v17, %v311_v57 }
 0x9fb   :  { %v361_v16 = vpop.permute.xlu1 %360 }
 0x9fc   :  { %v363_v18 = vmul.f32 %v361_v16, %v357_v17 }
 0x9fe   :  { %365 = vrot.lane.b32.xlu2 %v363_v18, %s3285_s22 }
 0xa58   :  { %v366_v19 = vpop.permute.xlu2 %365 }
 0xa59   :  { %v368_v20 = vadd.f32 %v3082_v61, %v366_v19 }
 0xa5b   :  { %3198 = vtanh.f32 %v368_v20 }
 0xa61   :  { %v3199_v21 = vpop.eup %3198 }
 0xa62   :  { %372 = vrot.lane.b32.xlu0 %v3199_v21, %s3286_s25 }
 0xad4   :  { %v373_v23 = vpop.permute.xlu0 %372 }
 0xad5   :  { %v375_v25 = vmul.f32 %v373_v23, %v370_v22 }
 0xad7   :  { %v377_v26 = vadd.f32 %v376_v24, %v375_v25 }
 0xad9   :  { %381 = vrot.lane.b32.xlu1 %v377_v26, %s3286_s25 }
 0xb4b   :  { %v382_v27 = vpop.permute.xlu1 %381 }
 0xb4c   :  { %3086 = vmatmul.msk.f32.vlgmr.msrb.gmra.mxu1 %vm51_vm4, %v382_v27  ;;  %v3091_v27 = vld [vmem:[%s4378_s0 + $0x38] sm:$0xff] }
 0xbc9   :  { %v402_v28 = vpop.f32.mrf.mxu1 }
 0xbca   :  { %v403_v29 = vadd.f32 %v3373_v5, %v402_v28 }
 0xbcc   :  { %426 = vrot.lane.b32.xlu2 %v403_v29, %s3285_s22  ;;  %v405_v31 = vadd.f32 %v3085_v30, %v403_v29 }
 0xbce   :  { %v3087_v32 = vmul.f32 -1.442695, %v405_v31 }
 0xbd0   :  { %3200 = vpow2.f32 %v3087_v32 }
 0xbd6   :  { %v3201_v33 = vpop.eup %3200 }
 0xbd7   :  { %v409_v34 = vadd.f32 1.0, %v3201_v33 }
 0xbd9   :  { %3202 = vrcp.f32 %v409_v34  ;;  %v421_v40 = vand.u32 2147483648, %v409_v34  ;;  %vm415_vm7 = vweird.f32 %v409_v34  ;;  %v419_v41 = vand.u32 2147483647, %v409_v34 }
 0xbdb   :  { %v422_v43 = vor.u32 1.1754944e-38, %v421_v40  ;;  %vm420_vm9 = vcmp.eq.f32.partialorder %v419_v41, 8.507059e+37 }
 0xbdf   :  { %v3203_v35 = vpop.eup %3202 }
 0xbe0   :  { %v411_v36 = vmul.f32 %v3203_v35, %v409_v34  ;;  %vm416_vm6 = vweird.f32 %v3203_v35 }
 0xbe1   :  { %vm417_vm8 = vmor %vm415_vm7, %vm416_vm6 }
 0xbe2   :  { %v412_v37 = vsub.f32 1.0, %v411_v36 }
 0xbe4   :  { %v413_v38 = vmul.f32 %v3203_v35, %v412_v37 }
 0xbe6   :  { %v414_v39 = vadd.f32 %v3203_v35, %v413_v38 }
 0xbe8   :  { %v418_v42 = vsel %vm417_vm8, %v3203_v35, %v414_v39 }
 0xbe9   :  { %v423_v45 = vsel %vm420_vm9, %v422_v43, %v418_v42 }
 0xbea   :  { %v436_v50 = vsub.f32 1.0, %v423_v45  ;;  %v442_v52 = vmul.f32 %v423_v45, %v377_v26 }
 0xc26   :  { %v427_v44 = vpop.permute.xlu2 %426 }
 0xc27   :  { %v429_v46 = vmul.f32 %v427_v44, %v423_v45 }
 0xc29   :  { %431 = vrot.lane.b32.xlu0 %v429_v46, %s3285_s22  ;;  %v3448_v46 = vld [vmem:[%s4380_s2 + $0x18] sm:$0xff] }
 0xc2a   :  { %593 = vmatpush.msra.mxu0 %v3448_v46 }
 0xc9b   :  { %v432_v47 = vpop.permute.xlu0 %431 }
 0xc9c   :  { %v434_v48 = vadd.f32 %v3085_v30, %v432_v47  ;;  %v3453_v47 = vld [vmem:[%s4380_s2 + $0x10] sm:$0xff] }
 0xc9d   :  { %594 = vmatpush.msra.mxu0 %v3453_v47 }
 0xc9e   :  { %3204 = vtanh.f32 %v434_v48  ;;  %v3459_v48 = vld [vmem:[%s4380_s2 + $0x8] sm:$0xff] }
 0xc9f   :  { %595 = vmatpush.msra.mxu0 %v3459_v48 }
 0xca4   :  { %v3205_v49 = vpop.eup %3204 }
 0xca5   :  { %438 = vrot.lane.b32.xlu1 %v3205_v49, %s3286_s25  ;;  %v3465_v49 = vld [vmem:[%s4380_s2] sm:$0xff] }
 0xca6   :  { %596 = vmatpush.msra.mxu0 %v3465_v49 }
 0xca8   :  { %1328 = vmatpush.msrb.mxu0 %v3321_v0  ;;  %v3485_v0 = vld [vmem:[%s4380_s2 + $0x58] sm:$0xff] }
 0xcaa   :  { %1329 = vmatpush.msrb.mxu0 %v3326_v1  ;;  %v3491_v1 = vld [vmem:[%s4380_s2 + $0x50] sm:$0xff] }
 0xcac   :  { %1330 = vmatpush.msrb.mxu0 %v3333_v2  ;;  %v3497_v2 = vld [vmem:[%s4380_s2 + $0x48] sm:$0xff] }
 0xcae   :  { %1331 = vmatpush.msrb.mxu0 %v3342_v3  ;;  %v3503_v3 = vld [vmem:[%s4380_s2 + $0x40] sm:$0xff] }
 0xd17   :  { %v439_v51 = vpop.permute.xlu1 %438 }
 0xd18   :  { %v441_v53 = vmul.f32 %v439_v51, %v436_v50 }
 0xd1a   :  { %v443_v54 = vadd.f32 %v442_v52, %v441_v53 }
 0xd1c   :  { %447 = vrot.lane.b32.xlu2 %v443_v54, %s3286_s25 }
 0xd76   :  { %v448_v55 = vpop.permute.xlu2 %447 }
 0xd77   :  { %3089 = vmatmul.msk.f32.vlgmr.msrb.gmra.mxu2 %vm51_vm4, %v448_v55  ;;  %v3480_v55 = vld [vmem:[%s4380_s2 + $0x60] sm:$0xff] }
 0xd78   :  { %616 = vmatpush.msra.mxu1 %v3480_v55 }
 0xd7a   :  { %617 = vmatpush.msra.mxu1 %v3485_v0 }
 0xd7c   :  { %618 = vmatpush.msra.mxu1 %v3491_v1 }
 0xd7e   :  { %619 = vmatpush.msra.mxu1 %v3497_v2 }
 0xd80   :  { %620 = vmatpush.msra.mxu1 %v3503_v3 }
 0xdfa   :  { %v468_v56 = vpop.f32.mrf.mxu2 }
 0xdfb   :  { %v469_v57 = vadd.f32 %v3373_v5, %v468_v56 }
 0xdfd   :  { %492 = vrot.lane.b32.xlu0 %v469_v57, %s3285_s22  ;;  %v471_v59 = vadd.f32 %v3088_v58, %v469_v57  ;;  %v3517_v57 = vld [vmem:[%s4380_s2 + $0x38] sm:$0xff] }
 0xdfe   :  { %621 = vmatpush.msra.mxu1 %v3517_v57 }
 0xdff   :  { %v3090_v60 = vmul.f32 -1.442695, %v471_v59  ;;  %v3531_v59 = vld [vmem:[%s4380_s2 + $0x28] sm:$0xff] }
 0xe01   :  { %3206 = vpow2.f32 %v3090_v60  ;;  %v3538_v60 = vld [vmem:[%s4380_s2 + $0xa8] sm:$0xff] }
 0xe02   :  { %642 = vmatpush.msra.mxu2 %v3538_v60 }
 0xe07   :  { %v3207_v61 = vpop.eup %3206 }
 0xe08   :  { %v475_v62 = vadd.f32 1.0, %v3207_v61  ;;  %v3543_v61 = vld [vmem:[%s4380_s2 + $0xa0] sm:$0xff] }
 0xe09   :  { %643 = vmatpush.msra.mxu2 %v3543_v61 }
 0xe0a   :  { %3208 = vrcp.f32 %v475_v62  ;;  %v487_v9 = vand.u32 2147483648, %v475_v62  ;;  %vm481_vm11 = vweird.f32 %v475_v62  ;;  %v485_v10 = vand.u32 2147483647, %v475_v62 }
 0xe0c   :  { %v488_v12 = vor.u32 1.1754944e-38, %v487_v9  ;;  %vm486_vm13 = vcmp.eq.f32.partialorder %v485_v10, 8.507059e+37 }
 0xe10   :  { %v3209_v63 = vpop.eup %3208 }
 0xe11   :  { %v477_v4 = vmul.f32 %v3209_v63, %v475_v62  ;;  %vm482_vm10 = vweird.f32 %v3209_v63  ;;  %v3550_v62 = vld [vmem:[%s4380_s2 + $0x98] sm:$0xff] }
 0xe12   :  { %vm483_vm12 = vmor %vm481_vm11, %vm482_vm10  ;;  %644 = vmatpush.msra.mxu2 %v3550_v62 }
 0xe13   :  { %v478_v6 = vsub.f32 1.0, %v477_v4  ;;  %v3566_v4 = vld [vmem:[%s4380_s2 + $0x88] sm:$0xff] }
 0xe15   :  { %v479_v7 = vmul.f32 %v3209_v63, %v478_v6  ;;  %v3578_v6 = vld [vmem:[%s4380_s2 + $0x20] ss:$0 sm:$0xff] }
 0xe17   :  { %v480_v8 = vadd.f32 %v3209_v63, %v479_v7 }
 0xe19   :  { %v484_v11 = vsel %vm483_vm12, %v3209_v63, %v480_v8  ;;  %v3558_v63 = vld [vmem:[%s4380_s2 + $0x90] sm:$0xff] }
 0xe1a   :  { %v489_v14 = vsel %vm486_vm13, %v488_v12, %v484_v11  ;;  %645 = vmatpush.msra.mxu2 %v3558_v63  ;;  %v3585_v11 = vld [vmem:[%s4380_s2 + $0x80] sm:$0xff]  ;;  %v3592_v12 = vld [vmem:[%s4380_s2 + $0x78] sm:$0xff] }
 0xe1b   :  { %v502_v19 = vsub.f32 1.0, %v489_v14  ;;  %v508_v21 = vmul.f32 %v489_v14, %v443_v54 }
 0xe1c   :  { %646 = vmatpush.msra.mxu2 %v3566_v4 }
 0xe1e   :  { %647 = vmatpush.msra.mxu2 %v3585_v11 }
 0xe20   :  { %648 = vmatpush.msra.mxu2 %v3592_v12 }
 0xe6f   :  { %v493_v13 = vpop.permute.xlu0 %492 }
 0xe70   :  { %v495_v15 = vmul.f32 %v493_v13, %v489_v14  ;;  %v3600_v13 = vld [vmem:[%s4380_s2 + $0x70] sm:$0xff]  ;;  %v3609_v14 = vld [vmem:[%s4380_s2 + $0x68] ss:$0 sm:$0xff] }
 0xe71   :  { %649 = vmatpush.msra.mxu2 %v3600_v13  ;;  %4399 = vst [vmem:[#allocation5_spill] sm:$0xff] %v3609_v14 }
 0xe72   :  { %497 = vrot.lane.b32.xlu1 %v495_v15, %s3285_s22 }
 0xee4   :  { %v498_v16 = vpop.permute.xlu1 %497 }
 0xee5   :  { %v500_v17 = vadd.f32 %v3088_v58, %v498_v16  ;;  %v3524_v58 = vld [vmem:[%s4380_s2 + $0x30] sm:$0xff] }
 0xee6   :  { %622 = vmatpush.msra.mxu1 %v3524_v58 }
 0xee7   :  { %3210 = vtanh.f32 %v500_v17 }
 0xee8   :  { %623 = vmatpush.msra.mxu1 %v3531_v59 }
 0xeea   :  { %1440 = vmatpush.msrb.mxu1 %v3538_v60 }
 0xeec   :  { %1441 = vmatpush.msrb.mxu1 %v3543_v61 }
 0xeed   :  { %v3211_v18 = vpop.eup %3210 }
 0xeee   :  { %504 = vrot.lane.b32.xlu2 %v3211_v18, %s3286_s25  ;;  %1442 = vmatpush.msrb.mxu1 %v3550_v62 }
 0xef0   :  { %1443 = vmatpush.msrb.mxu1 %v3558_v63 }
 0xef2   :  { %1444 = vmatpush.msrb.mxu1 %v3566_v4 }
 0xef4   :  { %1445 = vmatpush.msrb.mxu1 %v3585_v11 }
 0xef6   :  { %1446 = vmatpush.msrb.mxu1 %v3592_v12 }
 0xef8   :  { %1447 = vmatpush.msrb.mxu1 %v3600_v13 }
 0xf48   :  { %v505_v20 = vpop.permute.xlu2 %504 }
 0xf49   :  { %v507_v22 = vmul.f32 %v505_v20, %v502_v19  ;;  %v3616_v19 = vld [vmem:[%s4380_s2 + $0xb0] ss:$0 sm:$0xff] }
 0xf4a   :  { %4400 = vst [vmem:[#allocation6_spill] sm:$0xff] %v3616_v19 }
 0xf4b   :  { %v509_v23 = vadd.f32 %v508_v21, %v507_v22 }
 0xf4d   :  { %513 = vrot.lane.b32.xlu0 %v509_v23, %s3286_s25 }
 0xfbf   :  { %v514_v24 = vpop.permute.xlu0 %513 }
 0xfc0   :  { %3092 = vmatmul.msk.f32.vlgmr.msrb.gmra.mxu3 %vm51_vm4, %v514_v24 }
0x1043   :  { %v534_v25 = vpop.f32.mrf.mxu3 }
0x1044   :  { %v535_v26 = vadd.f32 %v3373_v5, %v534_v25 }
0x1046   :  { %558 = vrot.lane.b32.xlu1 %v535_v26, %s3285_s22  ;;  %v537_v28 = vadd.f32 %v3091_v27, %v535_v26 }
0x1048   :  { %v3093_v29 = vmul.f32 -1.442695, %v537_v28 }
0x104a   :  { %3212 = vpow2.f32 %v3093_v29 }
0x1050   :  { %v3213_v30 = vpop.eup %3212 }
0x1051   :  { %v541_v31 = vadd.f32 1.0, %v3213_v30 }
0x1053   :  { %3214 = vrcp.f32 %v541_v31  ;;  %v553_v37 = vand.u32 2147483648, %v541_v31  ;;  %vm547_vm15 = vweird.f32 %v541_v31  ;;  %v551_v5 = vand.u32 2147483647, %v541_v31 }
0x1055   :  { %v554_v39 = vor.u32 1.1754944e-38, %v553_v37  ;;  %vm552_vm1 = vcmp.eq.f32.partialorder %v551_v5, 8.507059e+37 }
0x1059   :  { %v3215_v32 = vpop.eup %3214 }
0x105a   :  { %v543_v33 = vmul.f32 %v3215_v32, %v541_v31  ;;  %vm548_vm14 = vweird.f32 %v3215_v32 }
0x105b   :  { %vm549_vm0 = vmor %vm547_vm15, %vm548_vm14 }
0x105c   :  { %v544_v34 = vsub.f32 1.0, %v543_v33 }
0x105e   :  { %v545_v35 = vmul.f32 %v3215_v32, %v544_v34 }
0x1060   :  { %v546_v36 = vadd.f32 %v3215_v32, %v545_v35 }
0x1062   :  { %v550_v38 = vsel %vm549_vm0, %v3215_v32, %v546_v36 }
0x1063   :  { %v555_v41 = vsel %vm552_vm1, %v554_v39, %v550_v38 }
0x1064   :  { %v568_v50 = vsub.f32 1.0, %v555_v41  ;;  %v574_v52 = vmul.f32 %v555_v41, %v509_v23 }
0x10b8   :  { %v559_v40 = vpop.permute.xlu1 %558 }
0x10b9   :  { %v561_v42 = vmul.f32 %v559_v40, %v555_v41 }
0x10bb   :  { %563 = vrot.lane.b32.xlu2 %v561_v42, %s3285_s22 }
0x1115   :  { %v564_v43 = vpop.permute.xlu2 %563 }
0x1116   :  { %v566_v44 = vadd.f32 %v3091_v27, %v564_v43 }
0x1118   :  { %3216 = vtanh.f32 %v566_v44 }
0x111e   :  { %v3217_v45 = vpop.eup %3216 }
0x111f   :  { %570 = vrot.lane.b32.xlu0 %v3217_v45, %s3286_s25 }
0x1191   :  { %v571_v51 = vpop.permute.xlu0 %570 }
0x1192   :  { %v573_v53 = vmul.f32 %v571_v51, %v568_v50  ;;  %v4386_v51 = vmov 683565275  }
0x1194   :  { %v3473_v54 = vadd.f32 %v574_v52, %v573_v53  ;;  %v4382_v53 = vmov 2475754826  }
0x1196   :  { %577 = vrot.lane.b32.xlu1 %v3473_v54, %s3286_s25 }
0x1208   :  { %v578_v56 = vpop.permute.xlu1 %577 }
0x1209   :  { %3094 = vmatmul.msk.f32.vlgmr.msra.gmra.mxu0 %vm51_vm4, %v578_v56 }
0x120a   :  { %1414 = vmatpush.msra.mxu0 %v3480_v55 }
0x120c   :  { %1415 = vmatpush.msra.mxu0 %v3485_v0 }
0x120e   :  { %1416 = vmatpush.msra.mxu0 %v3491_v1 }
0x1210   :  { %1417 = vmatpush.msra.mxu0 %v3497_v2 }
0x1211   :  { %3110 = vmatmul.msk.f32.vlgmr.msrb.gmra.mxu0 %vm51_vm4, %v578_v56 }
0x1212   :  { %1418 = vmatpush.msra.mxu0 %v3503_v3 }
0x1214   :  { %1419 = vmatpush.msra.mxu0 %v3517_v57 }
0x1216   :  { %1420 = vmatpush.msra.mxu0 %v3524_v58 }
0x1218   :  { %1421 = vmatpush.msra.mxu0 %v3531_v59 }
0x121a   :  { %2234 = vmatpush.msrb.mxu0 %v3538_v60 }
0x121c   :  { %2235 = vmatpush.msrb.mxu0 %v3543_v61 }
0x121e   :  { %2236 = vmatpush.msrb.mxu0 %v3550_v62 }
0x1220   :  { %2237 = vmatpush.msrb.mxu0 %v3558_v63 }
0x1222   :  { %2238 = vmatpush.msrb.mxu0 %v3566_v4 }
0x1224   :  { %2239 = vmatpush.msrb.mxu0 %v3585_v11 }
0x1226   :  { %2240 = vmatpush.msrb.mxu0 %v3592_v12 }
0x1228   :  { %2241 = vmatpush.msrb.mxu0 %v3600_v13 }
0x1286   :  { %v598_v7 = vpop.f32.mrf.mxu0 }
0x1287   :  { %v599_v8 = vadd.f32 %v3578_v6, %v598_v7 }
0x1289   :  { %vm601_vm2 = vcmp.ge.f32.partialorder %v599_v8, 0.0  ;;  %v602_v9 = vmul.f32 0.01, %v599_v8 }
0x128b   :  { %v603_v10 = vsel %vm601_vm2, %v599_v8, %v602_v9  ;;  %v4390_v8 = vmov 2131351028  }
0x128c   :  { %3095 = vmatmul.msk.f32.vlgmr.msra.gmra.mxu1 %vm604_vm3, %v603_v10 }
0x1309   :  { %v625_v15 = vpop.f32.mrf.mxu1 }
0x130a   :  { %v626_v16 = vadd.f32 %v3609_v14, %v625_v15  ;;  %v4396_v15 = vmov 2102212464  }
0x130c   :  { %vm628_vm5 = vcmp.ge.f32.partialorder %v626_v16, 0.0  ;;  %v629_v17 = vmul.f32 0.01, %v626_v16 }
0x130e   :  { %v630_v18 = vsel %vm628_vm5, %v626_v16, %v629_v17 }
0x130f   :  { %3096 = vmatmul.msk.f32.vlgmr.msra.gmra.mxu2 %vm604_vm3, %v630_v18  ;;  %v4392_v18 = vmov 920167782  }
0x1392   :  { %v651_v20 = vpop.f32.mrf.mxu2 }
0x1393   :  { %v3619_v21 = vadd.f32 %v3616_v19, %v651_v20 }
0x1395   :  { %4401 = vst [vmem:[#allocation7_spill] sm:$0xff] %v3619_v21  ;;  %v3622_v22 = vmul.f32 3.1415927, %v3619_v21  ;;  %v3625_v23 = vmul.f32 6.2831855, %v3619_v21  ;;  %v3293_v21 = vmov 0  }
0x1397   :  { %v658_v24 = vand.u32 2139095040, %v3622_v22  ;;  %v968_v25 = vand.u32 2139095040, %v3625_v23  ;;  %v4385_v26 = vand.u32 2147483647, %v3625_v23  ;;  %v4384_v27 = vand.u32 2147483647, %v3622_v22 }
0x1399   :  { %v659_v28 = vshrl.u32 %v658_v24, 23  ;;  %v969_v29 = vshrl.u32 %v968_v25, 23  ;;  %v972_v30 = vand.u32 8388607, %v4385_v26  ;;  %v662_v34 = vand.u32 8388607, %v4384_v27 }
0x139a   :  { %v4388_v25 = vmov 1326507024  }
0x139b   :  { %v3097_v31 = vadd.s32 4294967169, %v659_v28  ;;  %v3103_v32 = vadd.s32 4294967169, %v969_v29  ;;  %v973_v33 = vor.u32 8388608, %v972_v30  ;;  %v663_v5 = vor.u32 8388608, %v662_v34 }
0x139d   :  { %v665_v35 = vadd.s32 1, %v3097_v31  ;;  %v975_v36 = vadd.s32 1, %v3103_v32  ;;  %v3635_v37 = vshll.u32 %v973_v33, 8  ;;  %v3640_v44 = vshll.u32 %v663_v5, 8 }
0x139f   :  { %vm666_vm6 = vcmp.gt.s32.totalorder %v665_v35, 0  ;;  %vm976_vm7 = vcmp.gt.s32.totalorder %v975_v36, 0  ;;  %v1014_v43 = vand.u32 65535, %v3635_v37  ;;  %v1015_v32 = vshrl.u32 %v3635_v37, 16 }
0x13a0   :  { %v667_v38 = vsel %vm666_vm6, %v665_v35, 0  ;;  %v977_v39 = vsel %vm976_vm7, %v975_v36, 0 }
0x13a1   :  { %v3637_v40 = vand.u32 31, %v667_v38  ;;  %v979_v41 = vand.u32 31, %v977_v39  ;;  %v3645_v50 = vshrl.u32 %v977_v39, 5  ;;  %v3658_v33 = vshrl.u32 %v667_v38, 5 }
0x13a3   :  { %v980_v42 = vsub.s32 32, %v979_v41  ;;  %v3643_v45 = vsub.s32 32, %v3637_v40  ;;  %v982_v52 = vshll.u32 %v4386_v51, %v979_v41  ;;  %v985_v56 = vshll.u32 %v4382_v53, %v979_v41 }
0x13a4   :  { %v988_v10 = vshll.u32 %v4390_v8, %v979_v41  ;;  %v991_v17 = vshll.u32 %v4396_v15, %v979_v41  ;;  %v994_v24 = vshll.u32 %v4392_v18, %v979_v41  ;;  %vm997_vm8 = vcmp.lt.s32.totalorder %v3645_v50, 1 }
0x13a5   :  { %v983_v7 = vshrl.u32 %v4382_v53, %v980_v42  ;;  %v986_v9 = vshrl.u32 %v4390_v8, %v980_v42  ;;  %v989_v16 = vshrl.u32 %v4396_v15, %v980_v42  ;;  %v992_v20 = vshrl.u32 %v4392_v18, %v980_v42 }
0x13a6   :  { %v995_v28 = vshrl.u32 %v4388_v25, %v980_v42  ;;  %v981_v36 = vshrl.u32 %v4386_v51, %v980_v42  ;;  %vm1000_vm9 = vcmp.lt.s32.totalorder %v3645_v50, 4  ;;  %vm999_vm10 = vcmp.lt.s32.totalorder %v3645_v50, 3 }
0x13a7   :  { %v984_v29 = vor.u32 %v983_v7, %v982_v52  ;;  %v987_v30 = vor.u32 %v986_v9, %v985_v56  ;;  %v990_v31 = vor.u32 %v989_v16, %v988_v10  ;;  %v993_v34 = vor.u32 %v992_v20, %v991_v17 }
0x13a8   :  { %v996_v35 = vor.u32 %v995_v28, %v994_v24  ;;  %v673_v56 = vshrl.u32 %v4382_v53, %v3643_v45  ;;  %vm998_vm11 = vcmp.lt.s32.totalorder %v3645_v50, 2  ;;  %v672_v17 = vshll.u32 %v4386_v51, %v3637_v40 }
0x13a9   :  { %v1005_v5 = vsel %vm997_vm8, %v984_v29, %v987_v30  ;;  %v1009_v39 = vsel %vm997_vm8, %v987_v30, %v990_v31  ;;  %v1006_v41 = vsel %vm1000_vm9, %v993_v34, 920167782  ;;  %v1002_v38 = vsel %vm1000_vm9, %v990_v31, 2102212464 }
0x13aa   :  { %v1010_v52 = vsel %vm1000_vm9, %v996_v35, 1326507024  ;;  %v1007_v7 = vsel %vm999_vm10, %v990_v31, %v1006_v41  ;;  %v3671_v9 = vsel %vm997_vm8, %v981_v36, %v984_v29  ;;  %v1003_v31 = vsel %vm999_vm10, %v987_v30, %v1002_v38 }
0x13ab   :  { %v1011_v42 = vsel %vm999_vm10, %v993_v34, %v1010_v52  ;;  %v1008_v10 = vsel %vm998_vm11, %v1005_v5, %v1007_v7  ;;  %v3681_v41 = vor.u32 %v673_v56, %v672_v17  ;;  %v675_v29 = vshll.u32 %v4382_v53, %v3637_v40 }
0x13ac   :  { %v1012_v16 = vsel %vm998_vm11, %v1009_v39, %v1011_v42  ;;  %v1038_v28 = vand.u32 65535, %v1008_v10  ;;  %v1039_v35 = vshrl.u32 %v1008_v10, 16  ;;  %v676_v34 = vshrl.u32 %v4390_v8, %v3643_v45 }
0x13ad   :  { %v1016_v20 = vand.u32 65535, %v1012_v16  ;;  %v1017_v24 = vshrl.u32 %v1012_v16, 16  ;;  %v678_v39 = vshll.u32 %v4390_v8, %v3637_v40  ;;  %v679_v52 = vshrl.u32 %v4396_v15, %v3643_v45 }
0x13ae   :  { %v1041_v42 = vmul.u32 %v1039_v35, %v1014_v43  ;;  %v1042_v10 = vmul.u32 %v1038_v28, %v1015_v32  ;;  %v681_v30 = vshll.u32 %v4396_v15, %v3637_v40  ;;  %v1040_v16 = vmul.u32 %v1038_v28, %v1014_v43 }
0x13af   :  { %v1019_v36 = vmul.u32 %v1017_v24, %v1014_v43  ;;  %v1020_v5 = vmul.u32 %v1016_v20, %v1015_v32  ;;  %v1018_v7 = vmul.u32 %v1016_v20, %v1014_v43  ;;  %v1021_v56 = vmul.u32 %v1017_v24, %v1015_v32 }
0x13b0   :  { %v1043_v17 = vmul.u32 %v1039_v35, %v1015_v32  ;;  %v1044_v51 = vshll.u32 %v1041_v42, 16  ;;  %v1046_v8 = vshll.u32 %v1042_v10, 16  ;;  %v3693_v18 = vor.u32 %v676_v34, %v675_v29 }
0x13b1   :  { %v1022_v38 = vshll.u32 %v1019_v36, 16  ;;  %v1023_v53 = vshrl.u32 %v1019_v36, 16  ;;  %v1024_v27 = vshll.u32 %v1020_v5, 16  ;;  %v1025_v26 = vshrl.u32 %v1020_v5, 16 }
0x13b2   :  { %vm1048_vm13 = vc.u32 %v1040_v16, %v1044_v51  ;;  %v1050_v19 = vadd.s32 %v1044_v51, %v1040_v16  ;;  %v4402_v15 = vmov 920167782   ;;  %v3699_v32 = vor.u32 %v679_v52, %v678_v39 }
0x13b3   :  { %vm1026_vm12 = vc.u32 %v1018_v7, %v1022_v38  ;;  %v1028_v25 = vadd.s32 %v1022_v38, %v1018_v7  ;;  %v682_v24 = vshrl.u32 %v4402_v15, %v3643_v45  ;;  %v1049_v43 = vsel %vm1048_vm13, 1, %v3293_v21 }
0x13b4   :  { %v1027_v20 = vsel %vm1026_vm12, 1, %v3293_v21  ;;  %v1051_v35 = vadd.s32 %v1049_v43, %v1043_v17  ;;  %vm1052_vm15 = vc.u32 %v1050_v19, %v1046_v8  ;;  %v684_v29 = vshll.u32 %v4402_v15, %v3637_v40 }
0x13b5   :  { %v1029_v14 = vadd.s32 %v1027_v20, %v1021_v56  ;;  %vm1030_vm14 = vc.u32 %v1028_v25, %v1024_v27  ;;  %v1053_v36 = vsel %vm1052_vm15, 1, %v3293_v21  ;;  %v683_v51 = vor.u32 %v682_v24, %v681_v30 }
0x13b6   :  { %v1031_v28 = vsel %vm1030_vm14, 1, %v3293_v21  ;;  %v4403_v5 = vmov 1326507024   ;;  %v1045_v56 = vshrl.u32 %v1041_v42, 16  ;;  %v1047_v27 = vshrl.u32 %v1042_v10, 16 }
0x13b7   :  { %v1033_v34 = vadd.s32 %v1031_v28, %v1029_v14  ;;  %v685_v7 = vshrl.u32 %v4403_v5, %v3643_v45  ;;  %v3707_v25 = vadd.s32 %v1050_v19, %v1046_v8  ;;  %v1055_v39 = vadd.s32 %v1053_v36, %v1051_v35 }
0x13b8   :  { %vm687_vm0 = vcmp.lt.s32.totalorder %v3658_v33, 1  ;;  %vm690_vm1 = vcmp.lt.s32.totalorder %v3658_v33, 4  ;;  %vm689_vm2 = vcmp.lt.s32.totalorder %v3658_v33, 3  ;;  %vm688_vm5 = vcmp.lt.s32.totalorder %v3658_v33, 2 }
0x13b9   :  { %v1034_v52 = vadd.s32 %v1033_v34, %v1023_v53  ;;  %v686_v38 = vor.u32 %v685_v7, %v684_v29  ;;  %v1056_v16 = vadd.s32 %v1055_v39, %v1045_v56  ;;  %v695_v14 = vsel %vm687_vm0, %v3681_v41, %v3693_v18 }
0x13ba   :  { %v696_v40 = vsel %vm690_vm1, %v683_v51, 920167782  ;;  %v699_v8 = vsel %vm687_vm0, %v3693_v18, %v3699_v32  ;;  %v1004_v42 = vsel %vm998_vm11, %v3671_v9, %v1003_v31  ;;  %v704_v20 = vand.u32 65535, %v3640_v44 }
0x13bb   :  { %v3718_v19 = vadd.s32 %v1034_v52, %v1025_v26  ;;  %v697_v53 = vsel %vm689_vm2, %v3699_v32, %v696_v40  ;;  %v1057_v10 = vadd.s32 %v1056_v16, %v1047_v27  ;;  %v700_v30 = vsel %vm690_vm1, %v686_v38, 1326507024 }
0x13bc   :  { %v698_v26 = vsel %vm688_vm5, %v695_v14, %v697_v53  ;;  %v701_v17 = vsel %vm689_vm2, %v683_v51, %v700_v30  ;;  %v705_v9 = vshrl.u32 %v3640_v44, 16  ;;  %v1058_v28 = vmul.u32 %v3635_v37, %v1004_v42 }
0x13bd   :  { %vm1060_vm6 = vc.u32 %v3718_v19, %v3707_v25  ;;  %v728_v24 = vand.u32 65535, %v698_v26  ;;  %v1061_v43 = vadd.s32 1, %v1057_v10  ;;  %v702_v50 = vsel %vm688_vm5, %v699_v8, %v701_v17 }
0x13be   :  { %v729_v31 = vshrl.u32 %v698_v26, 16  ;;  %v706_v35 = vand.u32 65535, %v702_v50  ;;  %v707_v29 = vshrl.u32 %v702_v50, 16  ;;  %vm967_vm15 = vcmp.lt.s32.totalorder %v3625_v23, 0 }
0x13bf   :  { %v1062_v34 = vsel %vm1060_vm6, %v1061_v43, %v1057_v10  ;;  %v732_v7 = vmul.u32 %v728_v24, %v705_v9  ;;  %v730_v39 = vmul.u32 %v728_v24, %v704_v20 }
0x13c0   :  { %v731_v36 = vmul.u32 %v729_v31, %v704_v20  ;;  %v1063_v56 = vadd.s32 %v1062_v34, %v1058_v28  ;;  %v709_v27 = vmul.u32 %v707_v29, %v704_v20  ;;  %v710_v51 = vmul.u32 %v706_v35, %v705_v9 }
0x13c1   :  { %v733_v52 = vmul.u32 %v729_v31, %v705_v9  ;;  %v708_v14 = vmul.u32 %v706_v35, %v704_v20  ;;  %v711_v40 = vmul.u32 %v707_v29, %v705_v9  ;;  %v736_v30 = vshll.u32 %v732_v7, 16 }
0x13c2   :  { %v734_v38 = vshll.u32 %v731_v36, 16  ;;  %v1064_v16 = vadd.s32 536870912, %v1063_v56  ;;  %v712_v53 = vshll.u32 %v709_v27, 16  ;;  %v714_v8 = vshll.u32 %v710_v51, 16 }
0x13c3   :  { %v692_v20 = vsel %vm690_vm1, %v3699_v32, 2102212464  ;;  %v4404_v35 = vmov 683565275  }
0x13c4   :  { %vm738_vm7 = vc.u32 %v730_v39, %v734_v38  ;;  %v740_v26 = vadd.s32 %v734_v38, %v730_v39  ;;  %v3744_v37 = vshrl.u32 %v1064_v16, 30  ;;  %vm716_vm8 = vc.u32 %v708_v14, %v712_v53 }
0x13c5   :  { %v718_v42 = vadd.s32 %v712_v53, %v708_v14  ;;  %v739_v10 = vsel %vm738_vm7, 1, %v3293_v21  ;;  %v717_v17 = vsel %vm716_vm8, 1, %v3293_v21  ;;  %v671_v29 = vshrl.u32 %v4404_v35, %v3643_v45 }
0x13c6   :  { %v741_v43 = vadd.s32 %v739_v10, %v733_v52  ;;  %vm742_vm9 = vc.u32 %v740_v26, %v736_v30  ;;  %v1066_v24 = vshll.u32 %v3744_v37, 30  ;;  %v719_v50 = vadd.s32 %v717_v17, %v711_v40 }
0x13c7   :  { %vm720_vm10 = vc.u32 %v718_v42, %v714_v8  ;;  %v743_v31 = vsel %vm742_vm9, 1, %v3293_v21  ;;  %v713_v52 = vshrl.u32 %v709_v27, 16  ;;  %v735_v38 = vshrl.u32 %v731_v36, 16 }
0x13c8   :  { %v721_v9 = vsel %vm720_vm10, 1, %v3293_v21  ;;  %v1067_v28 = vsub.s32 %v1063_v56, %v1066_v24  ;;  %v745_v39 = vadd.s32 %v743_v31, %v741_v43  ;;  %v691_v14 = vsel %vm687_vm0, %v671_v29, %v3681_v41 }
0x13c9   :  { %v723_v34 = vadd.s32 %v721_v9, %v719_v50  ;;  %v693_v32 = vsel %vm689_vm2, %v3693_v18, %v692_v20  ;;  %v715_v40 = vshrl.u32 %v710_v51, 16  ;;  %v737_v56 = vshrl.u32 %v732_v7, 16 }
0x13ca   :  { %vm1068_vm11 = vcmp.lt.s32.totalorder %v1067_v28, 0  ;;  %v1069_v16 = vsub.s32 0, %v1067_v28  ;;  %v746_v8 = vadd.s32 %v745_v39, %v735_v38  ;;  %v694_v36 = vsel %vm688_vm5, %v691_v14, %v693_v32 }
0x13cb   :  { %v724_v53 = vadd.s32 %v723_v34, %v713_v52  ;;  %v744_v27 = vadd.s32 %v740_v26, %v736_v30  ;;  %v748_v41 = vmul.u32 %v3640_v44, %v694_v36  ;;  %v1059_v7 = vadd.s32 %v3707_v25, %v3718_v19 }
0x13cc   :  { %v1070_v42 = vsel %vm1068_vm11, %v1069_v16, %v1067_v28  ;;  %v747_v17 = vadd.s32 %v746_v8, %v737_v56  ;;  %vm657_vm2 = vcmp.lt.s32.totalorder %v3622_v22, 0 }
0x13cd   :  { %v1071_v45 = vclz %v1070_v42  ;;  %v725_v10 = vadd.s32 %v724_v53, %v715_v40  ;;  %v4405_v53 = vand.u32 2147483647, %v3625_v23  ;;  %v1089_v42 = vsub.s32 4, %v3744_v37 }
0x13ce   :  { %v751_v24 = vadd.s32 1, %v747_v17 }
0x13cf   :  { %v3104_v43 = vadd.s32 4294967294, %v1071_v45  ;;  %vm750_vm12 = vc.u32 %v725_v10, %v744_v27  ;;  %vm3773_vm0 = vcmp.le.f32.partialorder %v4405_v53, 0.7853982 }
0x13d0   :  { %v752_v18 = vsel %vm750_vm12, %v751_v24, %v747_v17  ;;  %vm1108_vm12 = vweird.f32 %v3625_v23 }
0x13d1   :  { %vm3105_vm13 = vcmp.lt.s32.totalorder %v3104_v43, 0  ;;  %v753_v9 = vadd.s32 %v752_v18, %v748_v41  ;;  %v749_v18 = vadd.s32 %v744_v27, %v725_v10 }
0x13d2   :  { %v1074_v50 = vsel %vm3105_vm13, 0, %v3104_v43  ;;  %v1090_v43 = vsel %vm967_vm15, %v1089_v42, %v3744_v37 }
0x13d3   :  { %v1075_v51 = vsub.s32 32, %v1074_v50  ;;  %v1079_v20 = vsub.s32 4294967266, %v1074_v50  ;;  %v1076_v31 = vshll.u32 %v1067_v28, %v1074_v50  ;;  %v754_v33 = vadd.s32 536870912, %v753_v9 }
0x13d5   :  { %v1077_v29 = vshrl.u32 %v1059_v7, %v1075_v51  ;;  %v1080_v34 = vadd.s32 127, %v1079_v20  ;;  %v3767_v26 = vshrl.u32 %v754_v33, 30 }
0x13d7   :  { %v1078_v39 = vor.u32 %v1077_v29, %v1076_v31  ;;  %v1081_v30 = vshll.u32 %v1080_v34, 23  ;;  %v756_v38 = vshll.u32 %v3767_v26, 30  ;;  %v1092_v31 = vsel %vm3773_vm0, 0, %v1090_v43 }
0x13d8   :  { %v1264_v27 = vand.u32 3, %v1092_v31 }
0x13d9   :  { %v1082_v52 = vor.u32 4788187, %v1081_v30  ;;  %v1085_v16 = vcvt.s32.f32 %v1078_v39  ;;  %v757_v14 = vsub.s32 %v753_v9, %v756_v38 }
0x13da   :  { %vm1265_vm5 = vcmp.lt.s32.totalorder %v1264_v27, 2  ;;  %vm1266_vm6 = vcmp.eq.s32.totalorder %v1264_v27, 0  ;;  %vm1269_vm8 = vcmp.eq.s32.totalorder %v1264_v27, 2 }
0x13db   :  { %v1083_v44 = vand.u32 2147483647, %v1082_v52  ;;  %vm758_vm14 = vcmp.lt.s32.totalorder %v757_v14, 0  ;;  %v759_v25 = vsub.s32 0, %v757_v14 }
0x13dd   :  { %v1086_v32 = vmul.f32 %v1085_v16, %v1083_v44  ;;  %v760_v40 = vsel %vm758_vm14, %v759_v25, %v757_v14  ;;  %v1109_v16 = vadd.s32 3, %v1092_v31 }
0x13de   :  { %v761_v28 = vclz %v760_v40 }
0x13df   :  { %v1087_v19 = vxor.u32 2147483648, %v1086_v32  ;;  %v1110_v56 = vand.u32 3, %v1109_v16 }
0x13e0   :  { %v3098_v17 = vadd.s32 4294967294, %v761_v28 }
0x13e1   :  { %v1088_v8 = vsel %vm967_vm15, %v1087_v19, %v1086_v32  ;;  %vm1111_vm9 = vcmp.lt.s32.totalorder %v1110_v56, 2  ;;  %vm1112_vm10 = vcmp.eq.s32.totalorder %v1110_v56, 0  ;;  %vm1115_vm11 = vcmp.eq.s32.totalorder %v1110_v56, 2 }
0x13e2   :  { %v1091_v45 = vsel %vm3773_vm0, %v3625_v23, %v1088_v8  ;;  %vm3099_vm1 = vcmp.lt.s32.totalorder %v3098_v17, 0 }
0x13e3   :  { %v1093_v36 = vmul.f32 %v1091_v45, %v1091_v45  ;;  %v764_v50 = vsel %vm3099_vm1, 0, %v3098_v17  ;;  %v4408_v17 = vand.u32 2147483647, %v3622_v22 }
0x13e4   :  { %v765_v7 = vsub.s32 32, %v764_v50  ;;  %v769_v51 = vsub.s32 4294967266, %v764_v50  ;;  %v766_v29 = vshll.u32 %v757_v14, %v764_v50 }
0x13e5   :  { %v1094_v24 = vmul.f32 -0.001358992, %v1093_v36  ;;  %v1101_v41 = vmul.f32 -0.00019511016, %v1093_v36  ;;  %vm3787_vm7 = vcmp.le.f32.partialorder %v4408_v17, 0.7853982 }
0x13e6   :  { %v767_v34 = vshrl.u32 %v749_v18, %v765_v7  ;;  %v770_v33 = vadd.s32 127, %v769_v51 }
0x13e7   :  { %v1095_v20 = vadd.f32 0.041655596, %v1094_v24  ;;  %v1102_v9 = vadd.f32 0.008332121, %v1101_v41  ;;  %v779_v41 = vsub.s32 4, %v3767_v26 }
0x13e8   :  { %v768_v52 = vor.u32 %v767_v34, %v766_v29  ;;  %v771_v38 = vshll.u32 %v770_v33, 23 }
0x13e9   :  { %v1096_v39 = vmul.f32 %v1095_v20, %v1093_v36  ;;  %v1103_v30 = vmul.f32 %v1102_v9, %v1093_v36 }
0x13ea   :  { %v772_v32 = vor.u32 4788187, %v771_v38  ;;  %v775_v40 = vcvt.s32.f32 %v768_v52 }
0x13eb   :  { %v1097_v44 = vadd.f32 -0.4999988, %v1096_v39  ;;  %v1104_v37 = vadd.f32 -0.16666654, %v1103_v30  ;;  %v780_v39 = vsel %vm657_vm2, %v779_v41, %v3767_v26 }
0x13ec   :  { %v773_v19 = vand.u32 2147483647, %v772_v32  ;;  %v782_v23 = vsel %vm3787_vm7, 0, %v780_v39  ;;  %v3857_v39 = vld [vmem:[%s4379_s1 + $0x28] ss:$0 sm:$0xff] }
0x13ed   :  { %v1098_v25 = vmul.f32 %v1097_v44, %v1093_v36  ;;  %v1105_v10 = vmul.f32 %v1104_v37, %v1093_v36  ;;  %v799_v32 = vadd.s32 3, %v782_v23 }
0x13ee   :  { %v776_v8 = vmul.f32 %v775_v40, %v773_v19 }
0x13ef   :  { %v1099_v28 = vadd.f32 1.0, %v1098_v25  ;;  %v1106_v53 = vadd.f32 1.0, %v1105_v10  ;;  %v800_v19 = vand.u32 3, %v799_v32 }
0x13f0   :  { %v777_v36 = vxor.u32 2147483648, %v776_v8 }
0x13f1   :  { %v1107_v14 = vmul.f32 %v1106_v53, %v1091_v45  ;;  %v1116_v42 = vxor.u32 2147483648, %v1099_v28  ;;  %v954_v53 = vand.u32 3, %v782_v23  ;;  %vm805_vm13 = vcmp.eq.s32.totalorder %v800_v19, 2 }
0x13f2   :  { %v778_v45 = vsel %vm657_vm2, %v777_v36, %v776_v8  ;;  %vm802_vm14 = vcmp.eq.s32.totalorder %v800_v19, 0  ;;  %vm801_vm2 = vcmp.lt.s32.totalorder %v800_v19, 2 }
0x13f3   :  { %v1113_v24 = vxor.u32 2147483648, %v1107_v14  ;;  %v1271_v50 = vsel %vm1269_vm8, %v1116_v42, %v1107_v14  ;;  %v1117_v51 = vsel %vm1115_vm11, %v1116_v42, %v1107_v14  ;;  %v781_v20 = vsel %vm3787_vm7, %v3622_v22, %v778_v45 }
0x13f4   :  { %v783_v29 = vmul.f32 %v781_v20, %v781_v20  ;;  %vm955_vm15 = vcmp.lt.s32.totalorder %v954_v53, 2  ;;  %vm956_vm0 = vcmp.eq.s32.totalorder %v954_v53, 0  ;;  %vm959_vm1 = vcmp.eq.s32.totalorder %v954_v53, 2 }
0x13f5   :  { %v1268_v18 = vsel %vm1266_vm6, %v1099_v28, %v1113_v24  ;;  %v1114_v7 = vsel %vm1112_vm10, %v1099_v28, %v1113_v24  ;;  %vm1286_vm6 = vcmask 15360   ;;  %vm1288_vm7 = vcmask 31744  }
0x13f6   :  { %v1272_v9 = vsel %vm1265_vm5, %v1268_v18, %v1271_v50  ;;  %v1118_v31 = vsel %vm1111_vm9, %v1114_v7, %v1117_v51  ;;  %v784_v30 = vmul.f32 -0.001358992, %v783_v29  ;;  %v791_v52 = vmul.f32 -0.00019511016, %v783_v29  ;;  %v1333_v18 = vpop.f32.mrf.mxu0  ;;  %v3811_v7 = vld [vmem:[%s4379_s1 + $0x29] ss:$0 sm:$0xff] }
0x13f7   :  { %v1273_v34 = vsel %vm1108_vm12, nan, %v1272_v9  ;;  %v1119_v33 = vsel %vm1108_vm12, nan, %v1118_v31  ;;  %vm798_vm5 = vweird.f32 %v3622_v22  ;;  %v1334_v51 = vadd.f32 %v3811_v7, %v1333_v18  ;;  %v15_v22 = vld [vmem:[%s4379_s1] sm:$0xff] }
0x13f8   :  { %1283 = vrot.lane.b32.xlu1 %v1273_v34, %s3294_s7  ;;  %1279 = vrot.lane.b32.xlu0 %v1119_v33, %s3295_s8  ;;  %v785_v38 = vadd.f32 0.041655596, %v784_v30  ;;  %v792_v44 = vadd.f32 0.008332121, %v791_v52  ;;  %vm1290_vm8 = vcmask 48128   ;;  %vm1292_vm9 = vcmask 64512  }
0x13f9   :  { %1311 = vmatpush.msra.mxu3 %v15_v22  ;;  %2105 = vmatpush.msrb.mxu2 %v15_v22  ;;  %v3845_v34 = vld [vmem:[%s4379_s1 + $0x10] sm:$0xff]  ;;  %v3851_v33 = vld [vmem:[%s4379_s1 + $0x8] sm:$0xff] }
0x13fa   :  { %v786_v37 = vmul.f32 %v785_v38, %v783_v29  ;;  %v793_v16 = vmul.f32 %v792_v44, %v783_v29  ;;  %2899 = vmatpush.msra.mxu1 %v15_v22 }
0x13fb   :  { %1392 = vmatpush.msrb.mxu3 %v3448_v46  ;;  %2186 = vmatpush.msra.mxu2 %v3448_v46 }
0x13fc   :  { %v787_v25 = vadd.f32 -0.4999988, %v786_v37  ;;  %v794_v10 = vadd.f32 -0.16666654, %v793_v16 }
0x13fd   :  { %1393 = vmatpush.msrb.mxu3 %v3453_v47  ;;  %2187 = vmatpush.msra.mxu2 %v3453_v47 }
0x13fe   :  { %v788_v27 = vmul.f32 %v787_v25, %v783_v29  ;;  %v795_v26 = vmul.f32 %v794_v10, %v783_v29 }
0x13ff   :  { %1394 = vmatpush.msrb.mxu3 %v3459_v48  ;;  %2188 = vmatpush.msra.mxu2 %v3459_v48  ;;  %v3833_v48 = vld [vmem:[%s4379_s1 + $0x20] sm:$0xff] }
0x1400   :  { %v789_v40 = vadd.f32 1.0, %v788_v27  ;;  %v796_v28 = vadd.f32 1.0, %v795_v26 }
0x1401   :  { %1395 = vmatpush.msrb.mxu3 %v3465_v49  ;;  %2189 = vmatpush.msra.mxu2 %v3465_v49  ;;  %v3839_v49 = vld [vmem:[%s4379_s1 + $0x18] sm:$0xff] }
0x1402   :  { %v797_v56 = vmul.f32 %v796_v28, %v781_v20  ;;  %v806_v8 = vxor.u32 2147483648, %v789_v40 }
0x1404   :  { %v803_v14 = vxor.u32 2147483648, %v797_v56  ;;  %v807_v42 = vsel %vm805_vm13, %v806_v8, %v797_v56  ;;  %v961_v43 = vsel %vm959_vm1, %v806_v8, %v797_v56 }
0x1406   :  { %v958_v17 = vsel %vm956_vm0, %v789_v40, %v803_v14  ;;  %v804_v36 = vsel %vm802_vm14, %v789_v40, %v803_v14 }
0x1407   :  { %v962_v24 = vsel %vm955_vm15, %v958_v17, %v961_v43  ;;  %v808_v41 = vsel %vm801_vm2, %v804_v36, %v807_v42 }
0x1408   :  { %v963_v50 = vsel %vm798_vm5, nan, %v962_v24  ;;  %v809_v45 = vsel %vm798_vm5, nan, %v808_v41 }
0x1409   :  { %1275 = vrot.lane.b32.xlu2 %v963_v50, %s3296_s9 }
0x1411   :  { %1357 = vrot.lane.b32.xlu2 %v1334_v51, %s3285_s22 }
0x1463   :  { %v1276_v20 = vpop.permute.xlu2 %1275 }
0x1464   :  { %v1287_v9 = vsel %vm1286_vm6, %v809_v45, %v1276_v20 }
0x146a   :  { %v1284_v46 = vpop.permute.xlu1 %1283  ;;  %v1280_v31 = vpop.permute.xlu0 %1279 }
0x146b   :  { %v1289_v29 = vsel %vm1288_vm7, %v1287_v9, %v1280_v31  ;;  %v1358_v53 = vpop.permute.xlu2 %1357 }
0x146c   :  { %v1291_v47 = vsel %vm1290_vm8, %v1289_v29, %v1284_v46 }
0x146d   :  { %3109 = vmatmul.msk.f32.vlgmr.msra.gmra.mxu3 %vm1292_vm9, %v1291_v47 }
0x146e   :  { %2122 = vmatpush.msra.mxu3 %v3833_v48 }
0x1470   :  { %2123 = vmatpush.msra.mxu3 %v3839_v49 }
0x1472   :  { %2124 = vmatpush.msra.mxu3 %v3845_v34 }
0x1474   :  { %2125 = vmatpush.msra.mxu3 %v3851_v33 }
0x14f0   :  { %v1313_v30 = vpop.f32.mrf.mxu3 }
0x14f1   :  { %v1314_v52 = vadd.f32 %v3857_v39, %v1313_v30 }
0x14f3   :  { %v1336_v23 = vadd.f32 %v1334_v51, %v1314_v52 }
0x14f5   :  { %v3111_v38 = vmul.f32 -1.442695, %v1336_v23 }
0x14f7   :  { %3218 = vpow2.f32 %v3111_v38 }
0x14fd   :  { %v3219_v44 = vpop.eup %3218 }
0x14fe   :  { %v1340_v37 = vadd.f32 1.0, %v3219_v44 }
0x1500   :  { %3220 = vrcp.f32 %v1340_v37  ;;  %v1352_v10 = vand.u32 2147483648, %v1340_v37  ;;  %v1350_v26 = vand.u32 2147483647, %v1340_v37  ;;  %vm1346_vm11 = vweird.f32 %v1340_v37 }
0x1502   :  { %v1353_v40 = vor.u32 1.1754944e-38, %v1352_v10  ;;  %vm1351_vm13 = vcmp.eq.f32.partialorder %v1350_v26, 8.507059e+37 }
0x1506   :  { %v3221_v16 = vpop.eup %3220 }
0x1507   :  { %v1342_v32 = vmul.f32 %v3221_v16, %v1340_v37  ;;  %vm1347_vm10 = vweird.f32 %v3221_v16 }
0x1508   :  { %vm1348_vm12 = vmor %vm1346_vm11, %vm1347_vm10 }
0x1509   :  { %v1343_v25 = vsub.f32 1.0, %v1342_v32 }
0x150b   :  { %v1344_v27 = vmul.f32 %v3221_v16, %v1343_v25 }
0x150d   :  { %v1345_v19 = vadd.f32 %v3221_v16, %v1344_v27 }
0x150f   :  { %v1349_v28 = vsel %vm1348_vm12, %v3221_v16, %v1345_v19 }
0x1510   :  { %v1354_v56 = vsel %vm1351_vm13, %v1353_v40, %v1349_v28 }
0x1511   :  { %v1360_v8 = vmul.f32 %v1358_v53, %v1354_v56  ;;  %v1367_v43 = vsub.f32 1.0, %v1354_v56  ;;  %v1373_v24 = vmul.f32 %v1354_v56, %v3473_v54  ;;  %v4413_v56 = vmov 2475754826  }
0x1513   :  { %1362 = vrot.lane.b32.xlu0 %v1360_v8, %s3285_s22 }
0x1585   :  { %v1363_v14 = vpop.permute.xlu0 %1362 }
0x1586   :  { %v1365_v42 = vadd.f32 %v1363_v14, %v1314_v52 }
0x1588   :  { %3222 = vtanh.f32 %v1365_v42  ;;  %v4414_v42 = vmov 2131351028  }
0x158e   :  { %v3223_v17 = vpop.eup %3222 }
0x158f   :  { %1369 = vrot.lane.b32.xlu1 %v3223_v17, %s3286_s25 }
0x1601   :  { %v1370_v36 = vpop.permute.xlu1 %1369 }
0x1602   :  { %v1372_v41 = vmul.f32 %v1370_v36, %v1367_v43  ;;  %v4415_v36 = vmov 2102212464  }
0x1604   :  { %v3863_v50 = vadd.f32 %v1373_v24, %v1372_v41 }
0x1606   :  { %1376 = vrot.lane.b32.xlu2 %v3863_v50, %s3286_s25 }
0x1660   :  { %v1377_v45 = vpop.permute.xlu2 %1376 }
0x1661   :  { %3112 = vmatmul.msk.f32.vlgmr.msrb.gmra.mxu3 %vm51_vm4, %v1377_v45 }
0x1662   :  { %2208 = vmatpush.msrb.mxu3 %v3480_v55 }
0x1664   :  { %2209 = vmatpush.msrb.mxu3 %v3485_v0 }
0x1666   :  { %2210 = vmatpush.msrb.mxu3 %v3491_v1 }
0x1668   :  { %2211 = vmatpush.msrb.mxu3 %v3497_v2 }
0x1669   :  { %3128 = vmatmul.msk.f32.vlgmr.msra.gmra.mxu3 %vm51_vm4, %v1377_v45 }
0x166a   :  { %2212 = vmatpush.msrb.mxu3 %v3503_v3  ;;  %v4411_v3 = vld [vmem:[#allocation5_spill] sm:$0xff] }
0x166c   :  { %2213 = vmatpush.msrb.mxu3 %v3517_v57 }
0x166e   :  { %2214 = vmatpush.msrb.mxu3 %v3524_v58 }
0x1670   :  { %2215 = vmatpush.msrb.mxu3 %v3531_v59 }
0x1672   :  { %3028 = vmatpush.msra.mxu3 %v3538_v60  ;;  %v3241_v60 = vld [vmem:[%s4380_s2 + $0x18] sm:$0xff] }
0x1674   :  { %3029 = vmatpush.msra.mxu3 %v3543_v61  ;;  %v3242_v61 = vld [vmem:[%s4380_s2 + $0x10] sm:$0xff] }
0x1676   :  { %3030 = vmatpush.msra.mxu3 %v3550_v62  ;;  %v3243_v62 = vld [vmem:[%s4380_s2 + $0x8] sm:$0xff] }
0x1678   :  { %3031 = vmatpush.msra.mxu3 %v3558_v63  ;;  %v3244_v63 = vld [vmem:[%s4380_s2] sm:$0xff] }
0x167a   :  { %3032 = vmatpush.msra.mxu3 %v3566_v4 }
0x167c   :  { %3033 = vmatpush.msra.mxu3 %v3585_v11 }
0x167e   :  { %3034 = vmatpush.msra.mxu3 %v3592_v12 }
0x1680   :  { %3035 = vmatpush.msra.mxu3 %v3600_v13 }
0x16e4   :  { %v1397_v54 = vpop.f32.mrf.mxu3 }
0x16e5   :  { %v1398_v55 = vadd.f32 %v3578_v6, %v1397_v54  ;;  %v4412_v6 = vld [vmem:[#allocation6_spill] sm:$0xff] }
0x16e7   :  { %vm1400_vm14 = vcmp.ge.f32.partialorder %v1398_v55, 0.0  ;;  %v1401_v0 = vmul.f32 0.01, %v1398_v55 }
0x16e9   :  { %v1402_v1 = vsel %vm1400_vm14, %v1398_v55, %v1401_v0 }
0x16ea   :  { %3113 = vmatmul.msk.f32.vlgmr.msra.gmra.mxu0 %vm604_vm3, %v1402_v1 }
0x1767   :  { %v1423_v2 = vpop.f32.mrf.mxu0 }
0x1768   :  { %v1424_v57 = vadd.f32 %v4411_v3, %v1423_v2 }
0x176a   :  { %vm1426_vm15 = vcmp.ge.f32.partialorder %v1424_v57, 0.0  ;;  %v1427_v58 = vmul.f32 0.01, %v1424_v57 }
0x176c   :  { %v1428_v59 = vsel %vm1426_vm15, %v1424_v57, %v1427_v58 }
0x176d   :  { %3114 = vmatmul.msk.f32.vlgmr.msrb.gmra.mxu1 %vm604_vm3, %v1428_v59 }
0x176e   :  { %2980 = vmatpush.msrb.mxu1 %v3241_v60 }
0x1770   :  { %2981 = vmatpush.msrb.mxu1 %v3242_v61 }
0x1772   :  { %2982 = vmatpush.msrb.mxu1 %v3243_v62 }
0x1774   :  { %2983 = vmatpush.msrb.mxu1 %v3244_v63 }
0x17ea   :  { %v1449_v4 = vpop.f32.mrf.mxu1 }
0x17eb   :  { %v3902_v11 = vadd.f32 %v4412_v6, %v1449_v4 }
0x17ed   :  { %v3905_v12 = vmul.f32 3.1415927, %v3902_v11  ;;  %v3908_v13 = vmul.f32 6.2831855, %v3902_v11 }
0x17ef   :  { %v1456_v18 = vand.u32 2139095040, %v3905_v12  ;;  %v1766_v51 = vand.u32 2139095040, %v3908_v13  ;;  %v1763_v22 = vand.u32 2147483647, %v3908_v13  ;;  %v1453_v20 = vand.u32 2147483647, %v3905_v12 }
0x17f1   :  { %v1457_v9 = vshrl.u32 %v1456_v18, 23  ;;  %v1767_v46 = vshrl.u32 %v1766_v51, 23  ;;  %v1770_v31 = vand.u32 8388607, %v1763_v22  ;;  %v1460_v52 = vand.u32 8388607, %v1453_v20 }
0x17f3   :  { %v3115_v29 = vadd.s32 4294967169, %v1457_v9  ;;  %v3121_v47 = vadd.s32 4294967169, %v1767_v46  ;;  %v1771_v30 = vor.u32 8388608, %v1770_v31  ;;  %v1461_v37 = vor.u32 8388608, %v1460_v52 }
0x17f5   :  { %v1463_v23 = vadd.s32 1, %v3115_v29  ;;  %v1773_v38 = vadd.s32 1, %v3121_v47  ;;  %v3918_v44 = vshll.u32 %v1771_v30, 8  ;;  %v3923_v19 = vshll.u32 %v1461_v37, 8 }
0x17f7   :  { %vm1464_vm0 = vcmp.gt.s32.totalorder %v1463_v23, 0  ;;  %vm1774_vm1 = vcmp.gt.s32.totalorder %v1773_v38, 0  ;;  %v1812_v26 = vand.u32 65535, %v3918_v44  ;;  %v1813_v3 = vshrl.u32 %v3918_v44, 16 }
0x17f8   :  { %v1465_v16 = vsel %vm1464_vm0, %v1463_v23, 0  ;;  %v1775_v32 = vsel %vm1774_vm1, %v1773_v38, 0 }
0x17f9   :  { %v3920_v25 = vand.u32 31, %v1465_v16  ;;  %v1777_v10 = vand.u32 31, %v1775_v32  ;;  %v3928_v28 = vshrl.u32 %v1775_v32, 5  ;;  %v3941_v57 = vshrl.u32 %v1465_v16, 5 }
0x17fb   :  { %v1778_v27 = vsub.s32 32, %v1777_v10  ;;  %v3926_v40 = vsub.s32 32, %v3920_v25  ;;  %v1780_v53 = vshll.u32 %v4404_v35, %v1777_v10  ;;  %v1783_v8 = vshll.u32 %v4413_v56, %v1777_v10 }
0x17fc   :  { %v1786_v43 = vshll.u32 %v4414_v42, %v1777_v10  ;;  %v1789_v41 = vshll.u32 %v4415_v36, %v1777_v10  ;;  %v1792_v54 = vshll.u32 %v4402_v15, %v1777_v10  ;;  %vm1795_vm2 = vcmp.lt.s32.totalorder %v3928_v28, 1 }
0x17fd   :  { %v1781_v14 = vshrl.u32 %v4413_v56, %v1778_v27  ;;  %v1784_v17 = vshrl.u32 %v4414_v42, %v1778_v27  ;;  %v1787_v24 = vshrl.u32 %v4415_v36, %v1778_v27  ;;  %v1790_v45 = vshrl.u32 %v4402_v15, %v1778_v27 }
0x17fe   :  { %v1793_v55 = vshrl.u32 %v4403_v5, %v1778_v27  ;;  %v1779_v60 = vshrl.u32 %v4404_v35, %v1778_v27  ;;  %vm1798_vm5 = vcmp.lt.s32.totalorder %v3928_v28, 4  ;;  %vm1797_vm10 = vcmp.lt.s32.totalorder %v3928_v28, 3 }
0x17ff   :  { %v1782_v0 = vor.u32 %v1781_v14, %v1780_v53  ;;  %v1785_v1 = vor.u32 %v1784_v17, %v1783_v8  ;;  %v1788_v2 = vor.u32 %v1787_v24, %v1786_v43  ;;  %v1791_v58 = vor.u32 %v1790_v45, %v1789_v41 }
0x1800   :  { %v1794_v59 = vor.u32 %v1793_v55, %v1792_v54  ;;  %v1471_v6 = vshrl.u32 %v4413_v56, %v3926_v40  ;;  %vm1796_vm11 = vcmp.lt.s32.totalorder %v3928_v28, 2  ;;  %v1470_v47 = vshll.u32 %v4404_v35, %v3920_v25 }
0x1801   :  { %v1803_v61 = vsel %vm1795_vm2, %v1782_v0, %v1785_v1  ;;  %v1807_v62 = vsel %vm1795_vm2, %v1785_v1, %v1788_v2  ;;  %v1804_v63 = vsel %vm1798_vm5, %v1791_v58, 920167782  ;;  %v1800_v18 = vsel %vm1798_vm5, %v1788_v2, 2102212464 }
0x1802   :  { %v1808_v4 = vsel %vm1798_vm5, %v1794_v59, 1326507024  ;;  %v1805_v51 = vsel %vm1797_vm10, %v1788_v2, %v1804_v63  ;;  %v3954_v46 = vsel %vm1795_vm2, %v1779_v60, %v1782_v0  ;;  %v1801_v37 = vsel %vm1797_vm10, %v1785_v1, %v1800_v18 }
0x1803   :  { %v1809_v9 = vsel %vm1797_vm10, %v1791_v58, %v1808_v4  ;;  %v1806_v31 = vsel %vm1796_vm11, %v1803_v61, %v1805_v51  ;;  %v3964_v16 = vor.u32 %v1471_v6, %v1470_v47  ;;  %v1473_v32 = vshll.u32 %v4413_v56, %v3920_v25 }
0x1804   :  { %v1810_v29 = vsel %vm1796_vm11, %v1807_v62, %v1809_v9  ;;  %v1836_v23 = vand.u32 65535, %v1806_v31  ;;  %v1837_v38 = vshrl.u32 %v1806_v31, 16  ;;  %v1474_v10 = vshrl.u32 %v4414_v42, %v3926_v40 }
0x1805   :  { %v1814_v30 = vand.u32 65535, %v1810_v29  ;;  %v1815_v52 = vshrl.u32 %v1810_v29, 16  ;;  %v1476_v8 = vshll.u32 %v4414_v42, %v3920_v25  ;;  %v1477_v14 = vshrl.u32 %v4415_v36, %v3926_v40 }
0x1806   :  { %v1839_v43 = vmul.u32 %v1837_v38, %v1812_v26  ;;  %v1840_v24 = vmul.u32 %v1836_v23, %v1813_v3  ;;  %v1479_v41 = vshll.u32 %v4415_v36, %v3920_v25  ;;  %v1838_v55 = vmul.u32 %v1836_v23, %v1812_v26 }
0x1807   :  { %v1817_v27 = vmul.u32 %v1815_v52, %v1812_v26  ;;  %v1818_v53 = vmul.u32 %v1814_v30, %v1813_v3  ;;  %v1816_v17 = vmul.u32 %v1814_v30, %v1812_v26  ;;  %v1819_v45 = vmul.u32 %v1815_v52, %v1813_v3 }
0x1808   :  { %v1841_v0 = vmul.u32 %v1837_v38, %v1813_v3  ;;  %v1842_v59 = vshll.u32 %v1839_v43, 16  ;;  %v1844_v61 = vshll.u32 %v1840_v24, 16  ;;  %v3976_v62 = vor.u32 %v1474_v10, %v1473_v32 }
0x1809   :  { %v1820_v54 = vshll.u32 %v1817_v27, 16  ;;  %v1821_v1 = vshrl.u32 %v1817_v27, 16  ;;  %v1822_v2 = vshll.u32 %v1818_v53, 16  ;;  %v1823_v58 = vshrl.u32 %v1818_v53, 16 }
0x180a   :  { %vm1846_vm13 = vc.u32 %v1838_v55, %v1842_v59  ;;  %v1848_v4 = vadd.s32 %v1842_v59, %v1838_v55  ;;  %v1480_v6 = vshrl.u32 %v4402_v15, %v3926_v40  ;;  %v3982_v3 = vor.u32 %v1477_v14, %v1476_v8 }
0x180b   :  { %vm1824_vm12 = vc.u32 %v1816_v17, %v1820_v54  ;;  %v1826_v60 = vadd.s32 %v1820_v54, %v1816_v17  ;;  %v1847_v26 = vsel %vm1846_vm13, 1, %v3293_v21  ;;  %v1482_v31 = vshll.u32 %v4402_v15, %v3920_v25 }
0x180c   :  { %v1825_v63 = vsel %vm1824_vm12, 1, %v3293_v21  ;;  %v1849_v9 = vadd.s32 %v1847_v26, %v1841_v0  ;;  %vm1850_vm15 = vc.u32 %v1848_v4, %v1844_v61  ;;  %v1481_v30 = vor.u32 %v1480_v6, %v1479_v41 }
0x180d   :  { %v1827_v18 = vadd.s32 %v1825_v63, %v1819_v45  ;;  %vm1828_vm14 = vc.u32 %v1826_v60, %v1822_v2  ;;  %v1851_v47 = vsel %vm1850_vm15, 1, %v3293_v21  ;;  %v1483_v52 = vshrl.u32 %v4403_v5, %v3926_v40 }
0x180e   :  { %v1829_v51 = vsel %vm1828_vm14, 1, %v3293_v21  ;;  %v1843_v23 = vshrl.u32 %v1839_v43, 16  ;;  %v1845_v38 = vshrl.u32 %v1840_v24, 16  ;;  %v3990_v32 = vadd.s32 %v1848_v4, %v1844_v61 }
0x180f   :  { %v1831_v29 = vadd.s32 %v1829_v51, %v1827_v18  ;;  %v1853_v10 = vadd.s32 %v1851_v47, %v1849_v9  ;;  %v1484_v53 = vor.u32 %v1483_v52, %v1482_v31  ;;  %vm1485_vm0 = vcmp.lt.s32.totalorder %v3941_v57, 1 }
0x1810   :  { %vm1488_vm1 = vcmp.lt.s32.totalorder %v3941_v57, 4  ;;  %vm1487_vm2 = vcmp.lt.s32.totalorder %v3941_v57, 3  ;;  %v1493_v25 = vsel %vm1485_vm0, %v3964_v16, %v3976_v62  ;;  %vm1486_vm5 = vcmp.lt.s32.totalorder %v3941_v57, 2 }
0x1811   :  { %v1832_v27 = vadd.s32 %v1831_v29, %v1821_v1  ;;  %v1854_v8 = vadd.s32 %v1853_v10, %v1843_v23  ;;  %v1494_v14 = vsel %vm1488_vm1, %v1481_v30, 920167782  ;;  %v1497_v24 = vsel %vm1485_vm0, %v3976_v62, %v3982_v3 }
0x1812   :  { %v1495_v43 = vsel %vm1487_vm2, %v3982_v3, %v1494_v14  ;;  %v1802_v41 = vsel %vm1796_vm11, %v3954_v46, %v1801_v37  ;;  %v1498_v55 = vsel %vm1488_vm1, %v1484_v53, 1326507024  ;;  %v1502_v1 = vand.u32 65535, %v3923_v19 }
0x1813   :  { %v4001_v17 = vadd.s32 %v1832_v27, %v1823_v58  ;;  %v1855_v45 = vadd.s32 %v1854_v8, %v1845_v38  ;;  %v1496_v54 = vsel %vm1486_vm5, %v1493_v25, %v1495_v43  ;;  %v1499_v0 = vsel %vm1487_vm2, %v1481_v30, %v1498_v55 }
0x1814   :  { %v1526_v2 = vand.u32 65535, %v1496_v54  ;;  %v1500_v28 = vsel %vm1486_vm5, %v1497_v24, %v1499_v0  ;;  %v1503_v46 = vshrl.u32 %v3923_v19, 16  ;;  %v1527_v37 = vshrl.u32 %v1496_v54, 16 }
0x1815   :  { %vm1858_vm10 = vc.u32 %v4001_v17, %v3990_v32  ;;  %v1859_v58 = vadd.s32 1, %v1855_v45  ;;  %v1856_v59 = vmul.u32 %v3918_v44, %v1802_v41  ;;  %v1504_v60 = vand.u32 65535, %v1500_v28 }
0x1816   :  { %v1505_v61 = vshrl.u32 %v1500_v28, 16  ;;  %v1529_v4 = vmul.u32 %v1527_v37, %v1502_v1  ;;  %v1530_v6 = vmul.u32 %v1526_v2, %v1503_v46  ;;  %v1528_v9 = vmul.u32 %v1526_v2, %v1502_v1 }
0x1817   :  { %v1860_v63 = vsel %vm1858_vm10, %v1859_v58, %v1855_v45  ;;  %v1508_v51 = vmul.u32 %v1504_v60, %v1503_v46  ;;  %v1531_v31 = vmul.u32 %v1527_v37, %v1503_v46  ;;  %v1506_v30 = vmul.u32 %v1504_v60, %v1502_v1 }
0x1818   :  { %v1861_v18 = vadd.s32 %v1860_v63, %v1856_v59  ;;  %v1507_v26 = vmul.u32 %v1505_v61, %v1502_v1  ;;  %v1532_v29 = vshll.u32 %v1529_v4, 16  ;;  %v1509_v52 = vmul.u32 %v1505_v61, %v1503_v46 }
0x1819   :  { %v1512_v38 = vshll.u32 %v1508_v51, 16  ;;  %v1534_v10 = vshll.u32 %v1530_v6, 16  ;;  %v1490_v41 = vsel %vm1488_vm1, %v3982_v3, 2102212464  ;;  %v1469_v0 = vshrl.u32 %v4404_v35, %v3926_v40 }
0x181a   :  { %v1862_v47 = vadd.s32 536870912, %v1861_v18  ;;  %v1510_v23 = vshll.u32 %v1507_v26, 16  ;;  %vm1536_vm11 = vc.u32 %v1528_v9, %v1532_v29  ;;  %v1538_v27 = vadd.s32 %v1532_v29, %v1528_v9 }
0x181b   :  { %v1537_v8 = vsel %vm1536_vm11, 1, %v3293_v21  ;;  %v1511_v58 = vshrl.u32 %v1507_v26, 16  ;;  %v1533_v28 = vshrl.u32 %v1529_v4, 16  ;;  %v1489_v37 = vsel %vm1485_vm0, %v1469_v0, %v3964_v16 }
0x181c   :  { %v4027_v44 = vshrl.u32 %v1862_v47, 30  ;;  %vm1514_vm12 = vc.u32 %v1506_v30, %v1510_v23  ;;  %v1516_v53 = vadd.s32 %v1510_v23, %v1506_v30  ;;  %v1539_v14 = vadd.s32 %v1537_v8, %v1531_v31 }
0x181d   :  { %v1515_v25 = vsel %vm1514_vm12, 1, %v3293_v21  ;;  %vm1540_vm13 = vc.u32 %v1538_v27, %v1534_v10  ;;  %v1491_v3 = vsel %vm1487_vm2, %v3976_v62, %v1490_v41  ;;  %v1513_v59 = vshrl.u32 %v1508_v51, 16 }
0x181e   :  { %v1864_v43 = vshll.u32 %v4027_v44, 30  ;;  %v1517_v24 = vadd.s32 %v1515_v25, %v1509_v52  ;;  %vm1518_vm14 = vc.u32 %v1516_v53, %v1512_v38  ;;  %v1541_v54 = vsel %vm1540_vm13, 1, %v3293_v21 }
0x181f   :  { %v1519_v45 = vsel %vm1518_vm14, 1, %v3293_v21  ;;  %v1543_v2 = vadd.s32 %v1541_v54, %v1539_v14  ;;  %v1535_v61 = vshrl.u32 %v1530_v6, 16  ;;  %v1492_v4 = vsel %vm1486_vm5, %v1489_v37, %v1491_v3 }
0x1820   :  { %v1865_v55 = vsub.s32 %v1861_v18, %v1864_v43  ;;  %v1521_v1 = vadd.s32 %v1519_v45, %v1517_v24  ;;  %v1542_v26 = vadd.s32 %v1538_v27, %v1534_v10  ;;  %v1546_v16 = vmul.u32 %v3923_v19, %v1492_v4 }
0x1821   :  { %v1544_v63 = vadd.s32 %v1543_v2, %v1533_v28  ;;  %v1857_v6 = vadd.s32 %v3990_v32, %v4001_v17  ;;  %vm1765_vm5 = vcmp.lt.s32.totalorder %v3908_v13, 0  ;;  %vm4056_vm10 = vcmp.le.f32.partialorder %v1763_v22, 0.7853982 }
0x1822   :  { %vm1866_vm15 = vcmp.lt.s32.totalorder %v1865_v55, 0  ;;  %v1867_v46 = vsub.s32 0, %v1865_v55  ;;  %v1522_v60 = vadd.s32 %v1521_v1, %v1511_v58  ;;  %v1887_v2 = vsub.s32 4, %v4027_v44 }
0x1823   :  { %v1545_v31 = vadd.s32 %v1544_v63, %v1535_v61  ;;  %vm1455_vm12 = vcmp.lt.s32.totalorder %v3905_v12, 0 }
0x1824   :  { %v1868_v18 = vsel %vm1866_vm15, %v1867_v46, %v1865_v55  ;;  %v1523_v9 = vadd.s32 %v1522_v60, %v1513_v59  ;;  %v1888_v37 = vsel %vm1765_vm5, %v1887_v2, %v4027_v44  ;;  %vm4070_vm15 = vcmp.le.f32.partialorder %v1453_v20, 0.7853982 }
0x1825   :  { %v1869_v40 = vclz %v1868_v18  ;;  %v1549_v47 = vadd.s32 1, %v1545_v31 }
0x1826   :  { %vm1548_vm1 = vc.u32 %v1523_v9, %v1542_v26  ;;  %v1547_v61 = vadd.s32 %v1542_v26, %v1523_v9 }
0x1827   :  { %v3122_v29 = vadd.s32 4294967294, %v1869_v40  ;;  %v1550_v62 = vsel %vm1548_vm1, %v1549_v47, %v1545_v31  ;;  %v1890_v31 = vsel %vm4056_vm10, 0, %v1888_v37 }
0x1828   :  { %v1551_v23 = vadd.s32 %v1550_v62, %v1546_v16  ;;  %v2062_v26 = vand.u32 3, %v1890_v31 }
0x1829   :  { %vm3123_vm0 = vcmp.lt.s32.totalorder %v3122_v29, 0 }
0x182a   :  { %v1872_v30 = vsel %vm3123_vm0, 0, %v3122_v29  ;;  %v1552_v57 = vadd.s32 536870912, %v1551_v23  ;;  %vm2063_vm13 = vcmp.lt.s32.totalorder %v2062_v26, 2  ;;  %vm2064_vm14 = vcmp.eq.s32.totalorder %v2062_v26, 0 }
0x182b   :  { %v1873_v51 = vsub.s32 32, %v1872_v30  ;;  %v1877_v52 = vsub.s32 4294967266, %v1872_v30  ;;  %v1874_v38 = vshll.u32 %v1865_v55, %v1872_v30  ;;  %vm2067_vm1 = vcmp.eq.s32.totalorder %v2062_v26, 2 }
0x182c   :  { %v4050_v27 = vshrl.u32 %v1552_v57, 30 }
0x182d   :  { %v1875_v53 = vshrl.u32 %v1857_v6, %v1873_v51  ;;  %v1878_v8 = vadd.s32 127, %v1877_v52  ;;  %v1907_v52 = vadd.s32 3, %v1890_v31 }
0x182e   :  { %v1554_v43 = vshll.u32 %v4050_v27, 30 }
0x182f   :  { %v1876_v25 = vor.u32 %v1875_v53, %v1874_v38  ;;  %v1879_v10 = vshll.u32 %v1878_v8, 23 }
0x1830   :  { %v1555_v41 = vsub.s32 %v1551_v23, %v1554_v43 }
0x1831   :  { %v1880_v14 = vor.u32 4788187, %v1879_v10  ;;  %v1883_v24 = vcvt.s32.f32 %v1876_v25  ;;  %v1908_v10 = vand.u32 3, %v1907_v52 }
0x1832   :  { %vm1556_vm2 = vcmp.lt.s32.totalorder %v1555_v41, 0  ;;  %v1557_v32 = vsub.s32 0, %v1555_v41 }
0x1833   :  { %v1881_v19 = vand.u32 2147483647, %v1880_v14  ;;  %vm1909_vm0 = vcmp.lt.s32.totalorder %v1908_v10, 2 }
0x1834   :  { %v1558_v54 = vsel %vm1556_vm2, %v1557_v32, %v1555_v41  ;;  %v1577_v32 = vsub.s32 4, %v4050_v27  ;;  %vm1910_vm2 = vcmp.eq.s32.totalorder %v1908_v10, 0 }
0x1835   :  { %v1884_v45 = vmul.f32 %v1883_v24, %v1881_v19  ;;  %v1559_v55 = vclz %v1558_v54 }
0x1837   :  { %v1885_v17 = vxor.u32 2147483648, %v1884_v45  ;;  %v3116_v28 = vadd.s32 4294967294, %v1559_v55 }
0x1839   :  { %v1886_v1 = vsel %vm1765_vm5, %v1885_v17, %v1884_v45  ;;  %vm3117_vm11 = vcmp.lt.s32.totalorder %v3116_v28, 0  ;;  %vm1913_vm5 = vcmp.eq.s32.totalorder %v1908_v10, 2 }
0x183a   :  { %v1889_v58 = vsel %vm4056_vm10, %v3908_v13, %v1886_v1  ;;  %v1562_v60 = vsel %vm3117_vm11, 0, %v3116_v28  ;;  %vm1906_vm10 = vweird.f32 %v3908_v13 }
0x183b   :  { %v1891_v46 = vmul.f32 %v1889_v58, %v1889_v58  ;;  %v1563_v22 = vsub.s32 32, %v1562_v60  ;;  %v1567_v63 = vsub.s32 4294967266, %v1562_v60  ;;  %v1564_v4 = vshll.u32 %v1555_v41, %v1562_v60 }
0x183d   :  { %v1892_v3 = vmul.f32 -0.001358992, %v1891_v46  ;;  %v1899_v59 = vmul.f32 -0.00019511016, %v1891_v46  ;;  %v1565_v29 = vshrl.u32 %v1547_v61, %v1563_v22  ;;  %v1568_v47 = vadd.s32 127, %v1567_v63 }
0x183f   :  { %v1893_v18 = vadd.f32 0.041655596, %v1892_v3  ;;  %v1900_v40 = vadd.f32 0.008332121, %v1899_v59  ;;  %v1566_v62 = vor.u32 %v1565_v29, %v1564_v4  ;;  %v1569_v6 = vshll.u32 %v1568_v47, 23 }
0x1840   :  { %v1578_v3 = vsel %vm1455_vm12, %v1577_v32, %v4050_v27 }
0x1841   :  { %v1894_v16 = vmul.f32 %v1893_v18, %v1891_v46  ;;  %v1901_v30 = vmul.f32 %v1900_v40, %v1891_v46  ;;  %v1570_v23 = vor.u32 4788187, %v1569_v6  ;;  %v1573_v8 = vcvt.s32.f32 %v1566_v62 }
0x1842   :  { %v1580_v61 = vsel %vm4070_vm15, 0, %v1578_v3 }
0x1843   :  { %v1895_v51 = vadd.f32 -0.4999988, %v1894_v16  ;;  %v1902_v44 = vadd.f32 -0.16666654, %v1901_v30  ;;  %v1571_v53 = vand.u32 2147483647, %v1570_v23 }
0x1844   :  { %v1597_v40 = vadd.s32 3, %v1580_v61  ;;  %v1752_v62 = vand.u32 3, %v1580_v61 }
0x1845   :  { %v1896_v38 = vmul.f32 %v1895_v51, %v1891_v46  ;;  %v1903_v9 = vmul.f32 %v1902_v44, %v1891_v46  ;;  %v1574_v14 = vmul.f32 %v1573_v8, %v1571_v53 }
0x1846   :  { %v1598_v16 = vand.u32 3, %v1597_v40  ;;  %v3245_v40 = vld [vmem:[%s4380_s2 + $0x60] sm:$0xff] }
0x1847   :  { %v1897_v57 = vadd.f32 1.0, %v1896_v38  ;;  %v1904_v25 = vadd.f32 1.0, %v1903_v9  ;;  %v1575_v41 = vxor.u32 2147483648, %v1574_v14 }
0x1848   :  { %vm1603_vm11 = vcmp.eq.s32.totalorder %v1598_v16, 2 }
0x1849   :  { %v1905_v43 = vmul.f32 %v1904_v25, %v1889_v58  ;;  %v1914_v19 = vxor.u32 2147483648, %v1897_v57  ;;  %v1576_v54 = vsel %vm1455_vm12, %v1575_v41, %v1574_v14  ;;  %vm1600_vm12 = vcmp.eq.s32.totalorder %v1598_v16, 0  ;;  %v2127_v25 = vpop.f32.mrf.mxu3 }
0x184a   :  { %v1579_v20 = vsel %vm4070_vm15, %v3905_v12, %v1576_v54  ;;  %vm1757_vm15 = vcmp.eq.s32.totalorder %v1752_v62, 2  ;;  %v2128_v10 = vadd.f32 %v3811_v7, %v2127_v25 }
0x184b   :  { %v1911_v45 = vxor.u32 2147483648, %v1905_v43  ;;  %v2069_v17 = vsel %vm2067_vm1, %v1914_v19, %v1905_v43  ;;  %v1915_v1 = vsel %vm1913_vm5, %v1914_v19, %v1905_v43  ;;  %v1581_v28 = vmul.f32 %v1579_v20, %v1579_v20 }
0x184c   :  { %vm1599_vm1 = vcmp.lt.s32.totalorder %v1598_v16, 2  ;;  %v3251_v16 = vld [vmem:[%s4380_s2 + $0x30] sm:$0xff] }
0x184d   :  { %v2066_v55 = vsel %vm2064_vm14, %v1897_v57, %v1911_v45  ;;  %v1912_v0 = vsel %vm1910_vm2, %v1897_v57, %v1911_v45  ;;  %v1582_v59 = vmul.f32 -0.001358992, %v1581_v28  ;;  %v1589_v60 = vmul.f32 -0.00019511016, %v1581_v28 }
0x184e   :  { %v2070_v2 = vsel %vm2063_vm13, %v2066_v55, %v2069_v17  ;;  %v1916_v58 = vsel %vm1909_vm0, %v1912_v0, %v1915_v1  ;;  %vm1753_vm13 = vcmp.lt.s32.totalorder %v1752_v62, 2  ;;  %vm1754_vm14 = vcmp.eq.s32.totalorder %v1752_v62, 0  ;;  %v4138_v62 = vld [vmem:[%s4380_s2 + $0x20] ss:$0 sm:$0xff] }
0x184f   :  { %v2071_v46 = vsel %vm1906_vm10, nan, %v2070_v2  ;;  %v1917_v37 = vsel %vm1906_vm10, nan, %v1916_v58  ;;  %v1583_v13 = vadd.f32 0.041655596, %v1582_v59  ;;  %v1590_v22 = vadd.f32 0.008332121, %v1589_v60 }
0x1850   :  { %2081 = vrot.lane.b32.xlu2 %v2071_v46, %s3294_s7  ;;  %2077 = vrot.lane.b32.xlu1 %v1917_v37, %s3295_s8  ;;  %vm1596_vm0 = vweird.f32 %v3905_v12 }
0x1851   :  { %v1584_v63 = vmul.f32 %v1583_v13, %v1581_v28  ;;  %v1591_v18 = vmul.f32 %v1590_v22, %v1581_v28 }
0x1853   :  { %v1585_v31 = vadd.f32 -0.4999988, %v1584_v63  ;;  %v1592_v4 = vadd.f32 -0.16666654, %v1591_v18 }
0x1855   :  { %v1586_v29 = vmul.f32 %v1585_v31, %v1581_v28  ;;  %v1593_v47 = vmul.f32 %v1592_v4, %v1581_v28  ;;  %v3246_v31 = vld [vmem:[%s4380_s2 + $0x58] sm:$0xff]  ;;  %v3248_v4 = vld [vmem:[%s4380_s2 + $0x48] sm:$0xff] }
0x1857   :  { %v1587_v27 = vadd.f32 1.0, %v1586_v29  ;;  %v1594_v30 = vadd.f32 1.0, %v1593_v47  ;;  %v3249_v29 = vld [vmem:[%s4380_s2 + $0x40] sm:$0xff]  ;;  %v3250_v47 = vld [vmem:[%s4380_s2 + $0x38] sm:$0xff] }
0x1859   :  { %v1595_v6 = vmul.f32 %v1594_v30, %v1579_v20  ;;  %v1604_v51 = vxor.u32 2147483648, %v1587_v27 }
0x185b   :  { %v1601_v44 = vxor.u32 2147483648, %v1595_v6  ;;  %v1605_v52 = vsel %vm1603_vm11, %v1604_v51, %v1595_v6  ;;  %v1759_v38 = vsel %vm1757_vm15, %v1604_v51, %v1595_v6 }
0x185d   :  { %v1756_v23 = vsel %vm1754_vm14, %v1587_v27, %v1601_v44  ;;  %v1602_v9 = vsel %vm1600_vm12, %v1587_v27, %v1601_v44  ;;  %v3252_v27 = vld [vmem:[%s4380_s2 + $0x28] sm:$0xff] }
0x185e   :  { %v1760_v26 = vsel %vm1753_vm13, %v1756_v23, %v1759_v38  ;;  %v1606_v53 = vsel %vm1599_vm1, %v1602_v9, %v1605_v52  ;;  %v4145_v23 = vld [vmem:[%s4380_s2 + $0x68] ss:$0 sm:$0xff] }
0x185f   :  { %v1761_v8 = vsel %vm1596_vm0, nan, %v1760_v26  ;;  %v1607_v57 = vsel %vm1596_vm0, nan, %v1606_v53 }
0x1860   :  { %2073 = vrot.lane.b32.xlu0 %v1761_v8, %s3296_s9  ;;  %v4152_v8 = vld [vmem:[%s4380_s2 + $0xb0] ss:$0 sm:$0xff] }
0x1868   :  { %2151 = vrot.lane.b32.xlu0 %v2128_v10, %s3285_s22 }
0x18aa   :  { %v2082_v24 = vpop.permute.xlu2 %2081 }
0x18c2   :  { %v2078_v14 = vpop.permute.xlu1 %2077 }
0x18d2   :  { %v2074_v43 = vpop.permute.xlu0 %2073 }
0x18d3   :  { %v2084_v19 = vsel %vm1286_vm6, %v1607_v57, %v2074_v43 }
0x18d4   :  { %v2085_v41 = vsel %vm1288_vm7, %v2084_v19, %v2078_v14 }
0x18d5   :  { %v2086_v12 = vsel %vm1290_vm8, %v2085_v41, %v2082_v24 }
0x18d6   :  { %3127 = vmatmul.msk.f32.vlgmr.msrb.gmra.mxu2 %vm1292_vm9, %v2086_v12 }
0x18d7   :  { %2916 = vmatpush.msrb.mxu2 %v3833_v48 }
0x18d9   :  { %2917 = vmatpush.msrb.mxu2 %v3839_v49 }
0x18db   :  { %2918 = vmatpush.msrb.mxu2 %v3845_v34 }
0x18dd   :  { %2919 = vmatpush.msrb.mxu2 %v3851_v33 }
0x1959   :  { %v2107_v7 = vpop.f32.mrf.mxu2 }
0x195a   :  { %v2108_v45 = vadd.f32 %v3857_v39, %v2107_v7  ;;  %v2152_v39 = vpop.permute.xlu0 %2151 }
0x195c   :  { %v2130_v32 = vadd.f32 %v2128_v10, %v2108_v45 }
0x195e   :  { %v3129_v17 = vmul.f32 -1.442695, %v2130_v32 }
0x1960   :  { %3224 = vpow2.f32 %v3129_v17 }
0x1966   :  { %v3225_v54 = vpop.eup %3224 }
0x1967   :  { %v2134_v55 = vadd.f32 1.0, %v3225_v54 }
0x1969   :  { %3226 = vrcp.f32 %v2134_v55  ;;  %v2146_v2 = vand.u32 2147483648, %v2134_v55  ;;  %v2144_v49 = vand.u32 2147483647, %v2134_v55  ;;  %vm2140_vm5 = vweird.f32 %v2134_v55 }
0x196b   :  { %v2147_v34 = vor.u32 1.1754944e-38, %v2146_v2  ;;  %vm2145_vm11 = vcmp.eq.f32.partialorder %v2144_v49, 8.507059e+37 }
0x196f   :  { %v3227_v0 = vpop.eup %3226 }
0x1970   :  { %v2136_v1 = vmul.f32 %v3227_v0, %v2134_v55  ;;  %vm2141_vm2 = vweird.f32 %v3227_v0 }
0x1971   :  { %vm2142_vm10 = vmor %vm2140_vm5, %vm2141_vm2 }
0x1972   :  { %v2137_v20 = vsub.f32 1.0, %v2136_v1 }
0x1974   :  { %v2138_v48 = vmul.f32 %v3227_v0, %v2137_v20 }
0x1976   :  { %v2139_v58 = vadd.f32 %v3227_v0, %v2138_v48 }
0x1978   :  { %v2143_v33 = vsel %vm2142_vm10, %v3227_v0, %v2139_v58 }
0x1979   :  { %v2148_v28 = vsel %vm2145_vm11, %v2147_v34, %v2143_v33 }
0x197a   :  { %v2154_v46 = vmul.f32 %v2152_v39, %v2148_v28  ;;  %v2161_v60 = vsub.f32 1.0, %v2148_v28  ;;  %v2167_v13 = vmul.f32 %v2148_v28, %v3863_v50  ;;  %v3247_v50 = vld [vmem:[%s4380_s2 + $0x50] sm:$0xff] }
0x197c   :  { %2156 = vrot.lane.b32.xlu1 %v2154_v46, %s3285_s22 }
0x19ee   :  { %v2157_v37 = vpop.permute.xlu1 %2156 }
0x19ef   :  { %v2159_v3 = vadd.f32 %v2157_v37, %v2108_v45 }
0x19f1   :  { %3228 = vtanh.f32 %v2159_v3 }
0x19f7   :  { %v3229_v59 = vpop.eup %3228 }
0x19f8   :  { %2163 = vrot.lane.b32.xlu2 %v3229_v59, %s3286_s25 }
0x1a52   :  { %v2164_v61 = vpop.permute.xlu2 %2163 }
0x1a53   :  { %v2166_v22 = vmul.f32 %v2164_v61, %v2161_v60 }
0x1a55   :  { %v4105_v63 = vadd.f32 %v2167_v13, %v2166_v22 }
0x1a57   :  { %2170 = vrot.lane.b32.xlu0 %v4105_v63, %s3286_s25 }
0x1ac9   :  { %v2171_v18 = vpop.permute.xlu0 %2170 }
0x1aca   :  { %3130 = vmatmul.msk.f32.vlgmr.msra.gmra.mxu2 %vm51_vm4, %v2171_v18 }
0x1acb   :  { %3002 = vmatpush.msra.mxu2 %v3245_v40 }
0x1acd   :  { %3003 = vmatpush.msra.mxu2 %v3246_v31 }
0x1acf   :  { %3004 = vmatpush.msra.mxu2 %v3247_v50 }
0x1ad1   :  { %3005 = vmatpush.msra.mxu2 %v3248_v4 }
0x1ad2   :  { %3146 = vmatmul.msk.f32.vlgmr.msrb.gmra.mxu2 %vm51_vm4, %v2171_v18 }
0x1ad3   :  { %3006 = vmatpush.msra.mxu2 %v3249_v29 }
0x1ad5   :  { %3007 = vmatpush.msra.mxu2 %v3250_v47 }
0x1ad7   :  { %3008 = vmatpush.msra.mxu2 %v3251_v16 }
0x1ad9   :  { %3009 = vmatpush.msra.mxu2 %v3252_v27 }
0x1b4d   :  { %v2191_v30 = vpop.f32.mrf.mxu2 }
0x1b4e   :  { %v2192_v6 = vadd.f32 %v4138_v62, %v2191_v30 }
0x1b50   :  { %vm2194_vm12 = vcmp.ge.f32.partialorder %v2192_v6, 0.0  ;;  %v2195_v51 = vmul.f32 0.01, %v2192_v6 }
0x1b52   :  { %v2196_v44 = vsel %vm2194_vm12, %v2192_v6, %v2195_v51 }
0x1b53   :  { %3131 = vmatmul.msk.f32.vlgmr.msrb.gmra.mxu3 %vm604_vm3, %v2196_v44 }
0x1bd6   :  { %v2217_v52 = vpop.f32.mrf.mxu3 }
0x1bd7   :  { %v2218_v38 = vadd.f32 %v4145_v23, %v2217_v52 }
0x1bd9   :  { %vm2220_vm13 = vcmp.ge.f32.partialorder %v2218_v38, 0.0  ;;  %v2221_v9 = vmul.f32 0.01, %v2218_v38 }
0x1bdb   :  { %v2222_v26 = vsel %vm2220_vm13, %v2218_v38, %v2221_v9 }
0x1bdc   :  { %3132 = vmatmul.msk.f32.vlgmr.msrb.gmra.mxu0 %vm604_vm3, %v2222_v26 }
0x1c59   :  { %v2243_v53 = vpop.f32.mrf.mxu0 }
0x1c5a   :  { %v4155_v57 = vadd.f32 %v4152_v8, %v2243_v53 }
0x1c5c   :  { %v4158_v25 = vmul.f32 3.1415927, %v4155_v57  ;;  %v4161_v10 = vmul.f32 6.2831855, %v4155_v57 }
0x1c5e   :  { %v2250_v14 = vand.u32 2139095040, %v4158_v25  ;;  %v2560_v43 = vand.u32 2139095040, %v4161_v10  ;;  %v2557_v19 = vand.u32 2147483647, %v4161_v10  ;;  %v2247_v24 = vand.u32 2147483647, %v4158_v25 }
0x1c60   :  { %v2251_v41 = vshrl.u32 %v2250_v14, 23  ;;  %v2561_v12 = vshrl.u32 %v2560_v43, 23  ;;  %v2564_v7 = vand.u32 8388607, %v2557_v19  ;;  %v2254_v54 = vand.u32 8388607, %v2247_v24 }
0x1c62   :  { %v3133_v45 = vadd.s32 4294967169, %v2251_v41  ;;  %v3139_v32 = vadd.s32 4294967169, %v2561_v12  ;;  %v2565_v17 = vor.u32 8388608, %v2564_v7  ;;  %v2255_v20 = vor.u32 8388608, %v2254_v54 }
0x1c64   :  { %v2257_v55 = vadd.s32 1, %v3133_v45  ;;  %v2567_v0 = vadd.s32 1, %v3139_v32  ;;  %v4171_v1 = vshll.u32 %v2565_v17, 8  ;;  %v4176_v39 = vshll.u32 %v2255_v20, 8 }
0x1c66   :  { %vm2258_vm14 = vcmp.gt.s32.totalorder %v2257_v55, 0  ;;  %vm2568_vm15 = vcmp.gt.s32.totalorder %v2567_v0, 0  ;;  %v2606_v33 = vand.u32 65535, %v4171_v1  ;;  %v2607_v47 = vshrl.u32 %v4171_v1, 16 }
0x1c67   :  { %v2259_v2 = vsel %vm2258_vm14, %v2257_v55, 0  ;;  %v2569_v48 = vsel %vm2568_vm15, %v2567_v0, 0 }
0x1c68   :  { %v4173_v49 = vand.u32 31, %v2259_v2  ;;  %v2571_v58 = vand.u32 31, %v2569_v48  ;;  %v4181_v46 = vshrl.u32 %v2569_v48, 5  ;;  %v4194_v16 = vshrl.u32 %v2259_v2, 5 }
0x1c6a   :  { %v2572_v34 = vsub.s32 32, %v2571_v58  ;;  %v4179_v28 = vsub.s32 32, %v4173_v49  ;;  %v2574_v37 = vshll.u32 %v4404_v35, %v2571_v58  ;;  %v2577_v3 = vshll.u32 %v4413_v56, %v2571_v58 }
0x1c6b   :  { %v2580_v61 = vshll.u32 %v4414_v42, %v2571_v58  ;;  %v2583_v22 = vshll.u32 %v4415_v36, %v2571_v58  ;;  %v2586_v40 = vshll.u32 %v4402_v15, %v2571_v58  ;;  %vm2589_vm1 = vcmp.lt.s32.totalorder %v4181_v46, 1 }
0x1c6c   :  { %v2575_v59 = vshrl.u32 %v4413_v56, %v2572_v34  ;;  %v2578_v60 = vshrl.u32 %v4414_v42, %v2572_v34  ;;  %v2581_v13 = vshrl.u32 %v4415_v36, %v2572_v34  ;;  %v2584_v18 = vshrl.u32 %v4402_v15, %v2572_v34 }
0x1c6d   :  { %v2587_v31 = vshrl.u32 %v4403_v5, %v2572_v34  ;;  %v2573_v6 = vshrl.u32 %v4404_v35, %v2572_v34  ;;  %vm2592_vm0 = vcmp.lt.s32.totalorder %v4181_v46, 4  ;;  %vm2591_vm2 = vcmp.lt.s32.totalorder %v4181_v46, 3 }
0x1c6e   :  { %v2576_v50 = vor.u32 %v2575_v59, %v2574_v37  ;;  %v2579_v4 = vor.u32 %v2578_v60, %v2577_v3  ;;  %v2582_v29 = vor.u32 %v2581_v13, %v2580_v61  ;;  %v2585_v27 = vor.u32 %v2584_v18, %v2583_v22 }
0x1c6f   :  { %v2588_v30 = vor.u32 %v2587_v31, %v2586_v40  ;;  %v2265_v9 = vshrl.u32 %v4413_v56, %v4179_v28  ;;  %vm2590_vm5 = vcmp.lt.s32.totalorder %v4181_v46, 2  ;;  %v2264_v7 = vshll.u32 %v4404_v35, %v4173_v49 }
0x1c70   :  { %v2597_v51 = vsel %vm2589_vm1, %v2576_v50, %v2579_v4  ;;  %v2601_v44 = vsel %vm2589_vm1, %v2579_v4, %v2582_v29  ;;  %v2598_v52 = vsel %vm2592_vm0, %v2585_v27, 920167782  ;;  %v2594_v26 = vsel %vm2592_vm0, %v2582_v29, 2102212464 }
0x1c71   :  { %v2602_v38 = vsel %vm2592_vm0, %v2588_v30, 1326507024  ;;  %v2599_v53 = vsel %vm2591_vm2, %v2582_v29, %v2598_v52  ;;  %v4207_v43 = vsel %vm2589_vm1, %v2573_v6, %v2576_v50  ;;  %v2595_v55 = vsel %vm2591_vm2, %v2579_v4, %v2594_v26 }
0x1c72   :  { %v2603_v14 = vsel %vm2591_vm2, %v2585_v27, %v2602_v38  ;;  %v2600_v41 = vsel %vm2590_vm5, %v2597_v51, %v2599_v53  ;;  %v4217_v0 = vor.u32 %v2265_v9, %v2264_v7  ;;  %v2267_v20 = vshll.u32 %v4413_v56, %v4173_v49 }
0x1c73   :  { %v2604_v12 = vsel %vm2590_vm5, %v2601_v44, %v2603_v14  ;;  %v2630_v17 = vand.u32 65535, %v2600_v41  ;;  %v2631_v54 = vshrl.u32 %v2600_v41, 16  ;;  %v2268_v2 = vshrl.u32 %v4414_v42, %v4179_v28 }
0x1c74   :  { %v2608_v45 = vand.u32 65535, %v2604_v12  ;;  %v2609_v32 = vshrl.u32 %v2604_v12, 16  ;;  %v2270_v34 = vshll.u32 %v4414_v42, %v4173_v49  ;;  %v2271_v37 = vshrl.u32 %v4415_v36, %v4179_v28 }
0x1c75   :  { %v2633_v59 = vmul.u32 %v2631_v54, %v2606_v33  ;;  %v2634_v60 = vmul.u32 %v2630_v17, %v2607_v47  ;;  %v2273_v61 = vshll.u32 %v4415_v36, %v4173_v49  ;;  %v2632_v56 = vmul.u32 %v2630_v17, %v2606_v33 }
0x1c76   :  { %v2611_v48 = vmul.u32 %v2609_v32, %v2606_v33  ;;  %v2612_v58 = vmul.u32 %v2608_v45, %v2607_v47  ;;  %v2610_v3 = vmul.u32 %v2608_v45, %v2606_v33  ;;  %v2613_v13 = vmul.u32 %v2609_v32, %v2607_v47 }
0x1c77   :  { %v2635_v18 = vmul.u32 %v2631_v54, %v2607_v47  ;;  %v2636_v4 = vshll.u32 %v2633_v59, 16  ;;  %v2638_v42 = vshll.u32 %v2634_v60, 16  ;;  %v4229_v27 = vor.u32 %v2268_v2, %v2267_v20 }
0x1c78   :  { %v2614_v22 = vshll.u32 %v2611_v48, 16  ;;  %v2615_v40 = vshrl.u32 %v2611_v48, 16  ;;  %v2616_v31 = vshll.u32 %v2612_v58, 16  ;;  %v2617_v50 = vshrl.u32 %v2612_v58, 16 }
0x1c79   :  { %vm2640_vm11 = vc.u32 %v2632_v56, %v2636_v4  ;;  %v2642_v6 = vadd.s32 %v2636_v4, %v2632_v56  ;;  %v2274_v36 = vshrl.u32 %v4402_v15, %v4179_v28  ;;  %v4235_v47 = vor.u32 %v2271_v37, %v2270_v34 }
0x1c7a   :  { %vm2618_vm10 = vc.u32 %v2610_v3, %v2614_v22  ;;  %v2620_v29 = vadd.s32 %v2614_v22, %v2610_v3  ;;  %v2641_v33 = vsel %vm2640_vm11, 1, %v3293_v21  ;;  %v2276_v38 = vshll.u32 %v4402_v15, %v4173_v49 }
0x1c7b   :  { %v2619_v30 = vsel %vm2618_vm10, 1, %v3293_v21  ;;  %v2643_v52 = vadd.s32 %v2641_v33, %v2635_v18  ;;  %vm2644_vm13 = vc.u32 %v2642_v6, %v2638_v42  ;;  %v2275_v53 = vor.u32 %v2274_v36, %v2273_v61 }
0x1c7c   :  { %v2621_v51 = vadd.s32 %v2619_v30, %v2613_v13  ;;  %vm2622_vm12 = vc.u32 %v2620_v29, %v2616_v31  ;;  %v2645_v26 = vsel %vm2644_vm13, 1, %v3293_v21  ;;  %v2277_v14 = vshrl.u32 %v4403_v5, %v4179_v28 }
0x1c7d   :  { %v2623_v44 = vsel %vm2622_vm12, 1, %v3293_v21  ;;  %v2637_v41 = vshrl.u32 %v2633_v59, 16  ;;  %v2639_v12 = vshrl.u32 %v2634_v60, 16  ;;  %v4243_v7 = vadd.s32 %v2642_v6, %v2638_v42 }
0x1c7e   :  { %v2625_v9 = vadd.s32 %v2623_v44, %v2621_v51  ;;  %v2647_v45 = vadd.s32 %v2645_v26, %v2643_v52  ;;  %v2278_v17 = vor.u32 %v2277_v14, %v2276_v38  ;;  %vm2279_vm14 = vcmp.lt.s32.totalorder %v4194_v16, 1 }
0x1c7f   :  { %vm2282_vm15 = vcmp.lt.s32.totalorder %v4194_v16, 4  ;;  %vm2281_vm1 = vcmp.lt.s32.totalorder %v4194_v16, 3  ;;  %v2287_v15 = vsel %vm2279_vm14, %v4217_v0, %v4229_v27  ;;  %vm2280_vm0 = vcmp.lt.s32.totalorder %v4194_v16, 2 }
0x1c80   :  { %v2626_v32 = vadd.s32 %v2625_v9, %v2615_v40  ;;  %v2648_v54 = vadd.s32 %v2647_v45, %v2637_v41  ;;  %v2288_v5 = vsel %vm2282_vm15, %v2275_v53, 920167782  ;;  %v2291_v2 = vsel %vm2279_vm14, %v4229_v27, %v4235_v47 }
0x1c81   :  { %v2289_v20 = vsel %vm2281_vm1, %v4235_v47, %v2288_v5  ;;  %v2596_v48 = vsel %vm2590_vm5, %v4207_v43, %v2595_v55  ;;  %v2292_v37 = vsel %vm2282_vm15, %v2278_v17, 1326507024  ;;  %v2296_v59 = vand.u32 65535, %v4176_v39 }
0x1c82   :  { %v4254_v49 = vadd.s32 %v2626_v32, %v2617_v50  ;;  %v2649_v58 = vadd.s32 %v2648_v54, %v2639_v12  ;;  %v2290_v34 = vsel %vm2280_vm0, %v2287_v15, %v2289_v20  ;;  %v2293_v3 = vsel %vm2281_vm1, %v2275_v53, %v2292_v37 }
0x1c83   :  { %v2320_v60 = vand.u32 65535, %v2290_v34  ;;  %v2294_v46 = vsel %vm2280_vm0, %v2291_v2, %v2293_v3  ;;  %v2297_v43 = vshrl.u32 %v4176_v39, 16  ;;  %v2321_v55 = vshrl.u32 %v2290_v34, 16 }
0x1c84   :  { %vm2652_vm2 = vc.u32 %v4254_v49, %v4243_v7  ;;  %v2653_v61 = vadd.s32 1, %v2649_v58  ;;  %v2650_v13 = vmul.u32 %v4171_v1, %v2596_v48  ;;  %v2298_v22 = vand.u32 65535, %v2294_v46 }
0x1c85   :  { %v2299_v56 = vshrl.u32 %v2294_v46, 16  ;;  %v2323_v40 = vmul.u32 %v2321_v55, %v2296_v59  ;;  %v2324_v31 = vmul.u32 %v2320_v60, %v2297_v43  ;;  %v2322_v42 = vmul.u32 %v2320_v60, %v2296_v59 }
0x1c86   :  { %v2654_v18 = vsel %vm2652_vm2, %v2653_v61, %v2649_v58  ;;  %v2302_v29 = vmul.u32 %v2298_v22, %v2297_v43  ;;  %v2325_v30 = vmul.u32 %v2321_v55, %v2297_v43  ;;  %v2300_v51 = vmul.u32 %v2298_v22, %v2296_v59 }
0x1c87   :  { %v2655_v50 = vadd.s32 %v2654_v18, %v2650_v13  ;;  %v2301_v4 = vmul.u32 %v2299_v56, %v2296_v59  ;;  %v2326_v6 = vshll.u32 %v2323_v40, 16  ;;  %v2303_v33 = vmul.u32 %v2299_v56, %v2297_v43 }
0x1c88   :  { %v2306_v52 = vshll.u32 %v2302_v29, 16  ;;  %v2328_v38 = vshll.u32 %v2324_v31, 16  ;;  %v2284_v32 = vsel %vm2282_vm15, %v4235_v47, 2102212464  ;;  %v2263_v5 = vshrl.u32 %v4404_v35, %v4179_v28 }
0x1c89   :  { %v2656_v36 = vadd.s32 536870912, %v2655_v50  ;;  %v2304_v44 = vshll.u32 %v2301_v4, 16  ;;  %vm2330_vm5 = vc.u32 %v2322_v42, %v2326_v6  ;;  %v2332_v9 = vadd.s32 %v2326_v6, %v2322_v42 }
0x1c8a   :  { %v2331_v53 = vsel %vm2330_vm5, 1, %v3293_v21  ;;  %v2305_v48 = vshrl.u32 %v2301_v4, 16  ;;  %v2327_v58 = vshrl.u32 %v2323_v40, 16  ;;  %v2283_v37 = vsel %vm2279_vm14, %v2263_v5, %v4217_v0 }
0x1c8b   :  { %v4280_v1 = vshrl.u32 %v2656_v36, 30  ;;  %vm2308_vm10 = vc.u32 %v2300_v51, %v2304_v44  ;;  %v2310_v26 = vadd.s32 %v2304_v44, %v2300_v51  ;;  %v2333_v41 = vadd.s32 %v2331_v53, %v2325_v30 }
0x1c8c   :  { %v2309_v14 = vsel %vm2308_vm10, 1, %v3293_v21  ;;  %vm2334_vm11 = vc.u32 %v2332_v9, %v2328_v38  ;;  %v2285_v47 = vsel %vm2281_vm1, %v4229_v27, %v2284_v32  ;;  %v2307_v3 = vshrl.u32 %v2302_v29, 16 }
0x1c8d   :  { %v2658_v12 = vshll.u32 %v4280_v1, 30  ;;  %v2311_v45 = vadd.s32 %v2309_v14, %v2303_v33  ;;  %vm2312_vm12 = vc.u32 %v2310_v26, %v2306_v52  ;;  %v2335_v54 = vsel %vm2334_vm11, 1, %v3293_v21 }
0x1c8e   :  { %v2313_v17 = vsel %vm2312_vm12, 1, %v3293_v21  ;;  %v2337_v2 = vadd.s32 %v2335_v54, %v2333_v41  ;;  %v2329_v59 = vshrl.u32 %v2324_v31, 16  ;;  %v2286_v43 = vsel %vm2280_vm0, %v2283_v37, %v2285_v47 }
0x1c8f   :  { %v2659_v15 = vsub.s32 %v2655_v50, %v2658_v12  ;;  %v2315_v20 = vadd.s32 %v2313_v17, %v2311_v45  ;;  %v2336_v55 = vadd.s32 %v2332_v9, %v2328_v38  ;;  %v2340_v0 = vmul.u32 %v4176_v39, %v2286_v43 }
0x1c90   :  { %v2338_v60 = vadd.s32 %v2337_v2, %v2327_v58  ;;  %v2651_v18 = vadd.s32 %v4243_v7, %v4254_v49  ;;  %vm2559_vm0 = vcmp.lt.s32.totalorder %v4161_v10, 0  ;;  %vm4309_vm2 = vcmp.le.f32.partialorder %v2557_v19, 0.7853982 }
0x1c91   :  { %vm2660_vm13 = vcmp.lt.s32.totalorder %v2659_v15, 0  ;;  %v2661_v34 = vsub.s32 0, %v2659_v15  ;;  %v2316_v21 = vadd.s32 %v2315_v20, %v2305_v48  ;;  %v2681_v41 = vsub.s32 4, %v4280_v1 }
0x1c92   :  { %v2339_v46 = vadd.s32 %v2338_v60, %v2329_v59  ;;  %vm2249_vm10 = vcmp.lt.s32.totalorder %v4158_v25, 0 }
0x1c93   :  { %v2662_v61 = vsel %vm2660_vm13, %v2661_v34, %v2659_v15  ;;  %v2317_v28 = vadd.s32 %v2316_v21, %v2307_v3  ;;  %v2682_v17 = vsel %vm2559_vm0, %v2681_v41, %v4280_v1  ;;  %vm4323_vm13 = vcmp.le.f32.partialorder %v2247_v24, 0.7853982 }
0x1c94   :  { %v2663_v35 = vclz %v2662_v61  ;;  %v2343_v22 = vadd.s32 1, %v2339_v46  ;;  %v2684_v34 = vsel %vm4309_vm2, 0, %v2682_v17 }
0x1c95   :  { %vm2342_vm15 = vc.u32 %v2317_v28, %v2336_v55  ;;  %v2341_v20 = vadd.s32 %v2336_v55, %v2317_v28  ;;  %v2856_v55 = vand.u32 3, %v2684_v34 }
0x1c96   :  { %v3140_v13 = vadd.s32 4294967294, %v2663_v35  ;;  %v2344_v27 = vsel %vm2342_vm15, %v2343_v22, %v2339_v46  ;;  %v2701_v46 = vadd.s32 3, %v2684_v34 }
0x1c97   :  { %v2345_v50 = vadd.s32 %v2344_v27, %v2340_v0  ;;  %vm2857_vm11 = vcmp.lt.s32.totalorder %v2856_v55, 2  ;;  %vm2858_vm12 = vcmp.eq.s32.totalorder %v2856_v55, 0  ;;  %vm2861_vm15 = vcmp.eq.s32.totalorder %v2856_v55, 2 }
0x1c98   :  { %vm3141_vm14 = vcmp.lt.s32.totalorder %v3140_v13, 0 }
0x1c99   :  { %v2666_v56 = vsel %vm3141_vm14, 0, %v3140_v13  ;;  %v2346_v16 = vadd.s32 536870912, %v2345_v50 }
0x1c9a   :  { %v2667_v40 = vsub.s32 32, %v2666_v56  ;;  %v2671_v31 = vsub.s32 4294967266, %v2666_v56  ;;  %v2668_v4 = vshll.u32 %v2659_v15, %v2666_v56 }
0x1c9b   :  { %v4303_v36 = vshrl.u32 %v2346_v16, 30 }
0x1c9c   :  { %v2669_v29 = vshrl.u32 %v2651_v18, %v2667_v40  ;;  %v2672_v42 = vadd.s32 127, %v2671_v31  ;;  %v2702_v18 = vand.u32 3, %v2701_v46  ;;  %v3256_v46 = vld [vmem:[%s4379_s1 + $0x29] ss:$0 sm:$0xff] }
0x1c9d   :  { %v2348_v33 = vshll.u32 %v4303_v36, 30  ;;  %v2371_v16 = vsub.s32 4, %v4303_v36 }
0x1c9e   :  { %v2670_v30 = vor.u32 %v2669_v29, %v2668_v4  ;;  %v2673_v6 = vshll.u32 %v2672_v42, 23  ;;  %vm2703_vm14 = vcmp.lt.s32.totalorder %v2702_v18, 2 }
0x1c9f   :  { %v2349_v52 = vsub.s32 %v2345_v50, %v2348_v33 }
0x1ca0   :  { %v2674_v51 = vor.u32 4788187, %v2673_v6  ;;  %v2677_v44 = vcvt.s32.f32 %v2670_v30 }
0x1ca1   :  { %vm2350_vm1 = vcmp.lt.s32.totalorder %v2349_v52, 0  ;;  %v2351_v7 = vsub.s32 0, %v2349_v52 }
0x1ca2   :  { %v2675_v39 = vand.u32 2147483647, %v2674_v51 }
0x1ca3   :  { %v2352_v9 = vsel %vm2350_vm1, %v2351_v7, %v2349_v52  ;;  %vm2704_vm1 = vcmp.eq.s32.totalorder %v2702_v18, 0 }
0x1ca4   :  { %v2678_v38 = vmul.f32 %v2677_v44, %v2675_v39  ;;  %v2353_v26 = vclz %v2352_v9  ;;  %v2372_v9 = vsel %vm2249_vm10, %v2371_v16, %v4303_v36 }
0x1ca6   :  { %v2679_v49 = vxor.u32 2147483648, %v2678_v38  ;;  %v3134_v45 = vadd.s32 4294967294, %v2353_v26 }
0x1ca8   :  { %v2680_v14 = vsel %vm2559_vm0, %v2679_v49, %v2678_v38  ;;  %vm3135_vm5 = vcmp.lt.s32.totalorder %v3134_v45, 0  ;;  %vm2707_vm0 = vcmp.eq.s32.totalorder %v2702_v18, 2 }
0x1ca9   :  { %v2683_v12 = vsel %vm4309_vm2, %v4161_v10, %v2680_v14  ;;  %v2356_v5 = vsel %vm3135_vm5, 0, %v3134_v45  ;;  %vm2700_vm2 = vweird.f32 %v4161_v10  ;;  %v2374_v14 = vsel %vm4323_vm13, 0, %v2372_v9 }
0x1caa   :  { %v2685_v32 = vmul.f32 %v2683_v12, %v2683_v12  ;;  %v2357_v19 = vsub.s32 32, %v2356_v5  ;;  %v2361_v2 = vsub.s32 4294967266, %v2356_v5  ;;  %v2358_v37 = vshll.u32 %v2349_v52, %v2356_v5 }
0x1cac   :  { %v2686_v54 = vmul.f32 -0.001358992, %v2685_v32  ;;  %v2693_v15 = vmul.f32 -0.00019511016, %v2685_v32  ;;  %v2359_v47 = vshrl.u32 %v2341_v20, %v2357_v19  ;;  %v2362_v3 = vadd.s32 127, %v2361_v2 }
0x1cad   :  { %v2546_v2 = vand.u32 3, %v2374_v14 }
0x1cae   :  { %v2687_v48 = vadd.f32 0.041655596, %v2686_v54  ;;  %v2694_v58 = vadd.f32 0.008332121, %v2693_v15  ;;  %v2360_v60 = vor.u32 %v2359_v47, %v2358_v37  ;;  %v2363_v61 = vshll.u32 %v2362_v3, 23 }
0x1cb0   :  { %v2688_v21 = vmul.f32 %v2687_v48, %v2685_v32  ;;  %v2695_v59 = vmul.f32 %v2694_v58, %v2685_v32  ;;  %v2364_v43 = vor.u32 4788187, %v2363_v61  ;;  %v2367_v0 = vcvt.s32.f32 %v2360_v60 }
0x1cb2   :  { %v2689_v35 = vadd.f32 -0.4999988, %v2688_v21  ;;  %v2696_v1 = vadd.f32 -0.16666654, %v2695_v59  ;;  %v2365_v22 = vand.u32 2147483647, %v2364_v43 }
0x1cb4   :  { %v2690_v13 = vmul.f32 %v2689_v35, %v2685_v32  ;;  %v2697_v28 = vmul.f32 %v2696_v1, %v2685_v32  ;;  %v2368_v40 = vmul.f32 %v2367_v0, %v2365_v22  ;;  %v2391_v32 = vadd.s32 3, %v2374_v14  ;;  %v2921_v1 = vpop.f32.mrf.mxu2 }
0x1cb5   :  { %v2922_v43 = vadd.f32 %v3256_v46, %v2921_v1 }
0x1cb6   :  { %v2691_v56 = vadd.f32 1.0, %v2690_v13  ;;  %v2698_v27 = vadd.f32 1.0, %v2697_v28  ;;  %v2369_v29 = vxor.u32 2147483648, %v2368_v40  ;;  %v2392_v20 = vand.u32 3, %v2391_v32 }
0x1cb8   :  { %v2699_v31 = vmul.f32 %v2698_v27, %v2683_v12  ;;  %v2708_v50 = vxor.u32 2147483648, %v2691_v56  ;;  %v2370_v6 = vsel %vm2249_vm10, %v2369_v29, %v2368_v40  ;;  %vm2397_vm5 = vcmp.eq.s32.totalorder %v2392_v20, 2  ;;  %v3257_v27 = vld [vmem:[%s4379_s1 + $0x28] ss:$0 sm:$0xff]  ;;  %s3297_s1 = smov [#allocation2]  }
0x1cb9   :  { %v2373_v24 = vsel %vm4323_vm13, %v4158_v25, %v2370_v6  ;;  %vm2394_vm10 = vcmp.eq.s32.totalorder %v2392_v20, 0  ;;  %vm2551_vm13 = vcmp.eq.s32.totalorder %v2546_v2, 2 }
0x1cba   :  { %v2705_v42 = vxor.u32 2147483648, %v2699_v31  ;;  %v2863_v30 = vsel %vm2861_vm15, %v2708_v50, %v2699_v31  ;;  %v2709_v39 = vsel %vm2707_vm0, %v2708_v50, %v2699_v31  ;;  %v2375_v38 = vmul.f32 %v2373_v24, %v2373_v24 }
0x1cbb   :  { %vm2393_vm15 = vcmp.lt.s32.totalorder %v2392_v20, 2 }
0x1cbc   :  { %v2860_v51 = vsel %vm2858_vm12, %v2691_v56, %v2705_v42  ;;  %v2706_v33 = vsel %vm2704_vm1, %v2691_v56, %v2705_v42  ;;  %v2376_v26 = vmul.f32 -0.001358992, %v2375_v38  ;;  %v2383_v53 = vmul.f32 -0.00019511016, %v2375_v38 }
0x1cbd   :  { %v2864_v44 = vsel %vm2857_vm11, %v2860_v51, %v2863_v30  ;;  %v2710_v52 = vsel %vm2703_vm14, %v2706_v33, %v2709_v39  ;;  %vm2547_vm11 = vcmp.lt.s32.totalorder %v2546_v2, 2  ;;  %vm2548_vm12 = vcmp.eq.s32.totalorder %v2546_v2, 0 }
0x1cbe   :  { %v2865_v7 = vsel %vm2700_vm2, nan, %v2864_v44  ;;  %v2711_v49 = vsel %vm2700_vm2, nan, %v2710_v52  ;;  %v2377_v10 = vadd.f32 0.041655596, %v2376_v26  ;;  %v2384_v41 = vadd.f32 0.008332121, %v2383_v53 }
0x1cbf   :  { %2875 = vrot.lane.b32.xlu0 %v2865_v7, %s3294_s7  ;;  %2871 = vrot.lane.b32.xlu2 %v2711_v49, %s3295_s8  ;;  %vm2390_vm14 = vweird.f32 %v4158_v25 }
0x1cc0   :  { %v2378_v12 = vmul.f32 %v2377_v10, %v2375_v38  ;;  %v2385_v45 = vmul.f32 %v2384_v41, %v2375_v38 }
0x1cc2   :  { %v2379_v17 = vadd.f32 -0.4999988, %v2378_v12  ;;  %v2386_v54 = vadd.f32 -0.16666654, %v2385_v45 }
0x1cc4   :  { %v2380_v15 = vmul.f32 %v2379_v17, %v2375_v38  ;;  %v2387_v5 = vmul.f32 %v2386_v54, %v2375_v38 }
0x1cc6   :  { %v2381_v36 = vadd.f32 1.0, %v2380_v15  ;;  %v2388_v19 = vadd.f32 1.0, %v2387_v5 }
0x1cc8   :  { %v2389_v48 = vmul.f32 %v2388_v19, %v2373_v24  ;;  %v2398_v58 = vxor.u32 2147483648, %v2381_v36  ;;  %v4424_v19 = vld [vmem:[#allocation7_spill] sm:$0xff] }
0x1cca   :  { %v2395_v34 = vxor.u32 2147483648, %v2389_v48  ;;  %v2399_v37 = vsel %vm2397_vm5, %v2398_v58, %v2389_v48  ;;  %v2553_v3 = vsel %vm2551_vm13, %v2398_v58, %v2389_v48 }
0x1ccc   :  { %v2550_v47 = vsel %vm2548_vm12, %v2381_v36, %v2395_v34  ;;  %v2396_v21 = vsel %vm2394_vm10, %v2381_v36, %v2395_v34 }
0x1ccd   :  { %v2554_v59 = vsel %vm2547_vm11, %v2550_v47, %v2553_v3  ;;  %v2400_v60 = vsel %vm2393_vm15, %v2396_v21, %v2399_v37 }
0x1cce   :  { %v2555_v61 = vsel %vm2390_vm14, nan, %v2554_v59  ;;  %v2401_v35 = vsel %vm2390_vm14, nan, %v2400_v60 }
0x1ccf   :  { %2867 = vrot.lane.b32.xlu1 %v2555_v61, %s3296_s9 }
0x1cd7   :  { %2945 = vrot.lane.b32.xlu1 %v2922_v43, %s3285_s22 }
0x1d19   :  { %v2872_v28 = vpop.permute.xlu2 %2871 }
0x1d31   :  { %v2876_v22 = vpop.permute.xlu0 %2875 }
0x1d41   :  { %v2868_v13 = vpop.permute.xlu1 %2867 }
0x1d42   :  { %v2878_v55 = vsel %vm1286_vm6, %v2401_v35, %v2868_v13 }
0x1d43   :  { %v2879_v25 = vsel %vm1288_vm7, %v2878_v55, %v2872_v28 }
0x1d44   :  { %v2880_v0 = vsel %vm1290_vm8, %v2879_v25, %v2876_v22 }
0x1d45   :  { %3145 = vmatmul.msk.f32.vlgmr.msra.gmra.mxu1 %vm1292_vm9, %v2880_v0 }
0x1d49   :  { %v2946_v44 = vpop.permute.xlu1 %2945 }
0x1dc2   :  { %v2901_v56 = vpop.f32.mrf.mxu1 }
0x1dc3   :  { %v2902_v18 = vadd.f32 %v3257_v27, %v2901_v56 }
0x1dc5   :  { %v2924_v40 = vadd.f32 %v2922_v43, %v2902_v18 }
0x1dc7   :  { %v3147_v31 = vmul.f32 -1.442695, %v2924_v40 }
0x1dc9   :  { %3230 = vpow2.f32 %v3147_v31 }
0x1dcf   :  { %v3231_v50 = vpop.eup %3230 }
0x1dd0   :  { %v2928_v4 = vadd.f32 1.0, %v3231_v50 }
0x1dd2   :  { %3232 = vrcp.f32 %v2928_v4  ;;  %v2940_v30 = vand.u32 2147483648, %v2928_v4  ;;  %v2938_v51 = vand.u32 2147483647, %v2928_v4  ;;  %vm2934_vm0 = vweird.f32 %v2928_v4 }
0x1dd4   :  { %v2941_v39 = vor.u32 1.1754944e-38, %v2940_v30  ;;  %vm2939_vm5 = vcmp.eq.f32.partialorder %v2938_v51, 8.507059e+37 }
0x1dd8   :  { %v3233_v29 = vpop.eup %3232 }
0x1dd9   :  { %v2930_v42 = vmul.f32 %v3233_v29, %v2928_v4  ;;  %vm2935_vm1 = vweird.f32 %v3233_v29 }
0x1dda   :  { %vm2936_vm2 = vmor %vm2934_vm0, %vm2935_vm1 }
0x1ddb   :  { %v2931_v16 = vsub.f32 1.0, %v2930_v42 }
0x1ddd   :  { %v2932_v6 = vmul.f32 %v3233_v29, %v2931_v16 }
0x1ddf   :  { %v2933_v33 = vadd.f32 %v3233_v29, %v2932_v6 }
0x1de1   :  { %v2937_v24 = vsel %vm2936_vm2, %v3233_v29, %v2933_v33 }
0x1de2   :  { %v2942_v52 = vsel %vm2939_vm5, %v2941_v39, %v2937_v24 }
0x1de3   :  { %v2948_v38 = vmul.f32 %v2946_v44, %v2942_v52  ;;  %v2955_v26 = vsub.f32 1.0, %v2942_v52  ;;  %v2961_v14 = vmul.f32 %v2942_v52, %v4105_v63 }
0x1de5   :  { %2950 = vrot.lane.b32.xlu2 %v2948_v38, %s3285_s22  ;;  %s3061_s22 = sshll.u32 %s3297_s1, 4  ;;  %s3062_s22 = int_to_ptr.vmem [resolvable:$true] %s3061_s22 }
0x1ded   :  { %3041 = vrot.lane.b32.xlu2 %v3902_v11, %s3296_s9  ;;  %s3063_s9 = sshll.u32 %s4381_s3, 4  ;;  %s3064_s9 = int_to_ptr.hbm [resolvable:$true] %s3063_s9 }
0x1e3f   :  { %v2951_v7 = vpop.permute.xlu2 %2950 }
0x1e40   :  { %v2953_v49 = vadd.f32 %v2951_v7, %v2902_v18 }
0x1e42   :  { %3234 = vtanh.f32 %v2953_v49 }
0x1e47   :  { %v3042_v36 = vpop.permute.xlu2 %3041 }
0x1e48   :  { %v3235_v9 = vpop.eup %3234 }
0x1e49   :  { %2957 = vrot.lane.b32.xlu0 %v3235_v9, %s3286_s25 }
0x1e51   :  { %3045 = vrot.lane.b32.xlu0 %v4155_v57, %s3295_s8 }
0x1ebb   :  { %v2958_v53 = vpop.permute.xlu0 %2957 }
0x1ebc   :  { %v2960_v10 = vmul.f32 %v2958_v53, %v2955_v26 }
0x1ebe   :  { %v2962_v41 = vadd.f32 %v2961_v14, %v2960_v10 }
0x1ec0   :  { %2964 = vrot.lane.b32.xlu1 %v2962_v41, %s3286_s25 }
0x1f32   :  { %v2965_v12 = vpop.permute.xlu1 %2964 }
0x1f33   :  { %3148 = vmatmul.msk.f32.vlgmr.msrb.gmra.mxu1 %vm51_vm4, %v2965_v12 }
0x1fb0   :  { %v2985_v11 = vpop.f32.mrf.mxu1 }
0x1fb1   :  { %v2986_v45 = vadd.f32 %v4138_v62, %v2985_v11  ;;  %v3046_v62 = vpop.permute.xlu0 %3045 }
0x1fb3   :  { %vm2988_vm10 = vcmp.ge.f32.partialorder %v2986_v45, 0.0  ;;  %v2989_v32 = vmul.f32 0.01, %v2986_v45 }
0x1fb5   :  { %v2990_v17 = vsel %vm2988_vm10, %v2986_v45, %v2989_v32 }
0x1fb6   :  { %3149 = vmatmul.msk.f32.vlgmr.msra.gmra.mxu2 %vm604_vm3, %v2990_v17 }
0x2039   :  { %v3011_v57 = vpop.f32.mrf.mxu2 }
0x203a   :  { %v3012_v54 = vadd.f32 %v4145_v23, %v3011_v57  ;;  %v3052_v23 = vsel %vm1286_vm6, %v4424_v19, %v3042_v36 }
0x203b   :  { %v3053_v2 = vsel %vm1288_vm7, %v3052_v23, %v3046_v62 }
0x203c   :  { %vm3014_vm11 = vcmp.ge.f32.partialorder %v3012_v54, 0.0  ;;  %v3015_v63 = vmul.f32 0.01, %v3012_v54 }
0x203e   :  { %v3016_v15 = vsel %vm3014_vm11, %v3012_v54, %v3015_v63 }
0x203f   :  { %3150 = vmatmul.msk.f32.vlgmr.msra.gmra.mxu3 %vm604_vm3, %v3016_v15 }
0x20c2   :  { %v3037_v5 = vpop.f32.mrf.mxu3 }
0x20c3   :  { %v3038_v20 = vadd.f32 %v4152_v8, %v3037_v5 }
0x20c5   :  { %3049 = vrot.lane.b32.xlu1 %v3038_v20, %s3294_s7 }
0x2137   :  { %v3050_v48 = vpop.permute.xlu1 %3049 }
0x2138   :  { %v3054_v8 = vsel %vm1290_vm8, %v3053_v2, %v3050_v48 }
0x2139   :  { %3055 = vst.msk [vmem:[#allocation2] sm:$0xff] %vm1292_vm9, %v3054_v8 }
0x213a   :  { %3066 = dma.vmem_to_hbm [thread:$0]  %s3062_s22, 128, %s3064_s9, [#allocation3]  }
0x213b   :  { %3282 = dma.done.wait [#allocation3], 128  }
0x213c   :  { %3283 = vsyncadd [#allocation3], 4294967168 }
0x213d   :  { %3071 = vsyncpa [#allocation3], 1 }

</bundles_post_ra>
